<compile_context>
chip_gen: v6e
topology: v6e:2x2x1
jax: 0.10.0
libtpu: 0.0.40
codegen_flags: <defaults>
</compile_context>

<pallas_src>
import jax
import jax.numpy as jnp
from jax.experimental import pallas as pl
from jax.experimental.pallas import tpu as pltpu


# ----------------------------- fused Pallas kernel ---------------------------


def _fused_encoder_kernel(x_ref, w1_ref, b1_ref, w2_ref, b2_ref,
                          o12_ref, haar_ref,
                          h1p_ref, h2_ref):
    """conv0∘conv1_1 (folded) + VMEM reflect-pad + conv1_2 + Haar pool.

    x_ref   : (1, H+2, W+2, Cin)   reflect-padded input (Cin = 3)
    w1_ref  : (9, Cin, C)          folded conv0∘conv1_1 weights, per tap
    b1_ref  : (1, C)
    w2_ref  : (3, 3*C, C)          conv1_2 weights, kw-stacked per kh
    b2_ref  : (1, C)
    o12_ref : (1, H, W/2, 2C)      conv1_2 activation, lane-dense layout
    haar_ref: (1, H/2, W/2, 4C)    [LL | LH | HL | HH] packed on channels
    h1p_ref : (H+2, W+2, C)        VMEM scratch: padded conv1_1 activation
    h2_ref  : (H*W, C)             VMEM scratch: conv1_2 activation (flat)
    """
    _, Hp, Wp, Cin = x_ref.shape
    H, W = Hp - 2, Wp - 2
    C = w1_ref.shape[-1]
    HW = H * W

    # ---- conv1_1 (conv0 folded in), 3x3, Cin -> C, ReLU ---------------------
    acc1 = jnp.zeros((HW, C), jnp.float32)
    for kh in range(3):
        for kw in range(3):
            patch = x_ref[0, kh:kh + H, kw:kw + W, :].reshape(HW, Cin)
            acc1 = acc1 + jnp.dot(patch, w1_ref[kh * 3 + kw],
                                  preferred_element_type=jnp.float32)
    h1 = jnp.maximum(acc1 + b1_ref[...], 0.0).reshape(H, W, C)

    # ---- reflection-pad conv1_1 output into VMEM scratch (no HBM trip) ------
    h1p_ref[1:H + 1, 1:W + 1, :] = h1
    h1p_ref[0:1, 1:W + 1, :] = h1[1:2, :, :]                    # top row
    h1p_ref[H + 1:H + 2, 1:W + 1, :] = h1[H - 2:H - 1, :, :]    # bottom row
    h1p_ref[:, 0:1, :] = h1p_ref[:, 2:3, :]                     # left col
    h1p_ref[:, W + 1:W + 2, :] = h1p_ref[:, W - 1:W, :]         # right col

    # ---- conv1_2, 3x3, C -> C, ReLU (kw taps stacked -> K = 3*C) ------------
    acc2 = jnp.zeros((HW, C), jnp.float32)
    for kh in range(3):
        taps = [h1p_ref[kh:kh + H, kw:kw + W, :].reshape(HW, C)
                for kw in range(3)]
        patch = jnp.concatenate(taps, axis=1)                   # (HW, 3C)
        acc2 = acc2 + jnp.dot(patch, w2_ref[kh],
                              preferred_element_type=jnp.float32)
    h2 = jnp.maximum(acc2 + b2_ref[...], 0.0)                   # (HW, C)

    # ---- even / odd image-column split (flat-row parity == w parity) --------
    h2_ref[...] = h2
    we = h2_ref[pl.ds(0, HW // 2, stride=2), :]                 # (HW/2, C) even w
    wo = h2_ref[pl.ds(1, HW // 2, stride=2), :]                 # (HW/2, C) odd w

    # conv1_2 activation, lane-dense: (H, W/2, 2C) reinterprets NHWC (H, W, C).
    o12 = jnp.concatenate([we, wo], axis=-1)                    # (HW/2, 2C)
    o12_ref[...] = o12.reshape(1, H, W // 2, 2 * C).astype(o12_ref.dtype)

    # ---- fixed Haar WavePool (depthwise 2x2, stride 2) ----------------------
    we4 = we.reshape(H // 2, 2, W // 2, C)
    wo4 = wo.reshape(H // 2, 2, W // 2, C)
    a = we4[:, 0]        # (even h, even w)
    c = we4[:, 1]        # (odd  h, even w)
    b = wo4[:, 0]        # (even h, odd  w)
    d = wo4[:, 1]        # (odd  h, odd  w)
    ll = 0.5 * (a + b + c + d)
    lh = 0.5 * (-a + b - c + d)
    hl = 0.5 * (-a - b + c + d)
    hh = 0.5 * (a - b - c + d)
    haar = jnp.concatenate([ll, lh, hl, hh], axis=-1)           # (H/2, W/2, 4C)
    haar_ref[...] = haar.reshape(1, H // 2, W // 2, 4 * C).astype(haar_ref.dtype)


# ----------------------------- wrapper / forward -----------------------------


def _reflect_pad_nhwc(x):
    return jnp.pad(x, ((0, 0), (1, 1), (1, 1), (0, 0)), mode="reflect")


def init_params(key):
    k = jax.random.split(key, 6)
    return {
        # conv0: 1x1, 3->3  (stored as (Cin, Cout))
        "w0": 0.2 * jax.random.normal(k[0], (3, 3), jnp.float32),
        "b0": 0.1 * jax.random.normal(k[1], (3,), jnp.float32),
        # conv1_1: 3x3, 3->64  (HWIO)
        "w11": 0.2 * jax.random.normal(k[2], (3, 3, 3, 64), jnp.float32),
        "b11": 0.1 * jax.random.normal(k[3], (64,), jnp.float32),
        # conv1_2: 3x3, 64->64 (HWIO)
        "w12": 0.05 * jax.random.normal(k[4], (3, 3, 64, 64), jnp.float32),
        "b12": 0.1 * jax.random.normal(k[5], (64,), jnp.float32),
    }


def wave_encoder_forward(x_nchw, params, skips=None):
    """Mirrors WaveEncoder.forward. x_nchw: (N,3,H,W). Returns (LL, skips) NCHW."""
    if skips is None:
        skips = {}
    N, Cin, H, W = x_nchw.shape
    assert H % 2 == 0 and W % 2 == 0
    C = params["w11"].shape[-1]

    x = jnp.transpose(x_nchw, (0, 2, 3, 1))                     # NHWC
    xp = _reflect_pad_nhwc(x)                                   # (N, H+2, W+2, 3)

    # Fold conv0 (1x1) into conv1_1 (exact: 1x1 conv commutes with reflect pad)
    w0, b0 = params["w0"], params["b0"]                         # (3,3), (3,)
    w11, b11 = params["w11"], params["b11"]                     # (3,3,3,C), (C,)
    w1_eff = jnp.einsum("ci,hwio->hwco", w0, w11)               # (3,3,Cin,C)
    b1_eff = b11 + jnp.einsum("i,hwio->o", b0, w11)             # (C,)

    w1k = w1_eff.reshape(9, Cin, C)                             # per-tap (Cin, C)
    w2k = params["w12"].reshape(3, 3 * C, C)                    # kw-stacked per kh

    Hp, Wp = H + 2, W + 2
    o12_dense, haar = pl.pallas_call(
        _fused_encoder_kernel,
        out_shape=(
            jax.ShapeDtypeStruct((N, H, W // 2, 2 * C), x.dtype),
            jax.ShapeDtypeStruct((N, H // 2, W // 2, 4 * C), x.dtype),
        ),
        grid=(N,),
        in_specs=[
            pl.BlockSpec((1, Hp, Wp, Cin), lambda n: (n, 0, 0, 0)),
            pl.BlockSpec((9, Cin, C), lambda n: (0, 0, 0)),
            pl.BlockSpec((1, C), lambda n: (0, 0)),
            pl.BlockSpec((3, 3 * C, C), lambda n: (0, 0, 0)),
            pl.BlockSpec((1, C), lambda n: (0, 0)),
        ],
        out_specs=(
            pl.BlockSpec((1, H, W // 2, 2 * C), lambda n: (n, 0, 0, 0)),
            pl.BlockSpec((1, H // 2, W // 2, 4 * C), lambda n: (n, 0, 0, 0)),
        ),
        scratch_shapes=[
            pltpu.VMEM((Hp, Wp, C), jnp.float32),   # padded conv1_1 activation
            pltpu.VMEM((H * W, C), jnp.float32),    # conv1_2 activation (flat)
        ],
        compiler_params=pltpu.CompilerParams(
            dimension_semantics=("parallel",),
            vmem_limit_bytes=32 * 1024 * 1024),
    )(xp, w1k, b1_eff.reshape(1, C), w2k, params["b12"].reshape(1, C))

    # Free reinterpretation of the lane-dense layout back to NHWC (N,H,W,C).
    conv1_2 = o12_dense.reshape(N, H, W, C)
    LL = haar[..., 0 * C:1 * C]
    LH = haar[..., 1 * C:2 * C]
    HL = haar[..., 2 * C:3 * C]
    HH = haar[..., 3 * C:4 * C]

    to_nchw = lambda t: jnp.transpose(t, (0, 3, 1, 2))
    skips["conv1_2"] = to_nchw(conv1_2)
    skips["pool1"] = [to_nchw(LH), to_nchw(HL), to_nchw(HH)]
    return to_nchw(LL), skips


# ----------------------------- pure-JAX reference ----------------------------


def _ref_conv(x, w_hwio, b, pad_reflect):
    if pad_reflect:
        x = _reflect_pad_nhwc(x)
    y = jax.lax.conv_general_dilated(
        x, w_hwio, (1, 1), "VALID",
        dimension_numbers=("NHWC", "HWIO", "NHWC"))
    return y + b


def wave_encoder_ref(x_nchw, params):
    x = jnp.transpose(x_nchw, (0, 2, 3, 1))
    out = _ref_conv(x, params["w0"].reshape(1, 1, 3, 3), params["b0"], False)
    out = jax.nn.relu(_ref_conv(out, params["w11"], params["b11"], True))
    out = jax.nn.relu(_ref_conv(out, params["w12"], params["b12"], True))
    conv1_2 = out
    a = out[:, 0::2, 0::2, :]
    b = out[:, 0::2, 1::2, :]
    c = out[:, 1::2, 0::2, :]
    d = out[:, 1::2, 1::2, :]
    LL = 0.5 * (a + b + c + d)
    LH = 0.5 * (-a + b - c + d)
    HL = 0.5 * (-a - b + c + d)
    HH = 0.5 * (a - b - c + d)
    to_nchw = lambda t: jnp.transpose(t, (0, 3, 1, 2))
    return (to_nchw(LL),
            {"conv1_2": to_nchw(conv1_2),
             "pool1": [to_nchw(LH), to_nchw(HL), to_nchw(HH)]})


# ------------------------------------ main ------------------------------------


if __name__ == "__main__":
    key = jax.random.PRNGKey(0)
    kx, kp = jax.random.split(key)
    # PyTorch-convention NCHW input: batch=2, 3 channels (RGB), 16x16 spatial.
    x = jax.random.normal(kx, (2, 3, 16, 16), jnp.float32)
    params = init_params(kp)

    LL, skips = wave_encoder_forward(x, params)
    LL = jax.block_until_ready(LL)

    # Correctness check against the pure-JAX reference.
    LL_ref, skips_ref = wave_encoder_ref(x, params)
    assert LL.shape == (2, 64, 8, 8)
    assert skips["conv1_2"].shape == (2, 64, 16, 16)
    assert jnp.allclose(LL, LL_ref, atol=1e-4, rtol=1e-4)
    assert jnp.allclose(skips["conv1_2"], skips_ref["conv1_2"],
                        atol=1e-4, rtol=1e-4)
    for got, want in zip(skips["pool1"], skips_ref["pool1"]):
        assert jnp.allclose(got, want, atol=1e-4, rtol=1e-4)

    print("KERNEL_OK")
</pallas_src>

<mosaic_0001>
module attributes {stable_mosaic.version = 11 : i64} {
  func.func @_fused_encoder_kernel(%arg0: i32, %arg1: memref<1x18x18x3xf32, #tpu.memory_space<vmem>>, %arg2: memref<9x3x64xf32, #tpu.memory_space<vmem>>, %arg3: memref<1x64xf32, #tpu.memory_space<vmem>>, %arg4: memref<3x192x64xf32, #tpu.memory_space<vmem>>, %arg5: memref<1x64xf32, #tpu.memory_space<vmem>>, %arg6: memref<1x16x8x128xf32, #tpu.memory_space<vmem>>, %arg7: memref<1x8x8x256xf32, #tpu.memory_space<vmem>>, %arg8: memref<18x18x64xf32, #tpu.memory_space<vmem>>, %arg9: memref<256x64xf32, #tpu.memory_space<vmem>>) attributes {dimension_semantics = [#tpu.dimension_semantics<parallel>], iteration_bounds = array<i64: 2>, scalar_prefetch = 0 : i64, scratch_operands = 2 : i64, tpu.core_type = #tpu.core_type<tc>, window_params = [{transform_indices = @transform_0, window_bounds = array<i64: 1, 18, 18, 3>}, {pipeline_mode = #tpu.pipeline_mode<synchronous>, transform_indices = @transform_1, window_bounds = array<i64: 9, 3, 64>}, {pipeline_mode = #tpu.pipeline_mode<synchronous>, transform_indices = @transform_2, window_bounds = array<i64: 1, 64>}, {pipeline_mode = #tpu.pipeline_mode<synchronous>, transform_indices = @transform_3, window_bounds = array<i64: 3, 192, 64>}, {pipeline_mode = #tpu.pipeline_mode<synchronous>, transform_indices = @transform_4, window_bounds = array<i64: 1, 64>}, {transform_indices = @transform_5, window_bounds = array<i64: 1, 16, 8, 128>}, {transform_indices = @transform_6, window_bounds = array<i64: 1, 8, 8, 256>}]} {
    %cst = arith.constant 0.000000e+00 : f32
    %0 = vector.broadcast %cst : f32 to vector<256x64xf32>
    %c0 = arith.constant 0 : index
    %c0_0 = arith.constant 0 : index
    %c0_1 = arith.constant 0 : index
    %c0_2 = arith.constant 0 : index
    %1 = vector.load %arg1[%c0, %c0_0, %c0_1, %c0_2] : memref<1x18x18x3xf32, #tpu.memory_space<vmem>>, vector<1x16x16x3xf32>
    %2 = vector.shape_cast %1 : vector<1x16x16x3xf32> to vector<16x16x3xf32>
    %3 = vector.shape_cast %2 : vector<16x16x3xf32> to vector<256x3xf32>
    %c0_3 = arith.constant 0 : index
    %c0_4 = arith.constant 0 : index
    %c0_5 = arith.constant 0 : index
    %4 = vector.load %arg2[%c0_3, %c0_4, %c0_5] : memref<9x3x64xf32, #tpu.memory_space<vmem>>, vector<1x3x64xf32>
    %5 = vector.shape_cast %4 : vector<1x3x64xf32> to vector<3x64xf32>
    %cst_6 = arith.constant dense<0.000000e+00> : vector<256x64xf32>
    %6 = tpu.matmul %3, %5, %cst_6 {dimension_numbers = #tpu.dot_dimension_numbers<[1], [0], [0], [1], [0, 0, 1, 1], [], []>} : vector<256x3xf32>, vector<3x64xf32>, vector<256x64xf32> -> vector<256x64xf32>
    %7 = arith.addf %0, %6 : vector<256x64xf32>
    %c0_7 = arith.constant 0 : index
    %c0_8 = arith.constant 0 : index
    %c1 = arith.constant 1 : index
    %c0_9 = arith.constant 0 : index
    %8 = vector.load %arg1[%c0_7, %c0_8, %c1, %c0_9] : memref<1x18x18x3xf32, #tpu.memory_space<vmem>>, vector<1x16x16x3xf32>
    %9 = vector.shape_cast %8 : vector<1x16x16x3xf32> to vector<16x16x3xf32>
    %10 = vector.shape_cast %9 : vector<16x16x3xf32> to vector<256x3xf32>
    %c1_10 = arith.constant 1 : index
    %c0_11 = arith.constant 0 : index
    %c0_12 = arith.constant 0 : index
    %11 = vector.load %arg2[%c1_10, %c0_11, %c0_12] : memref<9x3x64xf32, #tpu.memory_space<vmem>>, vector<1x3x64xf32>
    %12 = vector.shape_cast %11 : vector<1x3x64xf32> to vector<3x64xf32>
    %cst_13 = arith.constant dense<0.000000e+00> : vector<256x64xf32>
    %13 = tpu.matmul %10, %12, %cst_13 {dimension_numbers = #tpu.dot_dimension_numbers<[1], [0], [0], [1], [0, 0, 1, 1], [], []>} : vector<256x3xf32>, vector<3x64xf32>, vector<256x64xf32> -> vector<256x64xf32>
    %14 = arith.addf %7, %13 : vector<256x64xf32>
    %c0_14 = arith.constant 0 : index
    %c0_15 = arith.constant 0 : index
    %c2 = arith.constant 2 : index
    %c0_16 = arith.constant 0 : index
    %15 = vector.load %arg1[%c0_14, %c0_15, %c2, %c0_16] : memref<1x18x18x3xf32, #tpu.memory_space<vmem>>, vector<1x16x16x3xf32>
    %16 = vector.shape_cast %15 : vector<1x16x16x3xf32> to vector<16x16x3xf32>
    %17 = vector.shape_cast %16 : vector<16x16x3xf32> to vector<256x3xf32>
    %c2_17 = arith.constant 2 : index
    %c0_18 = arith.constant 0 : index
    %c0_19 = arith.constant 0 : index
    %18 = vector.load %arg2[%c2_17, %c0_18, %c0_19] : memref<9x3x64xf32, #tpu.memory_space<vmem>>, vector<1x3x64xf32>
    %19 = vector.shape_cast %18 : vector<1x3x64xf32> to vector<3x64xf32>
    %cst_20 = arith.constant dense<0.000000e+00> : vector<256x64xf32>
    %20 = tpu.matmul %17, %19, %cst_20 {dimension_numbers = #tpu.dot_dimension_numbers<[1], [0], [0], [1], [0, 0, 1, 1], [], []>} : vector<256x3xf32>, vector<3x64xf32>, vector<256x64xf32> -> vector<256x64xf32>
    %21 = arith.addf %14, %20 : vector<256x64xf32>
    %c0_21 = arith.constant 0 : index
    %c1_22 = arith.constant 1 : index
    %c0_23 = arith.constant 0 : index
    %c0_24 = arith.constant 0 : index
    %22 = vector.load %arg1[%c0_21, %c1_22, %c0_23, %c0_24] : memref<1x18x18x3xf32, #tpu.memory_space<vmem>>, vector<1x16x16x3xf32>
    %23 = vector.shape_cast %22 : vector<1x16x16x3xf32> to vector<16x16x3xf32>
    %24 = vector.shape_cast %23 : vector<16x16x3xf32> to vector<256x3xf32>
    %c3 = arith.constant 3 : index
    %c0_25 = arith.constant 0 : index
    %c0_26 = arith.constant 0 : index
    %25 = vector.load %arg2[%c3, %c0_25, %c0_26] : memref<9x3x64xf32, #tpu.memory_space<vmem>>, vector<1x3x64xf32>
    %26 = vector.shape_cast %25 : vector<1x3x64xf32> to vector<3x64xf32>
    %cst_27 = arith.constant dense<0.000000e+00> : vector<256x64xf32>
    %27 = tpu.matmul %24, %26, %cst_27 {dimension_numbers = #tpu.dot_dimension_numbers<[1], [0], [0], [1], [0, 0, 1, 1], [], []>} : vector<256x3xf32>, vector<3x64xf32>, vector<256x64xf32> -> vector<256x64xf32>
    %28 = arith.addf %21, %27 : vector<256x64xf32>
    %c0_28 = arith.constant 0 : index
    %c1_29 = arith.constant 1 : index
    %c1_30 = arith.constant 1 : index
    %c0_31 = arith.constant 0 : index
    %29 = vector.load %arg1[%c0_28, %c1_29, %c1_30, %c0_31] : memref<1x18x18x3xf32, #tpu.memory_space<vmem>>, vector<1x16x16x3xf32>
    %30 = vector.shape_cast %29 : vector<1x16x16x3xf32> to vector<16x16x3xf32>
    %31 = vector.shape_cast %30 : vector<16x16x3xf32> to vector<256x3xf32>
    %c4 = arith.constant 4 : index
    %c0_32 = arith.constant 0 : index
    %c0_33 = arith.constant 0 : index
    %32 = vector.load %arg2[%c4, %c0_32, %c0_33] : memref<9x3x64xf32, #tpu.memory_space<vmem>>, vector<1x3x64xf32>
    %33 = vector.shape_cast %32 : vector<1x3x64xf32> to vector<3x64xf32>
    %cst_34 = arith.constant dense<0.000000e+00> : vector<256x64xf32>
    %34 = tpu.matmul %31, %33, %cst_34 {dimension_numbers = #tpu.dot_dimension_numbers<[1], [0], [0], [1], [0, 0, 1, 1], [], []>} : vector<256x3xf32>, vector<3x64xf32>, vector<256x64xf32> -> vector<256x64xf32>
    %35 = arith.addf %28, %34 : vector<256x64xf32>
    %c0_35 = arith.constant 0 : index
    %c1_36 = arith.constant 1 : index
    %c2_37 = arith.constant 2 : index
    %c0_38 = arith.constant 0 : index
    %36 = vector.load %arg1[%c0_35, %c1_36, %c2_37, %c0_38] : memref<1x18x18x3xf32, #tpu.memory_space<vmem>>, vector<1x16x16x3xf32>
    %37 = vector.shape_cast %36 : vector<1x16x16x3xf32> to vector<16x16x3xf32>
    %38 = vector.shape_cast %37 : vector<16x16x3xf32> to vector<256x3xf32>
    %c5 = arith.constant 5 : index
    %c0_39 = arith.constant 0 : index
    %c0_40 = arith.constant 0 : index
    %39 = vector.load %arg2[%c5, %c0_39, %c0_40] : memref<9x3x64xf32, #tpu.memory_space<vmem>>, vector<1x3x64xf32>
    %40 = vector.shape_cast %39 : vector<1x3x64xf32> to vector<3x64xf32>
    %cst_41 = arith.constant dense<0.000000e+00> : vector<256x64xf32>
    %41 = tpu.matmul %38, %40, %cst_41 {dimension_numbers = #tpu.dot_dimension_numbers<[1], [0], [0], [1], [0, 0, 1, 1], [], []>} : vector<256x3xf32>, vector<3x64xf32>, vector<256x64xf32> -> vector<256x64xf32>
    %42 = arith.addf %35, %41 : vector<256x64xf32>
    %c0_42 = arith.constant 0 : index
    %c2_43 = arith.constant 2 : index
    %c0_44 = arith.constant 0 : index
    %c0_45 = arith.constant 0 : index
    %43 = vector.load %arg1[%c0_42, %c2_43, %c0_44, %c0_45] : memref<1x18x18x3xf32, #tpu.memory_space<vmem>>, vector<1x16x16x3xf32>
    %44 = vector.shape_cast %43 : vector<1x16x16x3xf32> to vector<16x16x3xf32>
    %45 = vector.shape_cast %44 : vector<16x16x3xf32> to vector<256x3xf32>
    %c6 = arith.constant 6 : index
    %c0_46 = arith.constant 0 : index
    %c0_47 = arith.constant 0 : index
    %46 = vector.load %arg2[%c6, %c0_46, %c0_47] : memref<9x3x64xf32, #tpu.memory_space<vmem>>, vector<1x3x64xf32>
    %47 = vector.shape_cast %46 : vector<1x3x64xf32> to vector<3x64xf32>
    %cst_48 = arith.constant dense<0.000000e+00> : vector<256x64xf32>
    %48 = tpu.matmul %45, %47, %cst_48 {dimension_numbers = #tpu.dot_dimension_numbers<[1], [0], [0], [1], [0, 0, 1, 1], [], []>} : vector<256x3xf32>, vector<3x64xf32>, vector<256x64xf32> -> vector<256x64xf32>
    %49 = arith.addf %42, %48 : vector<256x64xf32>
    %c0_49 = arith.constant 0 : index
    %c2_50 = arith.constant 2 : index
    %c1_51 = arith.constant 1 : index
    %c0_52 = arith.constant 0 : index
    %50 = vector.load %arg1[%c0_49, %c2_50, %c1_51, %c0_52] : memref<1x18x18x3xf32, #tpu.memory_space<vmem>>, vector<1x16x16x3xf32>
    %51 = vector.shape_cast %50 : vector<1x16x16x3xf32> to vector<16x16x3xf32>
    %52 = vector.shape_cast %51 : vector<16x16x3xf32> to vector<256x3xf32>
    %c7 = arith.constant 7 : index
    %c0_53 = arith.constant 0 : index
    %c0_54 = arith.constant 0 : index
    %53 = vector.load %arg2[%c7, %c0_53, %c0_54] : memref<9x3x64xf32, #tpu.memory_space<vmem>>, vector<1x3x64xf32>
    %54 = vector.shape_cast %53 : vector<1x3x64xf32> to vector<3x64xf32>
    %cst_55 = arith.constant dense<0.000000e+00> : vector<256x64xf32>
    %55 = tpu.matmul %52, %54, %cst_55 {dimension_numbers = #tpu.dot_dimension_numbers<[1], [0], [0], [1], [0, 0, 1, 1], [], []>} : vector<256x3xf32>, vector<3x64xf32>, vector<256x64xf32> -> vector<256x64xf32>
    %56 = arith.addf %49, %55 : vector<256x64xf32>
    %c0_56 = arith.constant 0 : index
    %c2_57 = arith.constant 2 : index
    %c2_58 = arith.constant 2 : index
    %c0_59 = arith.constant 0 : index
    %57 = vector.load %arg1[%c0_56, %c2_57, %c2_58, %c0_59] : memref<1x18x18x3xf32, #tpu.memory_space<vmem>>, vector<1x16x16x3xf32>
    %58 = vector.shape_cast %57 : vector<1x16x16x3xf32> to vector<16x16x3xf32>
    %59 = vector.shape_cast %58 : vector<16x16x3xf32> to vector<256x3xf32>
    %c8 = arith.constant 8 : index
    %c0_60 = arith.constant 0 : index
    %c0_61 = arith.constant 0 : index
    %60 = vector.load %arg2[%c8, %c0_60, %c0_61] : memref<9x3x64xf32, #tpu.memory_space<vmem>>, vector<1x3x64xf32>
    %61 = vector.shape_cast %60 : vector<1x3x64xf32> to vector<3x64xf32>
    %cst_62 = arith.constant dense<0.000000e+00> : vector<256x64xf32>
    %62 = tpu.matmul %59, %61, %cst_62 {dimension_numbers = #tpu.dot_dimension_numbers<[1], [0], [0], [1], [0, 0, 1, 1], [], []>} : vector<256x3xf32>, vector<3x64xf32>, vector<256x64xf32> -> vector<256x64xf32>
    %63 = arith.addf %56, %62 : vector<256x64xf32>
    %c0_63 = arith.constant 0 : index
    %c0_64 = arith.constant 0 : index
    %64 = vector.load %arg3[%c0_63, %c0_64] : memref<1x64xf32, #tpu.memory_space<vmem>>, vector<1x64xf32>
    %65 = vector.broadcast %64 : vector<1x64xf32> to vector<256x64xf32>
    %66 = arith.addf %63, %65 : vector<256x64xf32>
    %cst_65 = arith.constant 0.000000e+00 : f32
    %67 = vector.broadcast %cst_65 : f32 to vector<256x64xf32>
    %68 = arith.maximumf %66, %67 : vector<256x64xf32>
    %69 = vector.shape_cast %68 : vector<256x64xf32> to vector<16x16x64xf32>
    %c1_66 = arith.constant 1 : index
    %c1_67 = arith.constant 1 : index
    %c0_68 = arith.constant 0 : index
    %70 = vector.load %arg8[%c1_66, %c1_67, %c0_68] : memref<18x18x64xf32, #tpu.memory_space<vmem>>, vector<16x16x64xf32>
    tpu.vector_store %arg8[%c1_66, %c1_67, %c0_68], %69 {strides = array<i32>} : memref<18x18x64xf32, #tpu.memory_space<vmem>>, vector<16x16x64xf32>,
    %71 = vector.extract_strided_slice %69 {offsets = [1, 0, 0], sizes = [1, 16, 64], strides = [1, 1, 1]} : vector<16x16x64xf32> to vector<1x16x64xf32>
    %c0_69 = arith.constant 0 : index
    %c1_70 = arith.constant 1 : index
    %c0_71 = arith.constant 0 : index
    %72 = vector.load %arg8[%c0_69, %c1_70, %c0_71] : memref<18x18x64xf32, #tpu.memory_space<vmem>>, vector<1x16x64xf32>
    tpu.vector_store %arg8[%c0_69, %c1_70, %c0_71], %71 {strides = array<i32>} : memref<18x18x64xf32, #tpu.memory_space<vmem>>, vector<1x16x64xf32>,
    %73 = vector.extract_strided_slice %69 {offsets = [14, 0, 0], sizes = [1, 16, 64], strides = [1, 1, 1]} : vector<16x16x64xf32> to vector<1x16x64xf32>
    %c17 = arith.constant 17 : index
    %c1_72 = arith.constant 1 : index
    %c0_73 = arith.constant 0 : index
    %74 = vector.load %arg8[%c17, %c1_72, %c0_73] : memref<18x18x64xf32, #tpu.memory_space<vmem>>, vector<1x16x64xf32>
    tpu.vector_store %arg8[%c17, %c1_72, %c0_73], %73 {strides = array<i32>} : memref<18x18x64xf32, #tpu.memory_space<vmem>>, vector<1x16x64xf32>,
    %c0_74 = arith.constant 0 : index
    %c2_75 = arith.constant 2 : index
    %c0_76 = arith.constant 0 : index
    %75 = vector.load %arg8[%c0_74, %c2_75, %c0_76] : memref<18x18x64xf32, #tpu.memory_space<vmem>>, vector<18x1x64xf32>
    %c0_77 = arith.constant 0 : index
    %c0_78 = arith.constant 0 : index
    %c0_79 = arith.constant 0 : index
    %76 = vector.load %arg8[%c0_77, %c0_78, %c0_79] : memref<18x18x64xf32, #tpu.memory_space<vmem>>, vector<18x1x64xf32>
    tpu.vector_store %arg8[%c0_77, %c0_78, %c0_79], %75 {strides = array<i32>} : memref<18x18x64xf32, #tpu.memory_space<vmem>>, vector<18x1x64xf32>,
    %c0_80 = arith.constant 0 : index
    %c15 = arith.constant 15 : index
    %c0_81 = arith.constant 0 : index
    %77 = vector.load %arg8[%c0_80, %c15, %c0_81] : memref<18x18x64xf32, #tpu.memory_space<vmem>>, vector<18x1x64xf32>
    %c0_82 = arith.constant 0 : index
    %c17_83 = arith.constant 17 : index
    %c0_84 = arith.constant 0 : index
    %78 = vector.load %arg8[%c0_82, %c17_83, %c0_84] : memref<18x18x64xf32, #tpu.memory_space<vmem>>, vector<18x1x64xf32>
    tpu.vector_store %arg8[%c0_82, %c17_83, %c0_84], %77 {strides = array<i32>} : memref<18x18x64xf32, #tpu.memory_space<vmem>>, vector<18x1x64xf32>,
    %cst_85 = arith.constant 0.000000e+00 : f32
    %79 = vector.broadcast %cst_85 : f32 to vector<256x64xf32>
    %c0_86 = arith.constant 0 : index
    %c0_87 = arith.constant 0 : index
    %c0_88 = arith.constant 0 : index
    %80 = vector.load %arg8[%c0_86, %c0_87, %c0_88] : memref<18x18x64xf32, #tpu.memory_space<vmem>>, vector<16x16x64xf32>
    %81 = vector.shape_cast %80 : vector<16x16x64xf32> to vector<256x64xf32>
    %c0_89 = arith.constant 0 : index
    %c1_90 = arith.constant 1 : index
    %c0_91 = arith.constant 0 : index
    %82 = vector.load %arg8[%c0_89, %c1_90, %c0_91] : memref<18x18x64xf32, #tpu.memory_space<vmem>>, vector<16x16x64xf32>
    %83 = vector.shape_cast %82 : vector<16x16x64xf32> to vector<256x64xf32>
    %c0_92 = arith.constant 0 : index
    %c2_93 = arith.constant 2 : index
    %c0_94 = arith.constant 0 : index
    %84 = vector.load %arg8[%c0_92, %c2_93, %c0_94] : memref<18x18x64xf32, #tpu.memory_space<vmem>>, vector<16x16x64xf32>
    %85 = vector.shape_cast %84 : vector<16x16x64xf32> to vector<256x64xf32>
    %86 = tpu.concatenate %81, %83, %85 in 1 : vector<256x64xf32>, vector<256x64xf32>, vector<256x64xf32> -> vector<256x192xf32>
    %c0_95 = arith.constant 0 : index
    %c0_96 = arith.constant 0 : index
    %c0_97 = arith.constant 0 : index
    %87 = vector.load %arg4[%c0_95, %c0_96, %c0_97] : memref<3x192x64xf32, #tpu.memory_space<vmem>>, vector<1x192x64xf32>
    %88 = vector.shape_cast %87 : vector<1x192x64xf32> to vector<192x64xf32>
    %cst_98 = arith.constant dense<0.000000e+00> : vector<256x64xf32>
    %89 = tpu.matmul %86, %88, %cst_98 {dimension_numbers = #tpu.dot_dimension_numbers<[1], [0], [0], [1], [0, 0, 1, 1], [], []>} : vector<256x192xf32>, vector<192x64xf32>, vector<256x64xf32> -> vector<256x64xf32>
    %90 = arith.addf %79, %89 : vector<256x64xf32>
    %c1_99 = arith.constant 1 : index
    %c0_100 = arith.constant 0 : index
    %c0_101 = arith.constant 0 : index
    %91 = vector.load %arg8[%c1_99, %c0_100, %c0_101] : memref<18x18x64xf32, #tpu.memory_space<vmem>>, vector<16x16x64xf32>
    %92 = vector.shape_cast %91 : vector<16x16x64xf32> to vector<256x64xf32>
    %c1_102 = arith.constant 1 : index
    %c1_103 = arith.constant 1 : index
    %c0_104 = arith.constant 0 : index
    %93 = vector.load %arg8[%c1_102, %c1_103, %c0_104] : memref<18x18x64xf32, #tpu.memory_space<vmem>>, vector<16x16x64xf32>
    %94 = vector.shape_cast %93 : vector<16x16x64xf32> to vector<256x64xf32>
    %c1_105 = arith.constant 1 : index
    %c2_106 = arith.constant 2 : index
    %c0_107 = arith.constant 0 : index
    %95 = vector.load %arg8[%c1_105, %c2_106, %c0_107] : memref<18x18x64xf32, #tpu.memory_space<vmem>>, vector<16x16x64xf32>
    %96 = vector.shape_cast %95 : vector<16x16x64xf32> to vector<256x64xf32>
    %97 = tpu.concatenate %92, %94, %96 in 1 : vector<256x64xf32>, vector<256x64xf32>, vector<256x64xf32> -> vector<256x192xf32>
    %c1_108 = arith.constant 1 : index
    %c0_109 = arith.constant 0 : index
    %c0_110 = arith.constant 0 : index
    %98 = vector.load %arg4[%c1_108, %c0_109, %c0_110] : memref<3x192x64xf32, #tpu.memory_space<vmem>>, vector<1x192x64xf32>
    %99 = vector.shape_cast %98 : vector<1x192x64xf32> to vector<192x64xf32>
    %cst_111 = arith.constant dense<0.000000e+00> : vector<256x64xf32>
    %100 = tpu.matmul %97, %99, %cst_111 {dimension_numbers = #tpu.dot_dimension_numbers<[1], [0], [0], [1], [0, 0, 1, 1], [], []>} : vector<256x192xf32>, vector<192x64xf32>, vector<256x64xf32> -> vector<256x64xf32>
    %101 = arith.addf %90, %100 : vector<256x64xf32>
    %c2_112 = arith.constant 2 : index
    %c0_113 = arith.constant 0 : index
    %c0_114 = arith.constant 0 : index
    %102 = vector.load %arg8[%c2_112, %c0_113, %c0_114] : memref<18x18x64xf32, #tpu.memory_space<vmem>>, vector<16x16x64xf32>
    %103 = vector.shape_cast %102 : vector<16x16x64xf32> to vector<256x64xf32>
    %c2_115 = arith.constant 2 : index
    %c1_116 = arith.constant 1 : index
    %c0_117 = arith.constant 0 : index
    %104 = vector.load %arg8[%c2_115, %c1_116, %c0_117] : memref<18x18x64xf32, #tpu.memory_space<vmem>>, vector<16x16x64xf32>
    %105 = vector.shape_cast %104 : vector<16x16x64xf32> to vector<256x64xf32>
    %c2_118 = arith.constant 2 : index
    %c2_119 = arith.constant 2 : index
    %c0_120 = arith.constant 0 : index
    %106 = vector.load %arg8[%c2_118, %c2_119, %c0_120] : memref<18x18x64xf32, #tpu.memory_space<vmem>>, vector<16x16x64xf32>
    %107 = vector.shape_cast %106 : vector<16x16x64xf32> to vector<256x64xf32>
    %108 = tpu.concatenate %103, %105, %107 in 1 : vector<256x64xf32>, vector<256x64xf32>, vector<256x64xf32> -> vector<256x192xf32>
    %c2_121 = arith.constant 2 : index
    %c0_122 = arith.constant 0 : index
    %c0_123 = arith.constant 0 : index
    %109 = vector.load %arg4[%c2_121, %c0_122, %c0_123] : memref<3x192x64xf32, #tpu.memory_space<vmem>>, vector<1x192x64xf32>
    %110 = vector.shape_cast %109 : vector<1x192x64xf32> to vector<192x64xf32>
    %cst_124 = arith.constant dense<0.000000e+00> : vector<256x64xf32>
    %111 = tpu.matmul %108, %110, %cst_124 {dimension_numbers = #tpu.dot_dimension_numbers<[1], [0], [0], [1], [0, 0, 1, 1], [], []>} : vector<256x192xf32>, vector<192x64xf32>, vector<256x64xf32> -> vector<256x64xf32>
    %112 = arith.addf %101, %111 : vector<256x64xf32>
    %c0_125 = arith.constant 0 : index
    %c0_126 = arith.constant 0 : index
    %113 = vector.load %arg5[%c0_125, %c0_126] : memref<1x64xf32, #tpu.memory_space<vmem>>, vector<1x64xf32>
    %114 = vector.broadcast %113 : vector<1x64xf32> to vector<256x64xf32>
    %115 = arith.addf %112, %114 : vector<256x64xf32>
    %cst_127 = arith.constant 0.000000e+00 : f32
    %116 = vector.broadcast %cst_127 : f32 to vector<256x64xf32>
    %117 = arith.maximumf %115, %116 : vector<256x64xf32>
    %c0_128 = arith.constant 0 : index
    %c0_129 = arith.constant 0 : index
    %118 = vector.load %arg9[%c0_128, %c0_129] : memref<256x64xf32, #tpu.memory_space<vmem>>, vector<256x64xf32>
    tpu.vector_store %arg9[%c0_128, %c0_129], %117 {strides = array<i32>} : memref<256x64xf32, #tpu.memory_space<vmem>>, vector<256x64xf32>,
    %c0_130 = arith.constant 0 : index
    %c0_131 = arith.constant 0 : index
    %119 = tpu.strided_load %arg9[%c0_130, %c0_131] {strides = array<i32: 2, 1>} : memref<256x64xf32, #tpu.memory_space<vmem>>, vector<128x64xf32>
    %c1_132 = arith.constant 1 : index
    %c0_133 = arith.constant 0 : index
    %120 = tpu.strided_load %arg9[%c1_132, %c0_133] {strides = array<i32: 2, 1>} : memref<256x64xf32, #tpu.memory_space<vmem>>, vector<128x64xf32>
    %121 = tpu.concatenate %119, %120 in 1 : vector<128x64xf32>, vector<128x64xf32> -> vector<128x128xf32>
    %122 = vector.shape_cast %121 : vector<128x128xf32> to vector<1x16x8x128xf32>
    %c0_134 = arith.constant 0 : index
    %c0_135 = arith.constant 0 : index
    %c0_136 = arith.constant 0 : index
    %c0_137 = arith.constant 0 : index
    %123 = vector.load %arg6[%c0_134, %c0_135, %c0_136, %c0_137] : memref<1x16x8x128xf32, #tpu.memory_space<vmem>>, vector<1x16x8x128xf32>
    tpu.vector_store %arg6[%c0_134, %c0_135, %c0_136, %c0_137], %122 {strides = array<i32>} : memref<1x16x8x128xf32, #tpu.memory_space<vmem>>, vector<1x16x8x128xf32>,
    %124 = vector.shape_cast %119 : vector<128x64xf32> to vector<8x2x8x64xf32>
    %125 = vector.shape_cast %120 : vector<128x64xf32> to vector<8x2x8x64xf32>
    %126 = vector.extract_strided_slice %124 {offsets = [0, 0, 0, 0], sizes = [8, 1, 8, 64], strides = [1, 1, 1, 1]} : vector<8x2x8x64xf32> to vector<8x1x8x64xf32>
    %127 = vector.shape_cast %126 : vector<8x1x8x64xf32> to vector<8x8x64xf32>
    %128 = vector.extract_strided_slice %124 {offsets = [0, 1, 0, 0], sizes = [8, 1, 8, 64], strides = [1, 1, 1, 1]} : vector<8x2x8x64xf32> to vector<8x1x8x64xf32>
    %129 = vector.shape_cast %128 : vector<8x1x8x64xf32> to vector<8x8x64xf32>
    %130 = vector.extract_strided_slice %125 {offsets = [0, 0, 0, 0], sizes = [8, 1, 8, 64], strides = [1, 1, 1, 1]} : vector<8x2x8x64xf32> to vector<8x1x8x64xf32>
    %131 = vector.shape_cast %130 : vector<8x1x8x64xf32> to vector<8x8x64xf32>
    %132 = vector.extract_strided_slice %125 {offsets = [0, 1, 0, 0], sizes = [8, 1, 8, 64], strides = [1, 1, 1, 1]} : vector<8x2x8x64xf32> to vector<8x1x8x64xf32>
    %133 = vector.shape_cast %132 : vector<8x1x8x64xf32> to vector<8x8x64xf32>
    %134 = arith.addf %127, %131 : vector<8x8x64xf32>
    %135 = arith.addf %134, %129 : vector<8x8x64xf32>
    %136 = arith.addf %135, %133 : vector<8x8x64xf32>
    %cst_138 = arith.constant 5.000000e-01 : f32
    %137 = vector.broadcast %cst_138 : f32 to vector<8x8x64xf32>
    %138 = arith.mulf %137, %136 : vector<8x8x64xf32>
    %cst_139 = arith.constant 0.000000e+00 : f32
    %139 = vector.broadcast %cst_139 : f32 to vector<8x8x64xf32>
    %140 = arith.subf %139, %127 : vector<8x8x64xf32>
    %141 = arith.addf %140, %131 : vector<8x8x64xf32>
    %142 = arith.subf %141, %129 : vector<8x8x64xf32>
    %143 = arith.addf %142, %133 : vector<8x8x64xf32>
    %cst_140 = arith.constant 5.000000e-01 : f32
    %144 = vector.broadcast %cst_140 : f32 to vector<8x8x64xf32>
    %145 = arith.mulf %144, %143 : vector<8x8x64xf32>
    %cst_141 = arith.constant 0.000000e+00 : f32
    %146 = vector.broadcast %cst_141 : f32 to vector<8x8x64xf32>
    %147 = arith.subf %146, %127 : vector<8x8x64xf32>
    %148 = arith.subf %147, %131 : vector<8x8x64xf32>
    %149 = arith.addf %148, %129 : vector<8x8x64xf32>
    %150 = arith.addf %149, %133 : vector<8x8x64xf32>
    %cst_142 = arith.constant 5.000000e-01 : f32
    %151 = vector.broadcast %cst_142 : f32 to vector<8x8x64xf32>
    %152 = arith.mulf %151, %150 : vector<8x8x64xf32>
    %153 = arith.subf %127, %131 : vector<8x8x64xf32>
    %154 = arith.subf %153, %129 : vector<8x8x64xf32>
    %155 = arith.addf %154, %133 : vector<8x8x64xf32>
    %cst_143 = arith.constant 5.000000e-01 : f32
    %156 = vector.broadcast %cst_143 : f32 to vector<8x8x64xf32>
    %157 = arith.mulf %156, %155 : vector<8x8x64xf32>
    %158 = tpu.concatenate %138, %145, %152, %157 in 2 : vector<8x8x64xf32>, vector<8x8x64xf32>, vector<8x8x64xf32>, vector<8x8x64xf32> -> vector<8x8x256xf32>
    %159 = vector.shape_cast %158 : vector<8x8x256xf32> to vector<1x8x8x256xf32>
    %c0_144 = arith.constant 0 : index
    %c0_145 = arith.constant 0 : index
    %c0_146 = arith.constant 0 : index
    %c0_147 = arith.constant 0 : index
    %160 = vector.load %arg7[%c0_144, %c0_145, %c0_146, %c0_147] : memref<1x8x8x256xf32, #tpu.memory_space<vmem>>, vector<1x8x8x256xf32>
    tpu.vector_store %arg7[%c0_144, %c0_145, %c0_146, %c0_147], %159 {strides = array<i32>} : memref<1x8x8x256xf32, #tpu.memory_space<vmem>>, vector<1x8x8x256xf32>,
    return
  }
  func.func @transform_0(%arg0: i32) -> (i32, i32, i32, i32) {
    %c0_i32 = arith.constant 0 : i32
    %c0_i32_0 = arith.constant 0 : i32
    %c0_i32_1 = arith.constant 0 : i32
    %c0_i32_2 = arith.constant 0 : i32
    return %arg0, %c0_i32, %c0_i32_0, %c0_i32_1 : i32, i32, i32, i32
  }
  func.func @transform_1(%arg0: i32) -> (i32, i32, i32) {
    %c0_i32 = arith.constant 0 : i32
    %c0_i32_0 = arith.constant 0 : i32
    %c0_i32_1 = arith.constant 0 : i32
    %c0_i32_2 = arith.constant 0 : i32
    return %c0_i32, %c0_i32_0, %c0_i32_1 : i32, i32, i32
  }
  func.func @transform_2(%arg0: i32) -> (i32, i32) {
    %c0_i32 = arith.constant 0 : i32
    %c0_i32_0 = arith.constant 0 : i32
    %c0_i32_1 = arith.constant 0 : i32
    return %c0_i32, %c0_i32_0 : i32, i32
  }
  func.func @transform_3(%arg0: i32) -> (i32, i32, i32) {
    %c0_i32 = arith.constant 0 : i32
    %c0_i32_0 = arith.constant 0 : i32
    %c0_i32_1 = arith.constant 0 : i32
    %c0_i32_2 = arith.constant 0 : i32
    return %c0_i32, %c0_i32_0, %c0_i32_1 : i32, i32, i32
  }
  func.func @transform_4(%arg0: i32) -> (i32, i32) {
    %c0_i32 = arith.constant 0 : i32
    %c0_i32_0 = arith.constant 0 : i32
    %c0_i32_1 = arith.constant 0 : i32
    return %c0_i32, %c0_i32_0 : i32, i32
  }
  func.func @transform_5(%arg0: i32) -> (i32, i32, i32, i32) {
    %c0_i32 = arith.constant 0 : i32
    %c0_i32_0 = arith.constant 0 : i32
    %c0_i32_1 = arith.constant 0 : i32
    %c0_i32_2 = arith.constant 0 : i32
    return %arg0, %c0_i32, %c0_i32_0, %c0_i32_1 : i32, i32, i32, i32
  }
  func.func @transform_6(%arg0: i32) -> (i32, i32, i32, i32) {
    %c0_i32 = arith.constant 0 : i32
    %c0_i32_0 = arith.constant 0 : i32
    %c0_i32_1 = arith.constant 0 : i32
    %c0_i32_2 = arith.constant 0 : i32
    return %arg0, %c0_i32, %c0_i32_0, %c0_i32_1 : i32, i32, i32, i32
  }
}

</mosaic_0001>

<bundles_post_ra>
// kernel: tpu_custom_call.1
= control target key start
LH: loop header
LB: loop body
LE: loop exit
PB: predicated region body
PF: predicated region fallthrough
CT: control target
= control target key end

     0   :  { %12 = vsyncpa [#allocation5], 0  ;;  %s11481_s0 = inlined_call_operand.vmem [shape: f32[2,18,18,3], index: 0, kind: input, shape index: {}]   ;;  %s11482_s1 = inlined_call_operand.vmem [shape: f32[9,3,64], index: 1, kind: input, shape index: {}]   ;;  %s11483_s2 = inlined_call_operand.vmem [shape: f32[1,64], index: 2, kind: input, shape index: {}]   ;;  %s11484_s3 = inlined_call_operand.vmem [shape: f32[3,192,64], index: 3, kind: input, shape index: {}]   ;;  %s11485_s4 = inlined_call_operand.vmem [shape: f32[1,64], index: 4, kind: input, shape index: {}]   ;;  %s11486_s5 = inlined_call_operand.hbm [shape: f32[2,16,8,128], index: 5, kind: output, shape index: {0}]   ;;  %s11487_s6 = inlined_call_operand.hbm [shape: f32[2,8,8,256], index: 6, kind: output, shape index: {1}]  }
   0x1   :  { %14 = vsyncpa [#allocation5 + $0x1], 0 }
   0x2   :  { %15 = vsyncpa [#allocation7], 0 }
   0x3   :  { %17 = vsyncpa [#allocation7 + $0x1], 0  ;;  %s7949_s21 = smov 0   ;;  %s7951_s22 = smov 0  }
   0x4   :  { %s7953_s23 = smov 0   ;;  %s7955_s24 = smov 0  }
   0x5 LB: > { %s7970_s25 = sadd.s32 4294967295, %s7904_s24   ;;  %s6354_s26 = sadd.s32 4294967294, %s7904_s24   ;;  %s7904_s24 = sphi %s7955_s24, %s11787_s24   ;;  %s7900_s23 = sphi %s7953_s23, %s11786_s23   ;;  %s7896_s22 = sphi %s7951_s22, %s11785_s22   ;;  %s7892_s21 = sphi %s7949_s21, %s11784_s21  }
   0x6   : > { %s7974_s27 = sadd.s32 1, %s7904_s24   ;;  %s140_s28 = sadd.s32 1, %s7900_s23 }
   0x7   : > { %s137_s29 = ssub.s32 %s7904_s24, %s7974_s27  ;;  %p150_p0 = scmp.ne.s32.totalorder %s7900_s23, %s7896_s22 }
   0x8   : > { %p138_p1 = scmp.eq.s32.totalorder %s137_s29, 0  ;;  %p151_p2 = scmp.eq.s32.totalorder %s7970_s25, 1 }
   0x9   : > { %p156_p3 = scmp.ne.s32.totalorder %s7896_s22, %s7892_s21  ;;  %p157_p4 = scmp.eq.s32.totalorder %s6354_s26, 1 }
   0xa   : > { %s7985_s30 = scalar_select %p138_p1, %s7900_s23, %s140_s28  }
   0xb   : > { %p7987_p5 = por %p151_p2, %p150_p0  ;;  %p7991_p6 = por %p157_p4, %p156_p3 }
   0xc   : > { %p6357_p7 = scmp.ge.s32.totalorder %s7904_s24, 1  ;;  %p221_p8 = scmp.lt.s32.totalorder %s7904_s24, 3 }
   0xe   : > { %p222_p9 = pnand %p6357_p7, %p221_p8 }
  0x10   : > { %225 = sbr.rel (%p222_p9) target bundleno = 1261 (0x4ed), region = 40 }
  0x15   : > { %v6361_v0 = vld [vmem:[%s11482_s1 + $0x4] sm:$0x7]  ;;  %vm425_vm0 = vcmask 1042432   ;;  %p256_p10 = scmp.lt.s32.totalorder %s7970_s25, 1  ;;  %v293_v1 = vld [vmem:[%s11482_s1] sm:$0x7] }
  0x16   : > { %7311 = vmatprep.subr.msk.mxu0 %vm425_vm0, %v6361_v0  ;;  %7761 = vmatprep.subr.msk.mxu1 %vm425_vm0, %v293_v1  ;;  %v6494_v2 = vld [vmem:[%s11482_s1 + $0xc] sm:$0x7]  ;;  %vm328_vm1 = vcmask 23552   ;;  %v8028_v6 = vld [vmem:[%s11482_s1 + $0x8] sm:$0x7]  ;;  %vm3782_vm2 = vcmask 523264  }
  0x17   : > { %7312 = vmatpush3.msk.msra.mxu0 %vm425_vm0, %v6361_v0  ;;  %s257_s13 = scalar_select %p256_p10, %s7970_s25, 1  ;;  %7762 = vmatpush3.msk.msra.mxu1 %vm425_vm0, %v293_v1  ;;  %v6626_v39 = vld [vmem:[%s11482_s1 + $0x14] sm:$0x7]  ;;  %vm3838_vm3 = vcmask 516096  }
  0x18   : > { %7361 = vmatprep.subr.msk.mxu0 %vm425_vm0, %v293_v1  ;;  %7461 = vmatprep.subr.msk.mxu1 %vm425_vm0, %v6494_v2  ;;  %s7907_s28 = smov 64   ;;  %s11261_s29 = sand.u32 1, %s7896_s22  }
  0x19   : > { %s7763_s16 = smul.u32 432, %s257_s13  ;;  %s6358_s9 = sshll.u32 %s11261_s29, 7 }
  0x1a   : > { %s11281_s10 = scalar_lea.vmem [#allocation4], %s6358_s9  ;;  %s11306_s11 = scalar_lea.vmem [#allocation6], %s6358_s9 }
  0x1b   : > { %s8017_s19 = scalar_lea.vmem %s11481_s0, %s7763_s16  ;;  %s6244_s12 = sshll.u32 %s11281_s10, 4  ;;  %s11396_s12 = int_to_ptr.vmem [resolvable:$true] %s6244_s12 }
  0x1c   : > { %v294_v3 = vld [vmem:[%s8017_s19 + $0x1] sm:$0xff]  ;;  %v295_v4 = vld [vmem:[%s8017_s19 + $0x9] sm:$0xff]  ;;  %v8022_v5 = vld [vmem:[%s8017_s19 + $0x19] sm:$0xff]  ;;  %s6226_s16 = scalar_lea.sflag [#allocation5], %s11261_s29  ;;  %s7814_s17 = scalar_lea.vmem %s11396_s12, 2048 }
  0x1d   : > { %7313 = vmatprep.mubr.msk.f32.mxu0 %vm328_vm1, %v294_v3  ;;  %v8035_v7 = vld [vmem:[%s8017_s19 + $0x21] sm:$0xff]  ;;  %v8038_v8 = vld [vmem:[%s8017_s19 + $0x31] sm:$0xff]  ;;  %v8055_v11 = vld [vmem:[%s8017_s19 + $0x39] sm:$0xff]  ;;  %p7815_p11 = scmp.ne.s32.totalorder %s11396_s12, %s7814_s17  ;;  %s7908_s18 = smov [#allocation4]  }
  0x1e   : > { %7314 = vmatmul.mubr.msk.f32.vlgmr.msra.gmra.mxu0 %vm328_vm1, %v295_v4  ;;  %v8043_v9 = vld [vmem:[%s8017_s19 + $0xc0] sm:$0xff]  ;;  %v8050_v10 = vld [vmem:[%s8017_s19 + $0xc8] sm:$0xff]  ;;  %v8060_v12 = vld [vmem:[%s8017_s19 + $0xd8] sm:$0xff] }
  0x1f   : > { %7362 = vmatpush3.msk.msra.mxu0 %vm425_vm0, %v293_v1  ;;  %7316 = vmatprep.mubr.msk.f32.mxu0 %vm328_vm1, %v8022_v5  ;;  %v8063_v13 = vld [vmem:[%s8017_s19 + $0x49] sm:$0xff]  ;;  %v8068_v14 = vld [vmem:[%s8017_s19 + $0xe0] sm:$0xff]  ;;  %v8079_v16 = vld [vmem:[%s8017_s19 + $0x51] sm:$0xff]  ;;  %p7816_p12 = pnand %p7815_p11, %p7987_p5 }
  0x20   : > { %7411 = vmatprep.subr.msk.mxu0 %vm425_vm0, %v8028_v6  ;;  %7387 = vmatprep.mubr.msk.f32.mxu1 %vm328_vm1, %v8043_v9  ;;  %v8072_v15 = vld [vmem:[%s8017_s19 + $0xf0] sm:$0xff]  ;;  %v8084_v17 = vld [vmem:[%s8017_s19 + $0x61] sm:$0xff]  ;;  %v8089_v18 = vld [vmem:[%s8017_s19 + $0xf8] sm:$0xff] }
  0x21   : > { %7388 = vmatmul.mubr.msk.f32.vlgmr.msra.gmra.mxu1 %vm328_vm1, %v8050_v10  ;;  %v8092_v19 = vld [vmem:[%s8017_s19 + $0x108] sm:$0xff]  ;;  %v8104_v21 = vld [vmem:[%s8017_s19 + $0x79] sm:$0xff]  ;;  %v8109_v22 = vld [vmem:[%s8017_s19 + $0x110] sm:$0xff]  ;;  %p7817_p13 = pneg %p7816_p12 }
  0x22   : > { %7317 = vmatmul.mubr.msk.f32.gmra.mxu0 %vm328_vm1, %v8035_v7  ;;  %7390 = vmatprep.mubr.msk.f32.mxu1 %vm328_vm1, %v8060_v12  ;;  %v8099_v20 = vld [vmem:[%s8017_s19 + $0x69] sm:$0xff]  ;;  %v8112_v23 = vld [vmem:[%s8017_s19 + $0x120] sm:$0xff]  ;;  %v8124_v25 = vld [vmem:[%s8017_s19 + $0x91] sm:$0xff] }
  0x23   : > { %7319 = vmatprep.mubr.msk.f32.mxu0 %vm328_vm1, %v8038_v8  ;;  %7462 = vmatpush3.msk.msra.mxu1 %vm425_vm0, %v6494_v2  ;;  %v8119_v24 = vld [vmem:[%s8017_s19 + $0x81] sm:$0xff]  ;;  %v8132_v27 = vld [vmem:[%s8017_s19 + $0x138] sm:$0xff]  ;;  %v8144_v29 = vld [vmem:[%s8017_s19 + $0xa9] sm:$0xff] }
  0x24   : > { %v8129_v26 = vld [vmem:[%s8017_s19 + $0x128] sm:$0xff]  ;;  %v8139_v28 = vld [vmem:[%s8017_s19 + $0x99] sm:$0xff]  ;;  %v8152_v31 = vld [vmem:[%s8017_s19 + $0x150] sm:$0xff]  ;;  %7561 = vmatprep.subr.msk.mxu1 %vm425_vm0, %v6626_v39 }
  0x25   : > { %7391 = vmatmul.mubr.msk.f32.gmra.mxu1 %vm328_vm1, %v8068_v14  ;;  %v8149_v30 = vld [vmem:[%s8017_s19 + $0x140] sm:$0xff]  ;;  %v8159_v32 = vld [vmem:[%s8017_s19 + $0xb1] sm:$0xff]  ;;  %v8172_v35 = vld [vmem:[%s8017_s19 + $0x168] sm:$0xff] }
  0x26   : > { %7320 = vmatmul.mubr.msk.f32.gmra.mxu0 %vm328_vm1, %v8055_v11  ;;  %7393 = vmatprep.mubr.msk.f32.mxu1 %vm328_vm1, %v8072_v15  ;;  %v8164_v33 = vld [vmem:[%s8017_s19 + $0xc1] sm:$0xff]  ;;  %v8169_v34 = vld [vmem:[%s8017_s19 + $0x158] sm:$0xff]  ;;  %11525 = vst [vmem:[#allocation11_spill] sm:$0xff] %v8172_v35  ;;  %v8179_v36 = vld [vmem:[%s8017_s19 + $0xc9] sm:$0xff] }
  0x27   : > { %7322 = vmatprep.mubr.msk.f32.mxu0 %vm328_vm1, %v8063_v13  ;;  %11524 = vst [vmem:[#allocation10_spill] sm:$0xff] %v8169_v34  ;;  %v8184_v37 = vld [vmem:[%s8017_s19 + $0xd9] sm:$0xff]  ;;  %v8189_v38 = vld [vmem:[%s8017_s19 + $0x170] sm:$0xff]  ;;  %v8200_v40 = vld [vmem:[%s8017_s19 + $0xe1] sm:$0xff] }
  0x28   : > { %11526 = vst [vmem:[#allocation12_spill] sm:$0xff] %v8189_v38  ;;  %v263_v41 = vld [vmem:[%s8017_s19 + $0x18] sm:$0xff]  ;;  %v264_v43 = vld [vmem:[%s8017_s19 + $0x20] sm:$0xff]  ;;  %v8218_v45 = vld [vmem:[%s8017_s19 + $0x30] sm:$0xff] }
  0x29   : > { %7394 = vmatmul.mubr.msk.f32.gmra.mxu1 %vm328_vm1, %v8089_v18  ;;  %v8206_v42 = vld [vmem:[%s8017_s19 + $0xf1] sm:$0xff]  ;;  %v8215_v44 = vld [vmem:[%s8017_s19 + $0xf9] sm:$0xff]  ;;  %v8222_v46 = vld [vmem:[%s8017_s19 + $0x109] sm:$0xff] }
  0x2a   : > { %7323 = vmatmul.mubr.msk.f32.gmra.mxu0 %vm328_vm1, %v8079_v16  ;;  %7396 = vmatprep.mubr.msk.f32.mxu1 %vm328_vm1, %v8092_v19  ;;  %v8230_v47 = vld [vmem:[%s8017_s19 + $0x38] sm:$0xff]  ;;  %v8238_v49 = vld [vmem:[%s8017_s19 + $0x48] sm:$0xff]  ;;  %v8250_v51 = vld [vmem:[%s8017_s19 + $0x50] sm:$0xff] }
  0x2b   : > { %7325 = vmatprep.mubr.msk.f32.mxu0 %vm328_vm1, %v8084_v17  ;;  %v8235_v48 = vld [vmem:[%s8017_s19 + $0x111] sm:$0xff]  ;;  %v8243_v50 = vld [vmem:[%s8017_s19 + $0x121] sm:$0xff]  ;;  %v8255_v52 = vld [vmem:[%s8017_s19 + $0x129] sm:$0xff] }
  0x2c   : > { %v8258_v53 = vld [vmem:[%s8017_s19 + $0x60] sm:$0xff]  ;;  %v8270_v55 = vld [vmem:[%s8017_s19 + $0x68] sm:$0xff]  ;;  %v8278_v57 = vld [vmem:[%s8017_s19 + $0x78] sm:$0xff] }
  0x2d   : > { %7397 = vmatmul.mubr.msk.f32.gmra.mxu1 %vm328_vm1, %v8109_v22  ;;  %v8263_v54 = vld [vmem:[%s8017_s19 + $0x139] sm:$0xff]  ;;  %v8275_v56 = vld [vmem:[%s8017_s19 + $0x141] sm:$0xff]  ;;  %v8283_v58 = vld [vmem:[%s8017_s19 + $0x151] sm:$0xff] }
  0x2e   : > { %7326 = vmatmul.mubr.msk.f32.gmra.mxu0 %vm328_vm1, %v8099_v20  ;;  %7399 = vmatprep.mubr.msk.f32.mxu1 %vm328_vm1, %v8112_v23  ;;  %v8290_v59 = vld [vmem:[%s8017_s19 + $0x80] sm:$0xff]  ;;  %v8298_v61 = vld [vmem:[%s8017_s19 + $0x90] sm:$0xff]  ;;  %v8310_v63 = vld [vmem:[%s8017_s19 + $0x98] sm:$0xff] }
  0x2f   : > { %7328 = vmatprep.mubr.msk.f32.mxu0 %vm328_vm1, %v8104_v21  ;;  %v8295_v60 = vld [vmem:[%s8017_s19 + $0x159] sm:$0xff]  ;;  %v8303_v62 = vld [vmem:[%s8017_s19 + $0x169] sm:$0xff]  ;;  %v8315_v0 = vld [vmem:[%s8017_s19 + $0x171] sm:$0xff] }
  0x30   : > { %v8318_v1 = vld [vmem:[%s8017_s19 + $0xa8] sm:$0xff]  ;;  %v261_v2 = vld [vmem:[%s8017_s19] sm:$0xff]  ;;  %v8328_v3 = vld [vmem:[%s8017_s19 + $0xb0] sm:$0xff] }
  0x31   : > { %7400 = vmatmul.mubr.msk.f32.gmra.mxu1 %vm328_vm1, %v8129_v26  ;;  %v262_v4 = vld [vmem:[%s8017_s19 + $0x8] sm:$0xff] }
  0x32   : > { %7329 = vmatmul.mubr.msk.f32.gmra.mxu0 %vm328_vm1, %v8119_v24  ;;  %7402 = vmatprep.mubr.msk.f32.mxu1 %vm328_vm1, %v8132_v27 }
  0x33   : > { %7331 = vmatprep.mubr.msk.f32.mxu0 %vm328_vm1, %v8124_v25 }
  0x35   : > { %7403 = vmatmul.mubr.msk.f32.gmra.mxu1 %vm328_vm1, %v8149_v30 }
  0x36   : > { %7332 = vmatmul.mubr.msk.f32.gmra.mxu0 %vm328_vm1, %v8139_v28  ;;  %7405 = vmatprep.mubr.msk.f32.mxu1 %vm328_vm1, %v8152_v31 }
  0x37   : > { %7334 = vmatprep.mubr.msk.f32.mxu0 %vm328_vm1, %v8144_v29 }
  0x39   : > { %7406 = vmatmul.mubr.msk.f32.gmra.mxu1 %vm328_vm1, %v8169_v34 }
  0x3a   : > { %7335 = vmatmul.mubr.msk.f32.gmra.mxu0 %vm328_vm1, %v8159_v32  ;;  %7408 = vmatprep.mubr.msk.f32.mxu1 %vm328_vm1, %v8172_v35 }
  0x3b   : > { %7337 = vmatprep.mubr.msk.f32.mxu0 %vm328_vm1, %v8164_v33 }
  0x3d   : > { %7409 = vmatmul.mubr.msk.f32.gmra.mxu1 %vm328_vm1, %v8189_v38 }
  0x3e   : > { %7338 = vmatmul.mubr.msk.f32.gmra.mxu0 %vm328_vm1, %v8179_v36  ;;  %7463 = vmatprep.mubr.msk.f32.mxu1 %vm328_vm1, %v263_v41 }
  0x3f   : > { %7340 = vmatprep.mubr.msk.f32.mxu0 %vm328_vm1, %v8184_v37 }
  0x41   : > { %7464 = vmatmul.mubr.msk.f32.vlgmr.msra.gmra.mxu1 %vm328_vm1, %v264_v43 }
  0x42   : > { %7341 = vmatmul.mubr.msk.f32.gmra.mxu0 %vm328_vm1, %v8200_v40  ;;  %7466 = vmatprep.mubr.msk.f32.mxu1 %vm328_vm1, %v8218_v45 }
  0x43   : > { %7343 = vmatprep.mubr.msk.f32.mxu0 %vm328_vm1, %v8206_v42  ;;  %7562 = vmatpush3.msk.msra.mxu1 %vm425_vm0, %v6626_v39  ;;  %v6560_v39 = vld [vmem:[%s11482_s1 + $0x10] sm:$0x7] }
  0x45   : > { %7467 = vmatmul.mubr.msk.f32.gmra.mxu1 %vm328_vm1, %v8230_v47 }
  0x46   : > { %7344 = vmatmul.mubr.msk.f32.gmra.mxu0 %vm328_vm1, %v8215_v44  ;;  %7469 = vmatprep.mubr.msk.f32.mxu1 %vm328_vm1, %v8238_v49 }
  0x47   : > { %7346 = vmatprep.mubr.msk.f32.mxu0 %vm328_vm1, %v8222_v46 }
  0x49   : > { %7470 = vmatmul.mubr.msk.f32.gmra.mxu1 %vm328_vm1, %v8250_v51 }
  0x4a   : > { %7347 = vmatmul.mubr.msk.f32.gmra.mxu0 %vm328_vm1, %v8235_v48  ;;  %7472 = vmatprep.mubr.msk.f32.mxu1 %vm328_vm1, %v8258_v53 }
  0x4b   : > { %7349 = vmatprep.mubr.msk.f32.mxu0 %vm328_vm1, %v8243_v50 }
  0x4d   : > { %7473 = vmatmul.mubr.msk.f32.gmra.mxu1 %vm328_vm1, %v8270_v55 }
  0x4e   : > { %7350 = vmatmul.mubr.msk.f32.gmra.mxu0 %vm328_vm1, %v8255_v52  ;;  %7475 = vmatprep.mubr.msk.f32.mxu1 %vm328_vm1, %v8278_v57 }
  0x4f   : > { %7352 = vmatprep.mubr.msk.f32.mxu0 %vm328_vm1, %v8263_v54 }
  0x51   : > { %7476 = vmatmul.mubr.msk.f32.gmra.mxu1 %vm328_vm1, %v8290_v59 }
  0x52   : > { %7353 = vmatmul.mubr.msk.f32.gmra.mxu0 %vm328_vm1, %v8275_v56  ;;  %7478 = vmatprep.mubr.msk.f32.mxu1 %vm328_vm1, %v8298_v61 }
  0x53   : > { %7355 = vmatprep.mubr.msk.f32.mxu0 %vm328_vm1, %v8283_v58 }
  0x55   : > { %7479 = vmatmul.mubr.msk.f32.gmra.mxu1 %vm328_vm1, %v8310_v63 }
  0x56   : > { %7356 = vmatmul.mubr.msk.f32.gmra.mxu0 %vm328_vm1, %v8295_v60  ;;  %7481 = vmatprep.mubr.msk.f32.mxu1 %vm328_vm1, %v8318_v1 }
  0x57   : > { %7358 = vmatprep.mubr.msk.f32.mxu0 %vm328_vm1, %v8303_v62 }
  0x59   : > { %7482 = vmatmul.mubr.msk.f32.gmra.mxu1 %vm328_vm1, %v8328_v3 }
  0x5a   : > { %7359 = vmatmul.mubr.msk.f32.gmra.mxu0 %vm328_vm1, %v8315_v0  ;;  %7484 = vmatprep.mubr.msk.f32.mxu1 %vm328_vm1, %v8043_v9 }
  0x5b   : > { %7363 = vmatprep.mubr.msk.f32.mxu0 %vm328_vm1, %v261_v2  ;;  %v979_v2 = vld [vmem:[%s8017_s19 + $0xa] sm:$0xff] }
  0x5d   : > { %7485 = vmatmul.mubr.msk.f32.gmra.mxu1 %vm328_vm1, %v8050_v10 }
  0x5e   : > { %7364 = vmatmul.mubr.msk.f32.vlgmr.msra.gmra.mxu0 %vm328_vm1, %v262_v4  ;;  %7487 = vmatprep.mubr.msk.f32.mxu1 %vm328_vm1, %v8060_v12  ;;  %v980_v4 = vld [vmem:[%s8017_s19 + $0x1a] sm:$0xff] }
  0x5f   : > { %7412 = vmatpush3.msk.msra.mxu0 %vm425_vm0, %v8028_v6  ;;  %7366 = vmatprep.mubr.msk.f32.mxu0 %vm328_vm1, %v263_v41  ;;  %v978_v6 = vld [vmem:[%s8017_s19 + $0x2] sm:$0xff] }
  0x60   : > { %7511 = vmatprep.subr.msk.mxu0 %vm425_vm0, %v6560_v39  ;;  %v8399_v41 = vld [vmem:[%s8017_s19 + $0x180] sm:$0xff] }
  0x61   : > { %7488 = vmatmul.mubr.msk.f32.gmra.mxu1 %vm328_vm1, %v8068_v14 }
  0x62   : > { %7367 = vmatmul.mubr.msk.f32.gmra.mxu0 %vm328_vm1, %v264_v43  ;;  %7490 = vmatprep.mubr.msk.f32.mxu1 %vm328_vm1, %v8072_v15  ;;  %v6758_v43 = vld [vmem:[%s11482_s1 + $0x1c] sm:$0x7] }
  0x63   : > { %7369 = vmatprep.mubr.msk.f32.mxu0 %vm328_vm1, %v8218_v45  ;;  %7661 = vmatprep.subr.msk.mxu1 %vm425_vm0, %v6758_v43 }
  0x65   : > { %7491 = vmatmul.mubr.msk.f32.gmra.mxu1 %vm328_vm1, %v8089_v18 }
  0x66   : > { %7370 = vmatmul.mubr.msk.f32.gmra.mxu0 %vm328_vm1, %v8230_v47  ;;  %7493 = vmatprep.mubr.msk.f32.mxu1 %vm328_vm1, %v8092_v19 }
  0x67   : > { %7372 = vmatprep.mubr.msk.f32.mxu0 %vm328_vm1, %v8238_v49 }
  0x69   : > { %7494 = vmatmul.mubr.msk.f32.gmra.mxu1 %vm328_vm1, %v8109_v22 }
  0x6a   : > { %7373 = vmatmul.mubr.msk.f32.gmra.mxu0 %vm328_vm1, %v8250_v51  ;;  %7496 = vmatprep.mubr.msk.f32.mxu1 %vm328_vm1, %v8112_v23 }
  0x6b   : > { %7375 = vmatprep.mubr.msk.f32.mxu0 %vm328_vm1, %v8258_v53 }
  0x6d   : > { %7497 = vmatmul.mubr.msk.f32.gmra.mxu1 %vm328_vm1, %v8129_v26 }
  0x6e   : > { %7376 = vmatmul.mubr.msk.f32.gmra.mxu0 %vm328_vm1, %v8270_v55  ;;  %7499 = vmatprep.mubr.msk.f32.mxu1 %vm328_vm1, %v8132_v27 }
  0x6f   : > { %7378 = vmatprep.mubr.msk.f32.mxu0 %vm328_vm1, %v8278_v57 }
  0x71   : > { %7500 = vmatmul.mubr.msk.f32.gmra.mxu1 %vm328_vm1, %v8149_v30 }
  0x72   : > { %7379 = vmatmul.mubr.msk.f32.gmra.mxu0 %vm328_vm1, %v8290_v59  ;;  %7502 = vmatprep.mubr.msk.f32.mxu1 %vm328_vm1, %v8152_v31 }
  0x73   : > { %7381 = vmatprep.mubr.msk.f32.mxu0 %vm328_vm1, %v8298_v61 }
  0x75   : > { %7503 = vmatmul.mubr.msk.f32.gmra.mxu1 %vm328_vm1, %v8169_v34  ;;  %v8418_v34 = vld [vmem:[%s11482_s1 + $0x18] sm:$0x7] }
  0x76   : > { %7382 = vmatmul.mubr.msk.f32.gmra.mxu0 %vm328_vm1, %v8310_v63  ;;  %7505 = vmatprep.mubr.msk.f32.mxu1 %vm328_vm1, %v8172_v35  ;;  %v8413_v35 = vld [vmem:[%s8017_s19 + $0x188] sm:$0xff] }
  0x77   : > { %7384 = vmatprep.mubr.msk.f32.mxu0 %vm328_vm1, %v8318_v1  ;;  %11527 = vst [vmem:[#allocation13_spill] sm:$0xff] %v8413_v35 }
  0x79   : > { %7506 = vmatmul.mubr.msk.f32.gmra.mxu1 %vm328_vm1, %v8189_v38  ;;  %v8425_v38 = vld [vmem:[%s8017_s19 + $0x32] sm:$0xff] }
  0x7a   : > { %7385 = vmatmul.mubr.msk.f32.gmra.mxu0 %vm328_vm1, %v8328_v3  ;;  %7508 = vmatprep.mubr.msk.f32.mxu1 %vm328_vm1, %v8399_v41  ;;  %11528 = vst [vmem:[#allocation14_spill] sm:$0xff] %v8425_v38 }
  0x7b   : > { %7413 = vmatprep.mubr.msk.f32.mxu0 %vm328_vm1, %v978_v6  ;;  %v981_v6 = vld [vmem:[%s8017_s19 + $0x22] sm:$0xff] }
  0x7d   : > { %7509 = vmatmul.mubr.msk.f32.gmra.mxu1 %vm328_vm1, %v8413_v35  ;;  %v8453_v35 = vld [vmem:[%s8017_s19 + $0x62] sm:$0xff] }
  0x7e   : > { %7414 = vmatmul.mubr.msk.f32.vlgmr.msra.gmra.mxu0 %vm328_vm1, %v979_v2  ;;  %7563 = vmatprep.mubr.msk.f32.mxu1 %vm328_vm1, %v980_v4  ;;  %v8439_v2 = vld [vmem:[%s8017_s19 + $0x4a] sm:$0xff]  ;;  %11532 = vst [vmem:[#allocation18_spill] sm:$0xff] %v8453_v35 }
  0x7f   : > { %7512 = vmatpush3.msk.msra.mxu0 %vm425_vm0, %v6560_v39  ;;  %7416 = vmatprep.mubr.msk.f32.mxu0 %vm328_vm1, %v980_v4  ;;  %v8436_v39 = vld [vmem:[%s8017_s19 + $0x3a] sm:$0xff]  ;;  %11530 = vst [vmem:[#allocation16_spill] sm:$0xff] %v8439_v2  ;;  %v8450_v4 = vld [vmem:[%s8017_s19 + $0x52] sm:$0xff] }
  0x80   : > { %7611 = vmatprep.subr.msk.mxu0 %vm425_vm0, %v8418_v34  ;;  %11529 = vst [vmem:[#allocation15_spill] sm:$0xff] %v8436_v39  ;;  %11531 = vst [vmem:[#allocation17_spill] sm:$0xff] %v8450_v4 }
  0x81   : > { %7564 = vmatmul.mubr.msk.f32.vlgmr.msra.gmra.mxu1 %vm328_vm1, %v981_v6 }
  0x82   : > { %7417 = vmatmul.mubr.msk.f32.gmra.mxu0 %vm328_vm1, %v981_v6  ;;  %7566 = vmatprep.mubr.msk.f32.mxu1 %vm328_vm1, %v8425_v38  ;;  %v8467_v6 = vld [vmem:[%s8017_s19 + $0x7a] sm:$0xff] }
  0x83   : > { %7419 = vmatprep.mubr.msk.f32.mxu0 %vm328_vm1, %v8425_v38  ;;  %7662 = vmatpush3.msk.msra.mxu1 %vm425_vm0, %v6758_v43  ;;  %v8464_v43 = vld [vmem:[%s8017_s19 + $0x6a] sm:$0xff]  ;;  %11534 = vst [vmem:[#allocation20_spill] sm:$0xff] %v8467_v6  ;;  %v1006_v38 = vld [vmem:[%s8017_s19 + $0x152] sm:$0xff] }
  0x84   : > { %11533 = vst [vmem:[#allocation19_spill] sm:$0xff] %v8464_v43 }
  0x85   : > { %7567 = vmatmul.mubr.msk.f32.gmra.mxu1 %vm328_vm1, %v8436_v39 }
  0x86   : > { %7420 = vmatmul.mubr.msk.f32.gmra.mxu0 %vm328_vm1, %v8436_v39  ;;  %7569 = vmatprep.mubr.msk.f32.mxu1 %vm328_vm1, %v8439_v2  ;;  %v8481_v39 = vld [vmem:[%s8017_s19 + $0x92] sm:$0xff] }
  0x87   : > { %7422 = vmatprep.mubr.msk.f32.mxu0 %vm328_vm1, %v8439_v2  ;;  %v8478_v2 = vld [vmem:[%s8017_s19 + $0x82] sm:$0xff]  ;;  %11536 = vst [vmem:[#allocation22_spill] sm:$0xff] %v8481_v39 }
  0x88   : > { %11535 = vst [vmem:[#allocation21_spill] sm:$0xff] %v8478_v2 }
  0x89   : > { %7570 = vmatmul.mubr.msk.f32.gmra.mxu1 %vm328_vm1, %v8450_v4 }
  0x8a   : > { %7423 = vmatmul.mubr.msk.f32.gmra.mxu0 %vm328_vm1, %v8450_v4  ;;  %7572 = vmatprep.mubr.msk.f32.mxu1 %vm328_vm1, %v8453_v35  ;;  %v8495_v4 = vld [vmem:[%s8017_s19 + $0xaa] sm:$0xff] }
  0x8b   : > { %7425 = vmatprep.mubr.msk.f32.mxu0 %vm328_vm1, %v8453_v35  ;;  %v8492_v35 = vld [vmem:[%s8017_s19 + $0x9a] sm:$0xff]  ;;  %11538 = vst [vmem:[#allocation24_spill] sm:$0xff] %v8495_v4 }
  0x8c   : > { %11537 = vst [vmem:[#allocation23_spill] sm:$0xff] %v8492_v35 }
  0x8d   : > { %7573 = vmatmul.mubr.msk.f32.gmra.mxu1 %vm328_vm1, %v8464_v43 }
  0x8e   : > { %7426 = vmatmul.mubr.msk.f32.gmra.mxu0 %vm328_vm1, %v8464_v43  ;;  %7575 = vmatprep.mubr.msk.f32.mxu1 %vm328_vm1, %v8467_v6  ;;  %v8509_v43 = vld [vmem:[%s8017_s19 + $0xc2] sm:$0xff] }
  0x8f   : > { %7428 = vmatprep.mubr.msk.f32.mxu0 %vm328_vm1, %v8467_v6  ;;  %v8506_v6 = vld [vmem:[%s8017_s19 + $0xb2] sm:$0xff]  ;;  %11540 = vst [vmem:[#allocation26_spill] sm:$0xff] %v8509_v43 }
  0x90   : > { %11539 = vst [vmem:[#allocation25_spill] sm:$0xff] %v8506_v6 }
  0x91   : > { %7576 = vmatmul.mubr.msk.f32.gmra.mxu1 %vm328_vm1, %v8478_v2 }
  0x92   : > { %7429 = vmatmul.mubr.msk.f32.gmra.mxu0 %vm328_vm1, %v8478_v2  ;;  %7578 = vmatprep.mubr.msk.f32.mxu1 %vm328_vm1, %v8481_v39  ;;  %v8523_v2 = vld [vmem:[%s8017_s19 + $0xda] sm:$0xff] }
  0x93   : > { %7431 = vmatprep.mubr.msk.f32.mxu0 %vm328_vm1, %v8481_v39  ;;  %v8520_v39 = vld [vmem:[%s8017_s19 + $0xca] sm:$0xff]  ;;  %11542 = vst [vmem:[#allocation28_spill] sm:$0xff] %v8523_v2 }
  0x94   : > { %11541 = vst [vmem:[#allocation27_spill] sm:$0xff] %v8520_v39 }
  0x95   : > { %7579 = vmatmul.mubr.msk.f32.gmra.mxu1 %vm328_vm1, %v8492_v35 }
  0x96   : > { %7432 = vmatmul.mubr.msk.f32.gmra.mxu0 %vm328_vm1, %v8492_v35  ;;  %7581 = vmatprep.mubr.msk.f32.mxu1 %vm328_vm1, %v8495_v4  ;;  %v8537_v35 = vld [vmem:[%s8017_s19 + $0xf2] sm:$0xff] }
  0x97   : > { %7434 = vmatprep.mubr.msk.f32.mxu0 %vm328_vm1, %v8495_v4  ;;  %v8534_v4 = vld [vmem:[%s8017_s19 + $0xe2] sm:$0xff]  ;;  %11544 = vst [vmem:[#allocation30_spill] sm:$0xff] %v8537_v35 }
  0x98   : > { %11543 = vst [vmem:[#allocation29_spill] sm:$0xff] %v8534_v4 }
  0x99   : > { %7582 = vmatmul.mubr.msk.f32.gmra.mxu1 %vm328_vm1, %v8506_v6 }
  0x9a   : > { %7435 = vmatmul.mubr.msk.f32.gmra.mxu0 %vm328_vm1, %v8506_v6  ;;  %7584 = vmatprep.mubr.msk.f32.mxu1 %vm328_vm1, %v8509_v43  ;;  %v8551_v6 = vld [vmem:[%s8017_s19 + $0x10a] sm:$0xff] }
  0x9b   : > { %7437 = vmatprep.mubr.msk.f32.mxu0 %vm328_vm1, %v8509_v43  ;;  %v8548_v43 = vld [vmem:[%s8017_s19 + $0xfa] sm:$0xff]  ;;  %11546 = vst [vmem:[#allocation32_spill] sm:$0xff] %v8551_v6 }
  0x9c   : > { %11545 = vst [vmem:[#allocation31_spill] sm:$0xff] %v8548_v43 }
  0x9d   : > { %7585 = vmatmul.mubr.msk.f32.gmra.mxu1 %vm328_vm1, %v8520_v39 }
  0x9e   : > { %7438 = vmatmul.mubr.msk.f32.gmra.mxu0 %vm328_vm1, %v8520_v39  ;;  %7587 = vmatprep.mubr.msk.f32.mxu1 %vm328_vm1, %v8523_v2  ;;  %v1002_v39 = vld [vmem:[%s8017_s19 + $0x122] sm:$0xff] }
  0x9f   : > { %7440 = vmatprep.mubr.msk.f32.mxu0 %vm328_vm1, %v8523_v2  ;;  %v1001_v2 = vld [vmem:[%s8017_s19 + $0x112] sm:$0xff] }
  0xa1   : > { %7588 = vmatmul.mubr.msk.f32.gmra.mxu1 %vm328_vm1, %v8534_v4 }
  0xa2   : > { %7441 = vmatmul.mubr.msk.f32.gmra.mxu0 %vm328_vm1, %v8534_v4  ;;  %7590 = vmatprep.mubr.msk.f32.mxu1 %vm328_vm1, %v8537_v35  ;;  %v1004_v4 = vld [vmem:[%s8017_s19 + $0x13a] sm:$0xff] }
  0xa3   : > { %7443 = vmatprep.mubr.msk.f32.mxu0 %vm328_vm1, %v8537_v35  ;;  %v1003_v35 = vld [vmem:[%s8017_s19 + $0x12a] sm:$0xff] }
  0xa5   : > { %7591 = vmatmul.mubr.msk.f32.gmra.mxu1 %vm328_vm1, %v8548_v43 }
  0xa6   : > { %7444 = vmatmul.mubr.msk.f32.gmra.mxu0 %vm328_vm1, %v8548_v43  ;;  %7593 = vmatprep.mubr.msk.f32.mxu1 %vm328_vm1, %v8551_v6  ;;  %v1005_v43 = vld [vmem:[%s8017_s19 + $0x142] sm:$0xff] }
  0xa7   : > { %7446 = vmatprep.mubr.msk.f32.mxu0 %vm328_vm1, %v8551_v6  ;;  %v1008_v6 = vld [vmem:[%s8017_s19 + $0x16a] sm:$0xff] }
  0xa9   : > { %7594 = vmatmul.mubr.msk.f32.gmra.mxu1 %vm328_vm1, %v1001_v2 }
  0xaa   : > { %7447 = vmatmul.mubr.msk.f32.gmra.mxu0 %vm328_vm1, %v1001_v2  ;;  %7596 = vmatprep.mubr.msk.f32.mxu1 %vm328_vm1, %v1002_v39  ;;  %v1007_v2 = vld [vmem:[%s8017_s19 + $0x15a] sm:$0xff] }
  0xab   : > { %7449 = vmatprep.mubr.msk.f32.mxu0 %vm328_vm1, %v1002_v39  ;;  %v1009_v39 = vld [vmem:[%s8017_s19 + $0x172] sm:$0xff] }
  0xad   : > { %7597 = vmatmul.mubr.msk.f32.gmra.mxu1 %vm328_vm1, %v1003_v35 }
  0xae   : > { %7450 = vmatmul.mubr.msk.f32.gmra.mxu0 %vm328_vm1, %v1003_v35  ;;  %7599 = vmatprep.mubr.msk.f32.mxu1 %vm328_vm1, %v1004_v4  ;;  %v8592_v35 = vld [vmem:[%s8017_s19 + $0x182] sm:$0xff] }
  0xaf   : > { %7452 = vmatprep.mubr.msk.f32.mxu0 %vm328_vm1, %v1004_v4  ;;  %v8605_v4 = vld [vmem:[%s11482_s1 + $0x20] sm:$0x7] }
  0xb1   : > { %7600 = vmatmul.mubr.msk.f32.gmra.mxu1 %vm328_vm1, %v1005_v43 }
  0xb2   : > { %7453 = vmatmul.mubr.msk.f32.gmra.mxu0 %vm328_vm1, %v1005_v43  ;;  %7602 = vmatprep.mubr.msk.f32.mxu1 %vm328_vm1, %v1006_v38 }
  0xb3   : > { %7455 = vmatprep.mubr.msk.f32.mxu0 %vm328_vm1, %v1006_v38  ;;  %v8600_v38 = vld [vmem:[%s8017_s19 + $0x18a] sm:$0xff] }
  0xb5   : > { %7603 = vmatmul.mubr.msk.f32.gmra.mxu1 %vm328_vm1, %v1007_v2 }
  0xb6   : > { %7456 = vmatmul.mubr.msk.f32.gmra.mxu0 %vm328_vm1, %v1007_v2  ;;  %7605 = vmatprep.mubr.msk.f32.mxu1 %vm328_vm1, %v1008_v6 }
  0xb7   : > { %7458 = vmatprep.mubr.msk.f32.mxu0 %vm328_vm1, %v1008_v6 }
  0xb9   : > { %7606 = vmatmul.mubr.msk.f32.gmra.mxu1 %vm328_vm1, %v1009_v39 }
  0xba   : > { %7459 = vmatmul.mubr.msk.f32.gmra.mxu0 %vm328_vm1, %v1009_v39  ;;  %7608 = vmatprep.mubr.msk.f32.mxu1 %vm328_vm1, %v8592_v35 }
  0xbb   : > { %7513 = vmatprep.mubr.msk.f32.mxu0 %vm328_vm1, %v8022_v5 }
  0xbd   : > { %7609 = vmatmul.mubr.msk.f32.gmra.mxu1 %vm328_vm1, %v8600_v38 }
  0xbe   : > { %7514 = vmatmul.mubr.msk.f32.vlgmr.msra.gmra.mxu0 %vm328_vm1, %v8035_v7  ;;  %7663 = vmatprep.mubr.msk.f32.mxu1 %vm328_vm1, %v8038_v8 }
  0xbf   : > { %7612 = vmatpush3.msk.msra.mxu0 %vm425_vm0, %v8418_v34  ;;  %7516 = vmatprep.mubr.msk.f32.mxu0 %vm328_vm1, %v8038_v8 }
  0xc0   : > { %7711 = vmatprep.subr.msk.mxu0 %vm425_vm0, %v8605_v4 }
  0xc1   : > { %7664 = vmatmul.mubr.msk.f32.vlgmr.msra.gmra.mxu1 %vm328_vm1, %v8055_v11 }
  0xc2   : > { %7517 = vmatmul.mubr.msk.f32.gmra.mxu0 %vm328_vm1, %v8055_v11  ;;  %7666 = vmatprep.mubr.msk.f32.mxu1 %vm328_vm1, %v8063_v13 }
  0xc3   : > { %7519 = vmatprep.mubr.msk.f32.mxu0 %vm328_vm1, %v8063_v13 }
  0xc5   : > { %7667 = vmatmul.mubr.msk.f32.gmra.mxu1 %vm328_vm1, %v8079_v16 }
  0xc6   : > { %7520 = vmatmul.mubr.msk.f32.gmra.mxu0 %vm328_vm1, %v8079_v16  ;;  %7669 = vmatprep.mubr.msk.f32.mxu1 %vm328_vm1, %v8084_v17 }
  0xc7   : > { %7522 = vmatprep.mubr.msk.f32.mxu0 %vm328_vm1, %v8084_v17 }
  0xc9   : > { %7670 = vmatmul.mubr.msk.f32.gmra.mxu1 %vm328_vm1, %v8099_v20 }
  0xca   : > { %7523 = vmatmul.mubr.msk.f32.gmra.mxu0 %vm328_vm1, %v8099_v20  ;;  %7672 = vmatprep.mubr.msk.f32.mxu1 %vm328_vm1, %v8104_v21 }
  0xcb   : > { %7525 = vmatprep.mubr.msk.f32.mxu0 %vm328_vm1, %v8104_v21 }
  0xcd   : > { %7673 = vmatmul.mubr.msk.f32.gmra.mxu1 %vm328_vm1, %v8119_v24 }
  0xce   : > { %7526 = vmatmul.mubr.msk.f32.gmra.mxu0 %vm328_vm1, %v8119_v24  ;;  %7675 = vmatprep.mubr.msk.f32.mxu1 %vm328_vm1, %v8124_v25 }
  0xcf   : > { %7528 = vmatprep.mubr.msk.f32.mxu0 %vm328_vm1, %v8124_v25 }
  0xd1   : > { %7676 = vmatmul.mubr.msk.f32.gmra.mxu1 %vm328_vm1, %v8139_v28 }
  0xd2   : > { %7529 = vmatmul.mubr.msk.f32.gmra.mxu0 %vm328_vm1, %v8139_v28  ;;  %7678 = vmatprep.mubr.msk.f32.mxu1 %vm328_vm1, %v8144_v29 }
  0xd3   : > { %7531 = vmatprep.mubr.msk.f32.mxu0 %vm328_vm1, %v8144_v29 }
  0xd5   : > { %7679 = vmatmul.mubr.msk.f32.gmra.mxu1 %vm328_vm1, %v8159_v32 }
  0xd6   : > { %7532 = vmatmul.mubr.msk.f32.gmra.mxu0 %vm328_vm1, %v8159_v32  ;;  %7681 = vmatprep.mubr.msk.f32.mxu1 %vm328_vm1, %v8164_v33 }
  0xd7   : > { %7534 = vmatprep.mubr.msk.f32.mxu0 %vm328_vm1, %v8164_v33 }
  0xd9   : > { %7682 = vmatmul.mubr.msk.f32.gmra.mxu1 %vm328_vm1, %v8179_v36 }
  0xda   : > { %7535 = vmatmul.mubr.msk.f32.gmra.mxu0 %vm328_vm1, %v8179_v36  ;;  %7684 = vmatprep.mubr.msk.f32.mxu1 %vm328_vm1, %v8184_v37 }
  0xdb   : > { %7537 = vmatprep.mubr.msk.f32.mxu0 %vm328_vm1, %v8184_v37 }
  0xdd   : > { %7685 = vmatmul.mubr.msk.f32.gmra.mxu1 %vm328_vm1, %v8200_v40 }
  0xde   : > { %v8675_v5 = vpop.f32.mrf.mxu0  ;;  %7538 = vmatmul.mubr.msk.f32.gmra.mxu0 %vm328_vm1, %v8200_v40  ;;  %7687 = vmatprep.mubr.msk.f32.mxu1 %vm328_vm1, %v8206_v42 }
  0xdf   : > { %7540 = vmatprep.mubr.msk.f32.mxu0 %vm328_vm1, %v8206_v42 }
  0xe0   : > { %v8681_v7 = vpop.f32.mrf.mxu0 }
  0xe1   : > { %v7389_v11 = vpop.f32.mrf.mxu1  ;;  %7688 = vmatmul.mubr.msk.f32.gmra.mxu1 %vm328_vm1, %v8215_v44 }
  0xe2   : > { %v8687_v8 = vpop.f32.mrf.mxu0  ;;  %7541 = vmatmul.mubr.msk.f32.gmra.mxu0 %vm328_vm1, %v8215_v44  ;;  %7690 = vmatprep.mubr.msk.f32.mxu1 %vm328_vm1, %v8222_v46 }
  0xe3   : > { %7543 = vmatprep.mubr.msk.f32.mxu0 %vm328_vm1, %v8222_v46  ;;  %v8697_v16 = vpop.f32.mrf.mxu1  ;;  %v6558_v46 = vld [vmem:[%s8017_s19 + $0x181] sm:$0xff] }
  0xe4   : > { %v8693_v13 = vpop.f32.mrf.mxu0 }
  0xe5   : > { %v7392_v20 = vpop.f32.mrf.mxu1  ;;  %7691 = vmatmul.mubr.msk.f32.gmra.mxu1 %vm328_vm1, %v8235_v48 }
  0xe6   : > { %v8701_v17 = vpop.f32.mrf.mxu0  ;;  %7544 = vmatmul.mubr.msk.f32.gmra.mxu0 %vm328_vm1, %v8235_v48  ;;  %7693 = vmatprep.mubr.msk.f32.mxu1 %vm328_vm1, %v8243_v50 }
  0xe7   : > { %7546 = vmatprep.mubr.msk.f32.mxu0 %vm328_vm1, %v8243_v50  ;;  %v8711_v24 = vpop.f32.mrf.mxu1 }
  0xe8   : > { %v8707_v21 = vpop.f32.mrf.mxu0 }
  0xe9   : > { %v7395_v28 = vpop.f32.mrf.mxu1  ;;  %7694 = vmatmul.mubr.msk.f32.gmra.mxu1 %vm328_vm1, %v8255_v52 }
  0xea   : > { %v8715_v25 = vpop.f32.mrf.mxu0  ;;  %7547 = vmatmul.mubr.msk.f32.gmra.mxu0 %vm328_vm1, %v8255_v52  ;;  %7696 = vmatprep.mubr.msk.f32.mxu1 %vm328_vm1, %v8263_v54  ;;  %v6559_v52 = vld [vmem:[%s8017_s19 + $0x189] sm:$0xff] }
  0xeb   : > { %7549 = vmatprep.mubr.msk.f32.mxu0 %vm328_vm1, %v8263_v54  ;;  %v8725_v32 = vpop.f32.mrf.mxu1 }
  0xec   : > { %v8721_v29 = vpop.f32.mrf.mxu0  ;;  %11547 = vst [vmem:[#allocation33_spill] sm:$0xff] %v8725_v32  ;;  %v11583_v32 = vld [vmem:[#allocation24_spill] sm:$0xff] }
  0xed   : > { %v7398_v34 = vpop.f32.mrf.mxu1  ;;  %7697 = vmatmul.mubr.msk.f32.gmra.mxu1 %vm328_vm1, %v8275_v56 }
  0xee   : > { %v8729_v33 = vpop.f32.mrf.mxu0  ;;  %7550 = vmatmul.mubr.msk.f32.gmra.mxu0 %vm328_vm1, %v8275_v56  ;;  %7699 = vmatprep.mubr.msk.f32.mxu1 %vm328_vm1, %v8283_v58 }
  0xef   : > { %7552 = vmatprep.mubr.msk.f32.mxu0 %vm328_vm1, %v8283_v58  ;;  %v8739_v37 = vpop.f32.mrf.mxu1 }
  0xf0   : > { %v8735_v36 = vpop.f32.mrf.mxu0  ;;  %11548 = vst [vmem:[#allocation34_spill] sm:$0xff] %v8739_v37 }
  0xf1   : > { %v7401_v42 = vpop.f32.mrf.mxu1  ;;  %7700 = vmatmul.mubr.msk.f32.gmra.mxu1 %vm328_vm1, %v8295_v60 }
  0xf2   : > { %v8743_v40 = vpop.f32.mrf.mxu0  ;;  %7553 = vmatmul.mubr.msk.f32.gmra.mxu0 %vm328_vm1, %v8295_v60  ;;  %7702 = vmatprep.mubr.msk.f32.mxu1 %vm328_vm1, %v8303_v62 }
  0xf3   : > { %7555 = vmatprep.mubr.msk.f32.mxu0 %vm328_vm1, %v8303_v62  ;;  %v8754_v48 = vpop.f32.mrf.mxu1  ;;  %v6756_v62 = vld [vmem:[%s8017_s19 + $0x199] sm:$0xff] }
  0xf4   : > { %v8749_v44 = vpop.f32.mrf.mxu0  ;;  %11549 = vst [vmem:[#allocation35_spill] sm:$0xff] %v8754_v48 }
  0xf5   : > { %v7404_v54 = vpop.f32.mrf.mxu1  ;;  %7703 = vmatmul.mubr.msk.f32.gmra.mxu1 %vm328_vm1, %v8315_v0 }
  0xf6   : > { %v8758_v50 = vpop.f32.mrf.mxu0  ;;  %7556 = vmatmul.mubr.msk.f32.gmra.mxu0 %vm328_vm1, %v8315_v0  ;;  %7705 = vmatprep.mubr.msk.f32.mxu1 %vm328_vm1, %v6558_v46  ;;  %v6757_v0 = vld [vmem:[%s8017_s19 + $0x1a1] sm:$0xff] }
  0xf7   : > { %7558 = vmatprep.mubr.msk.f32.mxu0 %vm328_vm1, %v6558_v46  ;;  %v8768_v58 = vpop.f32.mrf.mxu1 }
  0xf8   : > { %v8764_v56 = vpop.f32.mrf.mxu0  ;;  %11550 = vst [vmem:[#allocation36_spill] sm:$0xff] %v8768_v58 }
  0xf9   : > { %v7407_v43 = vpop.f32.mrf.mxu1  ;;  %7706 = vmatmul.mubr.msk.f32.gmra.mxu1 %vm328_vm1, %v6559_v52 }
  0xfa   : > { %v8771_v60 = vpop.f32.mrf.mxu0  ;;  %7559 = vmatmul.mubr.msk.f32.gmra.mxu0 %vm328_vm1, %v6559_v52  ;;  %7708 = vmatprep.mubr.msk.f32.mxu1 %vm328_vm1, %v6756_v62 }
  0xfb   : > { %7613 = vmatprep.mubr.msk.f32.mxu0 %vm328_vm1, %v8218_v45  ;;  %v8780_v2 = vpop.f32.mrf.mxu1 }
  0xfc   : > { %v8777_v6 = vpop.f32.mrf.mxu0  ;;  %11551 = vst [vmem:[#allocation37_spill] sm:$0xff] %v8780_v2 }
  0xfd   : > { %v7410_v45 = vpop.f32.mrf.mxu1  ;;  %7709 = vmatmul.mubr.msk.f32.gmra.mxu1 %vm328_vm1, %v6757_v0 }
  0xfe   : > { %v7339_v39 = vpop.f32.mrf.mxu0  ;;  %7614 = vmatmul.mubr.msk.f32.vlgmr.msra.gmra.mxu0 %vm328_vm1, %v8230_v47 }
  0xff   : > { %v8786_v46 = vadd.f32 %v7389_v11, %v7339_v39  ;;  %7712 = vmatpush3.msk.msra.mxu0 %vm425_vm0, %v8605_v4  ;;  %7616 = vmatprep.mubr.msk.f32.mxu0 %vm328_vm1, %v8238_v49  ;;  %v8795_v52 = vpop.f32.mrf.mxu1 }
 0x100   : > { %v8792_v58 = vpop.f32.mrf.mxu0  ;;  %11552 = vst [vmem:[#allocation38_spill] sm:$0xff] %v8795_v52 }
 0x101   : > { %v8803_v4 = vpop.f32.mrf.mxu1 }
 0x102   : > { %v7342_v62 = vpop.f32.mrf.mxu0  ;;  %7617 = vmatmul.mubr.msk.f32.gmra.mxu0 %vm328_vm1, %v8250_v51 }
 0x103   : > { %v8799_v47 = vadd.f32 %v7392_v20, %v7342_v62  ;;  %7619 = vmatprep.mubr.msk.f32.mxu0 %vm328_vm1, %v8258_v53  ;;  %v8807_v49 = vpop.f32.mrf.mxu1 }
 0x104   : > { %v8805_v11 = vpop.f32.mrf.mxu0 }
 0x105   : > { %v8815_v51 = vpop.f32.mrf.mxu1 }
 0x106   : > { %v7345_v39 = vpop.f32.mrf.mxu0  ;;  %7620 = vmatmul.mubr.msk.f32.gmra.mxu0 %vm328_vm1, %v8270_v55 }
 0x107   : > { %v8811_v0 = vadd.f32 %v7395_v28, %v7345_v39  ;;  %7622 = vmatprep.mubr.msk.f32.mxu0 %vm328_vm1, %v8278_v57  ;;  %v8819_v53 = vpop.f32.mrf.mxu1 }
 0x108   : > { %v8817_v20 = vpop.f32.mrf.mxu0 }
 0x109   : > { %v8827_v55 = vpop.f32.mrf.mxu1 }
 0x10a   : > { %v7348_v62 = vpop.f32.mrf.mxu0  ;;  %7623 = vmatmul.mubr.msk.f32.gmra.mxu0 %vm328_vm1, %v8290_v59 }
 0x10b   : > { %v8823_v52 = vadd.f32 %v7398_v34, %v7348_v62  ;;  %7625 = vmatprep.mubr.msk.f32.mxu0 %vm328_vm1, %v8298_v61  ;;  %v8831_v57 = vpop.f32.mrf.mxu1 }
 0x10c   : > { %v8829_v28 = vpop.f32.mrf.mxu0 }
 0x10d   : > { %11553 = vst [vmem:[#allocation39_spill] sm:$0xff] %v8829_v28  ;;  %v8839_v59 = vpop.f32.mrf.mxu1  ;;  %v11575_v28 = vld [vmem:[#allocation17_spill] sm:$0xff] }
 0x10e   : > { %v7351_v39 = vpop.f32.mrf.mxu0  ;;  %7626 = vmatmul.mubr.msk.f32.gmra.mxu0 %vm328_vm1, %v8310_v63 }
 0x10f   : > { %v8835_v2 = vadd.f32 %v7401_v42, %v7351_v39  ;;  %7628 = vmatprep.mubr.msk.f32.mxu0 %vm328_vm1, %v8318_v1  ;;  %v8843_v61 = vpop.f32.mrf.mxu1 }
 0x110   : > { %v8841_v34 = vpop.f32.mrf.mxu0 }
 0x111   : > { %11554 = vst [vmem:[#allocation40_spill] sm:$0xff] %v8841_v34  ;;  %v8851_v63 = vpop.f32.mrf.mxu1 }
 0x112   : > { %v7354_v62 = vpop.f32.mrf.mxu0  ;;  %7629 = vmatmul.mubr.msk.f32.gmra.mxu0 %vm328_vm1, %v8328_v3 }
 0x113   : > { %v8847_v48 = vadd.f32 %v7404_v54, %v7354_v62  ;;  %7631 = vmatprep.mubr.msk.f32.mxu0 %vm328_vm1, %v8043_v9  ;;  %v8855_v1 = vpop.f32.mrf.mxu1 }
 0x114   : > { %v8853_v42 = vpop.f32.mrf.mxu0 }
 0x115   : > { %11555 = vst [vmem:[#allocation41_spill] sm:$0xff] %v8853_v42  ;;  %v8863_v3 = vpop.f32.mrf.mxu1 }
 0x116   : > { %v7357_v39 = vpop.f32.mrf.mxu0  ;;  %7632 = vmatmul.mubr.msk.f32.gmra.mxu0 %vm328_vm1, %v8050_v10 }
 0x117   : > { %v8859_v34 = vadd.f32 %v7407_v43, %v7357_v39  ;;  %7634 = vmatprep.mubr.msk.f32.mxu0 %vm328_vm1, %v8060_v12  ;;  %v8867_v9 = vpop.f32.mrf.mxu1 }
 0x118   : > { %v8865_v54 = vpop.f32.mrf.mxu0  ;;  %11557 = vst [vmem:[#allocation43_spill] sm:$0xff] %v8867_v9 }
 0x119   : > { %11556 = vst [vmem:[#allocation42_spill] sm:$0xff] %v8865_v54  ;;  %v8875_v10 = vpop.f32.mrf.mxu1 }
 0x11a   : > { %v7360_v62 = vpop.f32.mrf.mxu0  ;;  %7635 = vmatmul.mubr.msk.f32.gmra.mxu0 %vm328_vm1, %v8068_v14 }
 0x11b   : > { %v8871_v42 = vadd.f32 %v7410_v45, %v7360_v62  ;;  %7637 = vmatprep.mubr.msk.f32.mxu0 %vm328_vm1, %v8072_v15  ;;  %v8879_v12 = vpop.f32.mrf.mxu1 }
 0x11c   : > { %v8877_v43 = vpop.f32.mrf.mxu0  ;;  %11559 = vst [vmem:[#allocation45_spill] sm:$0xff] %v8879_v12 }
 0x11d   : > { %11558 = vst [vmem:[#allocation44_spill] sm:$0xff] %v8877_v43  ;;  %v8888_v45 = vpop.f32.mrf.mxu1 }
 0x11e   : > { %v7365_v39 = vpop.f32.mrf.mxu0  ;;  %7638 = vmatmul.mubr.msk.f32.gmra.mxu0 %vm328_vm1, %v8089_v18 }
 0x11f   : > { %v8884_v54 = vadd.f32 %v7365_v39, %v8675_v5  ;;  %7640 = vmatprep.mubr.msk.f32.mxu0 %vm328_vm1, %v8092_v19  ;;  %v8895_v43 = vpop.f32.mrf.mxu1 }
 0x120   : > { %v819_v14 = vpop.f32.mrf.mxu0  ;;  %11560 = vst [vmem:[#allocation46_spill] sm:$0xff] %v8895_v43 }
 0x121   : > { %v8891_v15 = vadd.f32 %v819_v14, %v8681_v7  ;;  %v8902_v19 = vpop.f32.mrf.mxu1 }
 0x122   : > { %v7368_v62 = vpop.f32.mrf.mxu0  ;;  %7641 = vmatmul.mubr.msk.f32.gmra.mxu0 %vm328_vm1, %v8109_v22 }
 0x123   : > { %v8898_v18 = vadd.f32 %v7368_v62, %v8687_v8  ;;  %7643 = vmatprep.mubr.msk.f32.mxu0 %vm328_vm1, %v8112_v23  ;;  %v8909_v14 = vpop.f32.mrf.mxu1 }
 0x124   : > { %v829_v5 = vpop.f32.mrf.mxu0  ;;  %11561 = vst [vmem:[#allocation47_spill] sm:$0xff] %v8909_v14 }
 0x125   : > { %v8905_v39 = vadd.f32 %v829_v5, %v8693_v13  ;;  %v8916_v23 = vpop.f32.mrf.mxu1 }
 0x126   : > { %v7371_v7 = vpop.f32.mrf.mxu0  ;;  %7644 = vmatmul.mubr.msk.f32.gmra.mxu0 %vm328_vm1, %v8129_v26 }
 0x127   : > { %v8912_v22 = vadd.f32 %v7371_v7, %v8701_v17  ;;  %7646 = vmatprep.mubr.msk.f32.mxu0 %vm328_vm1, %v8132_v27  ;;  %v8923_v5 = vpop.f32.mrf.mxu1 }
 0x128   : > { %v839_v8 = vpop.f32.mrf.mxu0  ;;  %11562 = vst [vmem:[#allocation48_spill] sm:$0xff] %v8923_v5 }
 0x129   : > { %v8919_v62 = vadd.f32 %v839_v8, %v8707_v21  ;;  %v8930_v27 = vpop.f32.mrf.mxu1  ;;  %v11563_v8 = vld [vmem:[#allocation10_spill] sm:$0xff] }
 0x12a   : > { %v7374_v13 = vpop.f32.mrf.mxu0  ;;  %7647 = vmatmul.mubr.msk.f32.gmra.mxu0 %vm328_vm1, %v8149_v30 }
 0x12b   : > { %v8926_v26 = vadd.f32 %v7374_v13, %v8715_v25  ;;  %7649 = vmatprep.mubr.msk.f32.mxu0 %vm328_vm1, %v8152_v31  ;;  %v8937_v30 = vpop.f32.mrf.mxu1  ;;  %v11565_v25 = vld [vmem:[#allocation11_spill] sm:$0xff] }
 0x12c   : > { %v849_v17 = vpop.f32.mrf.mxu0  ;;  %11564 = vst [vmem:[#allocation10_spill] sm:$0xff] %v8937_v30 }
 0x12d   : > { %v8933_v7 = vadd.f32 %v849_v17, %v8721_v29  ;;  %v8944_v13 = vpop.f32.mrf.mxu1  ;;  %v11566_v17 = vld [vmem:[#allocation12_spill] sm:$0xff] }
 0x12e   : > { %v7377_v21 = vpop.f32.mrf.mxu0  ;;  %7650 = vmatmul.mubr.msk.f32.gmra.mxu0 %vm328_vm1, %v11563_v8 }
 0x12f   : > { %v8940_v5 = vadd.f32 %v7377_v21, %v8729_v33  ;;  %7652 = vmatprep.mubr.msk.f32.mxu0 %vm328_vm1, %v11565_v25  ;;  %v8951_v8 = vpop.f32.mrf.mxu1  ;;  %v6690_v21 = vld [vmem:[%s8017_s19 + $0x198] sm:$0xff] }
 0x130   : > { %v859_v31 = vpop.f32.mrf.mxu0  ;;  %11567 = vst [vmem:[#allocation11_spill] sm:$0xff] %v8951_v8 }
 0x131   : > { %v8947_v14 = vadd.f32 %v859_v31, %v8735_v36  ;;  %v8959_v25 = vpop.f32.mrf.mxu1  ;;  %v11568_v31 = vld [vmem:[#allocation13_spill] sm:$0xff] }
 0x132   : > { %v7380_v29 = vpop.f32.mrf.mxu0  ;;  %7653 = vmatmul.mubr.msk.f32.gmra.mxu0 %vm328_vm1, %v11566_v17 }
 0x133   : > { %v8954_v30 = vadd.f32 %v7380_v29, %v8743_v40  ;;  %7655 = vmatprep.mubr.msk.f32.mxu0 %vm328_vm1, %v8399_v41  ;;  %v8966_v17 = vpop.f32.mrf.mxu1  ;;  %v6691_v40 = vld [vmem:[%s8017_s19 + $0x1a0] sm:$0xff] }
 0x134   : > { %v869_v33 = vpop.f32.mrf.mxu0  ;;  %11569 = vst [vmem:[#allocation12_spill] sm:$0xff] %v8966_v17  ;;  %v11571_v17 = vld [vmem:[#allocation14_spill] sm:$0xff] }
 0x135   : > { %v8962_v43 = vadd.f32 %v869_v33, %v8749_v44  ;;  %v8973_v29 = vpop.f32.mrf.mxu1 }
 0x136   : > { %v7383_v36 = vpop.f32.mrf.mxu0  ;;  %7656 = vmatmul.mubr.msk.f32.gmra.mxu0 %vm328_vm1, %v11568_v31 }
 0x137   : > { %v8969_v8 = vadd.f32 %v7383_v36, %v8758_v50  ;;  %7658 = vmatprep.mubr.msk.f32.mxu0 %vm328_vm1, %v6690_v21  ;;  %v8979_v33 = vpop.f32.mrf.mxu1 }
 0x138   : > { %v879_v41 = vpop.f32.mrf.mxu0  ;;  %11570 = vst [vmem:[#allocation13_spill] sm:$0xff] %v8979_v33  ;;  %v11574_v33 = vld [vmem:[#allocation16_spill] sm:$0xff] }
 0x139   : > { %v8976_v12 = vadd.f32 %v879_v41, %v8764_v56  ;;  %v8986_v21 = vpop.f32.mrf.mxu1  ;;  %v11572_v56 = vld [vmem:[#allocation15_spill] sm:$0xff] }
 0x13a   : > { %v7386_v44 = vpop.f32.mrf.mxu0  ;;  %7659 = vmatmul.mubr.msk.f32.gmra.mxu0 %vm328_vm1, %v6691_v40 }
 0x13b   : > { %v8982_v31 = vadd.f32 %v7386_v44, %v8771_v60  ;;  %7713 = vmatprep.mubr.msk.f32.mxu0 %vm328_vm1, %v11571_v17  ;;  %v8993_v41 = vpop.f32.mrf.mxu1 }
 0x13c   : > { %v889_v50 = vpop.f32.mrf.mxu0  ;;  %11573 = vst [vmem:[#allocation14_spill] sm:$0xff] %v8993_v41 }
 0x13d   : > { %v8989_v36 = vadd.f32 %v889_v50, %v8777_v6  ;;  %v8998_v44 = vpop.f32.mrf.mxu1 }
 0x13e   : > { %v7415_v37 = vpop.f32.mrf.mxu0  ;;  %7714 = vmatmul.mubr.msk.f32.vlgmr.msra.gmra.mxu0 %vm328_vm1, %v11572_v56 }
 0x13f   : > { %v1337_v40 = vadd.f32 %v7415_v37, %v8884_v54  ;;  %7716 = vmatprep.mubr.msk.f32.mxu0 %vm328_vm1, %v11574_v33  ;;  %v9008_v56 = vpop.f32.mrf.mxu1  ;;  %v11577_v54 = vld [vmem:[#allocation18_spill] sm:$0xff] }
 0x140   : > { %v1177_v60 = vpop.f32.mrf.mxu0  ;;  %11576 = vst [vmem:[#allocation15_spill] sm:$0xff] %v9008_v56 }
 0x141   : > { %v9001_v17 = vadd.f32 %v1177_v60, %v8891_v15  ;;  %v9004_v6 = vadd.f32 %v8803_v4, %v1337_v40  ;;  %v9013_v41 = vpop.f32.mrf.mxu1  ;;  %v11578_v60 = vld [vmem:[#allocation19_spill] sm:$0xff] }
 0x142   : > { %v7418_v50 = vpop.f32.mrf.mxu0  ;;  %7717 = vmatmul.mubr.msk.f32.gmra.mxu0 %vm328_vm1, %v11575_v28 }
 0x143   : > { %v1339_v37 = vadd.f32 %v7418_v50, %v8898_v18  ;;  %7719 = vmatprep.mubr.msk.f32.mxu0 %vm328_vm1, %v11577_v54  ;;  %v9023_v28 = vpop.f32.mrf.mxu1  ;;  %v11579_v50 = vld [vmem:[#allocation20_spill] sm:$0xff] }
 0x144   : > { %v1187_v33 = vpop.f32.mrf.mxu0 }
 0x145   : > { %v9016_v15 = vadd.f32 %v1187_v33, %v8905_v39  ;;  %v9019_v4 = vadd.f32 %v8815_v51, %v1339_v37  ;;  %v9028_v56 = vpop.f32.mrf.mxu1  ;;  %v11580_v33 = vld [vmem:[#allocation21_spill] sm:$0xff] }
 0x146   : > { %v7421_v40 = vpop.f32.mrf.mxu0  ;;  %7720 = vmatmul.mubr.msk.f32.gmra.mxu0 %vm328_vm1, %v11578_v60 }
 0x147   : > { %v1341_v18 = vadd.f32 %v7421_v40, %v8912_v22  ;;  %7722 = vmatprep.mubr.msk.f32.mxu0 %vm328_vm1, %v11579_v50  ;;  %v9038_v60 = vpop.f32.mrf.mxu1  ;;  %v11581_v40 = vld [vmem:[#allocation22_spill] sm:$0xff] }
 0x148   : > { %v1197_v54 = vpop.f32.mrf.mxu0 }
 0x149   : > { %v9031_v39 = vadd.f32 %v1197_v54, %v8919_v62  ;;  %v9034_v51 = vadd.f32 %v8827_v55, %v1341_v18  ;;  %v9043_v9 = vpop.f32.mrf.mxu1  ;;  %v11582_v54 = vld [vmem:[#allocation23_spill] sm:$0xff] }
 0x14a   : > { %v7424_v37 = vpop.f32.mrf.mxu0  ;;  %7723 = vmatmul.mubr.msk.f32.gmra.mxu0 %vm328_vm1, %v11580_v33 }
 0x14b   : > { %v1343_v22 = vadd.f32 %v7424_v37, %v8926_v26  ;;  %7725 = vmatprep.mubr.msk.f32.mxu0 %vm328_vm1, %v11581_v40  ;;  %v9056_v37 = vpop.f32.mrf.mxu1 }
 0x14c   : > { %v1207_v50 = vpop.f32.mrf.mxu0 }
 0x14d   : > { %v9046_v62 = vadd.f32 %v1207_v50, %v8933_v7  ;;  %v9049_v55 = vadd.f32 %v8839_v59, %v1343_v22  ;;  %v11584_v22 = vld [vmem:[#allocation25_spill] sm:$0xff] }
 0x14e   : > { %v7427_v18 = vpop.f32.mrf.mxu0  ;;  %7726 = vmatmul.mubr.msk.f32.gmra.mxu0 %vm328_vm1, %v11582_v54  ;;  %v11585_v54 = vld [vmem:[#allocation26_spill] sm:$0xff] }
 0x14f   : > { %v1345_v33 = vadd.f32 %v7427_v18, %v8940_v5  ;;  %7728 = vmatprep.mubr.msk.f32.mxu0 %vm328_vm1, %v11583_v32  ;;  %v9069_v32 = vpop.f32.mrf.mxu1 }
 0x150   : > { %v1217_v26 = vpop.f32.mrf.mxu0 }
 0x151   : > { %v9059_v40 = vadd.f32 %v1217_v26, %v8947_v14  ;;  %v9062_v7 = vadd.f32 %v8851_v63, %v1345_v33  ;;  %v11586_v33 = vld [vmem:[#allocation27_spill] sm:$0xff] }
 0x152   : > { %v7430_v59 = vpop.f32.mrf.mxu0  ;;  %7729 = vmatmul.mubr.msk.f32.gmra.mxu0 %vm328_vm1, %v11584_v22  ;;  %v11587_v22 = vld [vmem:[#allocation28_spill] sm:$0xff] }
 0x153   : > { %v1347_v50 = vadd.f32 %v7430_v59, %v8954_v30  ;;  %7731 = vmatprep.mubr.msk.f32.mxu0 %vm328_vm1, %v11585_v54  ;;  %v9082_v59 = vpop.f32.mrf.mxu1 }
 0x154   : > { %v1227_v5 = vpop.f32.mrf.mxu0 }
 0x155   : > { %v9072_v18 = vadd.f32 %v1227_v5, %v8962_v43  ;;  %v9075_v14 = vadd.f32 %v8863_v3, %v1347_v50  ;;  %v11588_v50 = vld [vmem:[#allocation29_spill] sm:$0xff]  ;;  %v11589_v5 = vld [vmem:[#allocation30_spill] sm:$0xff] }
 0x156   : > { %v7433_v63 = vpop.f32.mrf.mxu0  ;;  %7732 = vmatmul.mubr.msk.f32.gmra.mxu0 %vm328_vm1, %v11586_v33  ;;  %v9095_v33 = vpop.f32.mrf.mxu1 }
 0x157   : > { %v1349_v26 = vadd.f32 %v7433_v63, %v8969_v8  ;;  %7734 = vmatprep.mubr.msk.f32.mxu0 %vm328_vm1, %v11587_v22 }
 0x158   : > { %v1237_v30 = vpop.f32.mrf.mxu0 }
 0x159   : > { %v9085_v54 = vadd.f32 %v1237_v30, %v8976_v12  ;;  %v9088_v3 = vadd.f32 %v8875_v10, %v1349_v26  ;;  %v11591_v26 = vld [vmem:[#allocation31_spill] sm:$0xff]  ;;  %v11592_v30 = vld [vmem:[#allocation32_spill] sm:$0xff] }
 0x15a   : > { %v7436_v43 = vpop.f32.mrf.mxu0  ;;  %7735 = vmatmul.mubr.msk.f32.gmra.mxu0 %vm328_vm1, %v11588_v50 }
 0x15b   : > { %v1351_v8 = vadd.f32 %v7436_v43, %v8982_v31  ;;  %7737 = vmatprep.mubr.msk.f32.mxu0 %vm328_vm1, %v11589_v5  ;;  %v6811_v43 = vld [vmem:[%s8017_s19 + $0x112] sm:$0xff]  ;;  %v6812_v5 = vld [vmem:[%s8017_s19 + $0x122] sm:$0xff] }
 0x15c   : > { %v1247_v63 = vpop.f32.mrf.mxu0 }
 0x15d   : > { %v9098_v12 = vadd.f32 %v1247_v63, %v8989_v36  ;;  %v9101_v22 = vadd.f32 %v8888_v45, %v1351_v8  ;;  %v9112_v36 = vpop.f32.mrf.mxu1 }
 0x15e   : > { %v7439_v10 = vpop.f32.mrf.mxu0  ;;  %7738 = vmatmul.mubr.msk.f32.gmra.mxu0 %vm328_vm1, %v11591_v26  ;;  %v6814_v26 = vld [vmem:[%s8017_s19 + $0x13a] sm:$0xff] }
 0x15f   : > { %11590 = vst [vmem:[#allocation16_spill] sm:$0xff] %v9098_v12  ;;  %v1353_v31 = vadd.f32 %v7439_v10, %v8786_v46  ;;  %7740 = vmatprep.mubr.msk.f32.mxu0 %vm328_vm1, %v11592_v30  ;;  %v6813_v46 = vld [vmem:[%s8017_s19 + $0x12a] sm:$0xff]  ;;  %v9124_v30 = vpop.f32.mrf.mxu1 }
 0x160   : > { %v9109_v50 = vpop.f32.mrf.mxu0 }
 0x161   : > { %11593 = vst [vmem:[#allocation17_spill] sm:$0xff] %v9109_v50  ;;  %v9115_v45 = vadd.f32 %v8902_v19, %v1353_v31 }
 0x162   : > { %v7442_v8 = vpop.f32.mrf.mxu0  ;;  %7741 = vmatmul.mubr.msk.f32.gmra.mxu0 %vm328_vm1, %v6811_v43 }
 0x163   : > { %v1355_v63 = vadd.f32 %v7442_v8, %v8799_v47  ;;  %7743 = vmatprep.mubr.msk.f32.mxu0 %vm328_vm1, %v6812_v5  ;;  %v6815_v47 = vld [vmem:[%s8017_s19 + $0x142] sm:$0xff]  ;;  %v6816_v5 = vld [vmem:[%s8017_s19 + $0x152] sm:$0xff]  ;;  %v9136_v8 = vpop.f32.mrf.mxu1 }
 0x164   : > { %v9121_v10 = vpop.f32.mrf.mxu0  ;;  %11596 = vst [vmem:[#allocation20_spill] sm:$0xff] %v9136_v8 }
 0x165   : > { %11594 = vst [vmem:[#allocation18_spill] sm:$0xff] %v9121_v10  ;;  %v9127_v50 = vadd.f32 %v8916_v23, %v1355_v63 }
 0x166   : > { %v7445_v19 = vpop.f32.mrf.mxu0  ;;  %7744 = vmatmul.mubr.msk.f32.gmra.mxu0 %vm328_vm1, %v6813_v46 }
 0x167   : > { %v1357_v31 = vadd.f32 %v7445_v19, %v8811_v0  ;;  %7746 = vmatprep.mubr.msk.f32.mxu0 %vm328_vm1, %v6814_v26  ;;  %v6817_v0 = vld [vmem:[%s8017_s19 + $0x15a] sm:$0xff]  ;;  %v6818_v26 = vld [vmem:[%s8017_s19 + $0x16a] sm:$0xff]  ;;  %v9148_v19 = vpop.f32.mrf.mxu1 }
 0x168   : > { %v9133_v43 = vpop.f32.mrf.mxu0  ;;  %11598 = vst [vmem:[#allocation22_spill] sm:$0xff] %v9148_v19 }
 0x169   : > { %11595 = vst [vmem:[#allocation19_spill] sm:$0xff] %v9133_v43  ;;  %v9139_v10 = vadd.f32 %v8930_v27, %v1357_v31 }
 0x16a   : > { %v7448_v23 = vpop.f32.mrf.mxu0  ;;  %7747 = vmatmul.mubr.msk.f32.gmra.mxu0 %vm328_vm1, %v6815_v47  ;;  %v9159_v47 = vpop.f32.mrf.mxu1 }
 0x16b   : > { %v1359_v63 = vadd.f32 %v7448_v23, %v8823_v52  ;;  %7749 = vmatprep.mubr.msk.f32.mxu0 %vm328_vm1, %v6816_v5  ;;  %v6819_v52 = vld [vmem:[%s8017_s19 + $0x172] sm:$0xff]  ;;  %11600 = vst [vmem:[#allocation24_spill] sm:$0xff] %v9159_v47 }
 0x16c   : > { %v9145_v46 = vpop.f32.mrf.mxu0 }
 0x16d   : > { %11597 = vst [vmem:[#allocation21_spill] sm:$0xff] %v9145_v46  ;;  %v9151_v43 = vadd.f32 %v8944_v13, %v1359_v63  ;;  %v9171_v63 = vpop.f32.mrf.mxu1 }
 0x16e   : > { %v7451_v12 = vpop.f32.mrf.mxu0  ;;  %7750 = vmatmul.mubr.msk.f32.gmra.mxu0 %vm328_vm1, %v6817_v0  ;;  %11602 = vst [vmem:[#allocation26_spill] sm:$0xff] %v9171_v63 }
 0x16f   : > { %v1361_v27 = vadd.f32 %v7451_v12, %v8835_v2  ;;  %7752 = vmatprep.mubr.msk.f32.mxu0 %vm328_vm1, %v6818_v26  ;;  %v6822_v12 = vld [vmem:[%s8017_s19 + $0x19a] sm:$0xff] }
 0x170   : > { %v9157_v31 = vpop.f32.mrf.mxu0 }
 0x171   : > { %11599 = vst [vmem:[#allocation23_spill] sm:$0xff] %v9157_v31  ;;  %v9162_v5 = vadd.f32 %v8959_v25, %v1361_v27 }
 0x172   : > { %v7454_v23 = vpop.f32.mrf.mxu0  ;;  %7753 = vmatmul.mubr.msk.f32.gmra.mxu0 %vm328_vm1, %v6819_v52 }
 0x173   : > { %v1363_v13 = vadd.f32 %v7454_v23, %v8847_v48  ;;  %7755 = vmatprep.mubr.msk.f32.mxu0 %vm328_vm1, %v8592_v35  ;;  %v6823_v48 = vld [vmem:[%s8017_s19 + $0x1a2] sm:$0xff]  ;;  %v9183_v35 = vpop.f32.mrf.mxu1  ;;  %s7818_s19 = sshll.u32 %s7908_s18, 4  ;;  %s7819_s19 = int_to_ptr.vmem [resolvable:$false] %s7818_s19 }
 0x174   : > { %v9168_v2 = vpop.f32.mrf.mxu0  ;;  %11604 = vst [vmem:[#allocation28_spill] sm:$0xff] %v9183_v35  ;;  %s7820_s20 = scalar_lea.vmem %s7819_s19, 4096  ;;  %p7821_p0 = scmp.lt.s32.totalorder %s11396_s12, %s7819_s19 }
 0x175   : > { %11601 = vst [vmem:[#allocation25_spill] sm:$0xff] %v9168_v2  ;;  %v9174_v0 = vadd.f32 %v8973_v29, %v1363_v13  ;;  %p7822_p1 = scmp.lt.s32.totalorder %s7820_s20, %s7814_s17 }
 0x176   : > { %v7457_v26 = vpop.f32.mrf.mxu0  ;;  %7756 = vmatmul.mubr.msk.f32.gmra.mxu0 %vm328_vm1, %v8600_v38  ;;  %v9192_v38 = vpop.f32.mrf.mxu1 }
 0x177   : > { %v1365_v25 = vadd.f32 %v7457_v26, %v8859_v34  ;;  %7758 = vmatprep.mubr.msk.f32.mxu0 %vm328_vm1, %v6822_v12  ;;  %11606 = vst [vmem:[#allocation30_spill] sm:$0xff] %v9192_v38  ;;  %p7823_p2 = por %p7822_p1, %p7821_p0 }
 0x178   : > { %v9181_v27 = vpop.f32.mrf.mxu0  ;;  %v9200_v2 = vpop.f32.mrf.mxu1 }
 0x179   : > { %11603 = vst [vmem:[#allocation27_spill] sm:$0xff] %v9181_v27  ;;  %v9186_v52 = vadd.f32 %v8986_v21, %v1365_v25  ;;  %11607 = vst [vmem:[#allocation31_spill] sm:$0xff] %v9200_v2  ;;  %p7824_p3 = pnand %p7823_p2, %p7817_p13 }
 0x17a   : > { %v7460_v23 = vpop.f32.mrf.mxu0  ;;  %7759 = vmatmul.mubr.msk.f32.gmra.mxu0 %vm328_vm1, %v6823_v48 }
 0x17b   : > { %v1367_v29 = vadd.f32 %v7460_v23, %v8871_v42  ;;  %v9207_v42 = vpop.f32.mrf.mxu1 }
 0x17c   : > { %v9190_v13 = vpop.f32.mrf.mxu0  ;;  %11608 = vst [vmem:[#allocation32_spill] sm:$0xff] %v9207_v42 }
 0x17d   : > { %11605 = vst [vmem:[#allocation29_spill] sm:$0xff] %v9190_v13  ;;  %v1758_v34 = vadd.f32 %v8998_v44, %v1367_v29 }
 0x17e   : > { %v7515_v12 = vpop.f32.mrf.mxu0 }
 0x17f   : > { %v9196_v26 = vadd.f32 %v7515_v12, %v9004_v6  ;;  %v9214_v6 = vpop.f32.mrf.mxu1 }
 0x180   : > { %v9198_v27 = vpop.f32.mrf.mxu0  ;;  %11609 = vst [vmem:[#allocation49_spill] sm:$0xff] %v9214_v6 }
 0x182   : > { %v7518_v21 = vpop.f32.mrf.mxu0 }
 0x183   : > { %v9203_v25 = vadd.f32 %v7518_v21, %v9019_v4  ;;  %v9221_v4 = vpop.f32.mrf.mxu1 }
 0x184   : > { %v9205_v48 = vpop.f32.mrf.mxu0  ;;  %11610 = vst [vmem:[#allocation50_spill] sm:$0xff] %v9221_v4 }
 0x186   : > { %v7521_v23 = vpop.f32.mrf.mxu0 }
 0x187   : > { %v9210_v13 = vadd.f32 %v7521_v23, %v9034_v51  ;;  %v9228_v51 = vpop.f32.mrf.mxu1 }
 0x188   : > { %v9212_v44 = vpop.f32.mrf.mxu0  ;;  %11611 = vst [vmem:[#allocation51_spill] sm:$0xff] %v9228_v51 }
 0x18a   : > { %v7524_v29 = vpop.f32.mrf.mxu0 }
 0x18b   : > { %v9217_v12 = vadd.f32 %v7524_v29, %v9049_v55  ;;  %v9235_v55 = vpop.f32.mrf.mxu1 }
 0x18c   : > { %v9219_v31 = vpop.f32.mrf.mxu0  ;;  %11612 = vst [vmem:[#allocation52_spill] sm:$0xff] %v9235_v55 }
 0x18e   : > { %v7527_v21 = vpop.f32.mrf.mxu0 }
 0x18f   : > { %v9224_v46 = vadd.f32 %v7527_v21, %v9062_v7  ;;  %v9242_v7 = vpop.f32.mrf.mxu1 }
 0x190   : > { %v9226_v42 = vpop.f32.mrf.mxu0  ;;  %11615 = vst [vmem:[#allocation55_spill] sm:$0xff] %v9242_v7 }
 0x192   : > { %v7530_v23 = vpop.f32.mrf.mxu0 }
 0x193   : > { %v9231_v2 = vadd.f32 %v7530_v23, %v9075_v14  ;;  %v9249_v14 = vpop.f32.mrf.mxu1 }
 0x194   : > { %v9233_v6 = vpop.f32.mrf.mxu0  ;;  %11618 = vst [vmem:[#allocation58_spill] sm:$0xff] %v9249_v14 }
 0x196   : > { %v7533_v29 = vpop.f32.mrf.mxu0 }
 0x197   : > { %v9238_v38 = vadd.f32 %v7533_v29, %v9088_v3  ;;  %v9256_v3 = vpop.f32.mrf.mxu1 }
 0x198   : > { %v9240_v4 = vpop.f32.mrf.mxu0  ;;  %11621 = vst [vmem:[#allocation61_spill] sm:$0xff] %v9256_v3 }
 0x199   : > { %11613 = vst [vmem:[#allocation53_spill] sm:$0xff] %v9238_v38  ;;  %11614 = vst [vmem:[#allocation54_spill] sm:$0xff] %v9240_v4  ;;  %v6867_v4 = vld [vmem:[%s11484_s3 + $0x100] sm:$0xff] }
 0x19a   : > { %v7536_v21 = vpop.f32.mrf.mxu0 }
 0x19b   : > { %v9245_v35 = vadd.f32 %v7536_v21, %v9101_v22  ;;  %v9263_v22 = vpop.f32.mrf.mxu1 }
 0x19c   : > { %v9247_v51 = vpop.f32.mrf.mxu0  ;;  %11624 = vst [vmem:[#allocation64_spill] sm:$0xff] %v9263_v22 }
 0x19d   : > { %11616 = vst [vmem:[#allocation56_spill] sm:$0xff] %v9245_v35  ;;  %11617 = vst [vmem:[#allocation57_spill] sm:$0xff] %v9247_v51  ;;  %v6868_v51 = vld [vmem:[%s11484_s3 + $0x108] sm:$0xff] }
 0x19e   : > { %v7539_v23 = vpop.f32.mrf.mxu0 }
 0x19f   : > { %v9252_v63 = vadd.f32 %v7539_v23, %v9115_v45  ;;  %v9270_v45 = vpop.f32.mrf.mxu1 }
 0x1a0   : > { %v9254_v55 = vpop.f32.mrf.mxu0  ;;  %11627 = vst [vmem:[#allocation67_spill] sm:$0xff] %v9270_v45 }
 0x1a1   : > { %11619 = vst [vmem:[#allocation59_spill] sm:$0xff] %v9252_v63  ;;  %11620 = vst [vmem:[#allocation60_spill] sm:$0xff] %v9254_v55 }
 0x1a2   : > { %v7542_v29 = vpop.f32.mrf.mxu0 }
 0x1a3   : > { %v9259_v47 = vadd.f32 %v7542_v29, %v9127_v50  ;;  %v9277_v50 = vpop.f32.mrf.mxu1 }
 0x1a4   : > { %v9261_v7 = vpop.f32.mrf.mxu0  ;;  %11630 = vst [vmem:[#allocation70_spill] sm:$0xff] %v9277_v50 }
 0x1a5   : > { %11622 = vst [vmem:[#allocation62_spill] sm:$0xff] %v9259_v47  ;;  %11623 = vst [vmem:[#allocation63_spill] sm:$0xff] %v9261_v7 }
 0x1a6   : > { %v7545_v21 = vpop.f32.mrf.mxu0 }
 0x1a7   : > { %v9266_v35 = vadd.f32 %v7545_v21, %v9139_v10  ;;  %v9284_v10 = vpop.f32.mrf.mxu1 }
 0x1a8   : > { %v9268_v14 = vpop.f32.mrf.mxu0  ;;  %11633 = vst [vmem:[#allocation73_spill] sm:$0xff] %v9284_v10 }
 0x1a9   : > { %11625 = vst [vmem:[#allocation65_spill] sm:$0xff] %v9266_v35  ;;  %11626 = vst [vmem:[#allocation66_spill] sm:$0xff] %v9268_v14  ;;  %v6870_v14 = vld [vmem:[%s11484_s3 + $0x118] sm:$0xff] }
 0x1aa   : > { %v7548_v23 = vpop.f32.mrf.mxu0 }
 0x1ab   : > { %v9273_v63 = vadd.f32 %v7548_v23, %v9151_v43  ;;  %v9291_v43 = vpop.f32.mrf.mxu1 }
 0x1ac   : > { %v9275_v3 = vpop.f32.mrf.mxu0  ;;  %11636 = vst [vmem:[#allocation76_spill] sm:$0xff] %v9291_v43 }
 0x1ad   : > { %11628 = vst [vmem:[#allocation68_spill] sm:$0xff] %v9273_v63  ;;  %11629 = vst [vmem:[#allocation69_spill] sm:$0xff] %v9275_v3 }
 0x1ae   : > { %v7551_v29 = vpop.f32.mrf.mxu0 }
 0x1af   : > { %v9280_v47 = vadd.f32 %v7551_v29, %v9162_v5  ;;  %v9298_v5 = vpop.f32.mrf.mxu1 }
 0x1b0   : > { %v9282_v22 = vpop.f32.mrf.mxu0  ;;  %11639 = vst [vmem:[#allocation79_spill] sm:$0xff] %v9298_v5  ;;  %v6873_v5 = vld [vmem:[%s11484_s3 + $0x130] sm:$0xff] }
 0x1b1   : > { %11631 = vst [vmem:[#allocation71_spill] sm:$0xff] %v9280_v47  ;;  %11632 = vst [vmem:[#allocation72_spill] sm:$0xff] %v9282_v22  ;;  %v9304_v22 = vpop.f32.mrf.mxu1 }
 0x1b2   : > { %v7554_v21 = vpop.f32.mrf.mxu0 }
 0x1b3   : > { %v9287_v35 = vadd.f32 %v7554_v21, %v9174_v0  ;;  %v9310_v43 = vpop.f32.mrf.mxu1 }
 0x1b4   : > { %v9289_v45 = vpop.f32.mrf.mxu0 }
 0x1b5   : > { %11634 = vst [vmem:[#allocation74_spill] sm:$0xff] %v9287_v35  ;;  %11635 = vst [vmem:[#allocation75_spill] sm:$0xff] %v9289_v45  ;;  %v6871_v45 = vld [vmem:[%s11484_s3 + $0x120] sm:$0xff] }
 0x1b6   : > { %v7557_v23 = vpop.f32.mrf.mxu0 }
 0x1b7   : > { %v9294_v63 = vadd.f32 %v7557_v23, %v9186_v52  ;;  %v6874_v52 = vld [vmem:[%s11484_s3 + $0x138] sm:$0xff] }
 0x1b8   : > { %v9296_v50 = vpop.f32.mrf.mxu0 }
 0x1b9   : > { %11637 = vst [vmem:[#allocation77_spill] sm:$0xff] %v9294_v63  ;;  %11638 = vst [vmem:[#allocation78_spill] sm:$0xff] %v9296_v50  ;;  %v6872_v50 = vld [vmem:[%s11484_s3 + $0x128] sm:$0xff] }
 0x1ba   : > { %v7560_v29 = vpop.f32.mrf.mxu0 }
 0x1bb   : > { %v9300_v47 = vadd.f32 %v7560_v29, %v1758_v34  ;;  %v9319_v34 = vpop.f32.mrf.mxu1  ;;  %v7906_v29 = vmov 0.0  }
 0x1bc   : > { %v9302_v10 = vpop.f32.mrf.mxu0  ;;  %4550 = vmatprep.subr.mxu1 %v7906_v29  ;;  %4871 = vmatprep.subr.mxu0 %v7906_v29 }
 0x1bd   : > { %11640 = vst [vmem:[#allocation80_spill] sm:$0xff] %v9300_v47  ;;  %11641 = vst [vmem:[#allocation81_spill] sm:$0xff] %v9302_v10  ;;  %4551 = vmatpush1.msra.mxu1 %v6874_v52  ;;  %v9329_v10 = vpop.f32.mrf.mxu1 }
 0x1be   : > { %v9306_v0 = vpop.f32.mrf.mxu0  ;;  %4552 = vmatprep.subr.mxu1 %v7906_v29 }
 0x1bf   : > { %4553 = vmatpush1.msra.mxu1 %v6873_v5  ;;  %v9343_v5 = vpop.f32.mrf.mxu1 }
 0x1c0   : > { %v9308_v21 = vpop.f32.mrf.mxu0  ;;  %4554 = vmatprep.subr.mxu1 %v7906_v29 }
 0x1c1   : > { %4555 = vmatpush1.msra.mxu1 %v6872_v50  ;;  %v9354_v50 = vpop.f32.mrf.mxu1 }
 0x1c2   : > { %v9312_v35 = vpop.f32.mrf.mxu0  ;;  %4556 = vmatprep.subr.mxu1 %v7906_v29 }
 0x1c3   : > { %4557 = vmatpush1.msra.mxu1 %v6871_v45  ;;  %v6869_v45 = vld [vmem:[%s11484_s3 + $0x110] sm:$0xff] }
 0x1c4   : > { %v9317_v23 = vpop.f32.mrf.mxu0  ;;  %4558 = vmatprep.subr.mxu1 %v7906_v29 }
 0x1c5   : > { %4559 = vmatpush1.msra.mxu1 %v6870_v14  ;;  %v9367_v14 = vpop.f32.mrf.mxu1 }
 0x1c6   : > { %v9326_v47 = vpop.f32.mrf.mxu0  ;;  %4560 = vmatprep.subr.mxu1 %v7906_v29 }
 0x1c7   : > { %4561 = vmatpush1.msra.mxu1 %v6869_v45  ;;  %v9378_v45 = vpop.f32.mrf.mxu1 }
 0x1c8   : > { %v9331_v63 = vpop.f32.mrf.mxu0  ;;  %4562 = vmatprep.subr.mxu1 %v7906_v29  ;;  %11646 = vst [vmem:[#allocation86_spill] sm:$0xff] %v9378_v45 }
 0x1c9   : > { %4563 = vmatpush1.msra.mxu1 %v6868_v51  ;;  %v6866_v51 = vld [vmem:[%s11484_s3 + $0xf8] sm:$0xff] }
 0x1ca   : > { %v9340_v52 = vpop.f32.mrf.mxu0  ;;  %4564 = vmatprep.subr.mxu1 %v7906_v29 }
 0x1cb   : > { %4565 = vmatpush1.msra.mxu1 %v6867_v4  ;;  %v9391_v4 = vpop.f32.mrf.mxu1 }
 0x1cc   : > { %v9345_v3 = vpop.f32.mrf.mxu0  ;;  %4566 = vmatprep.subr.mxu1 %v7906_v29  ;;  %11649 = vst [vmem:[#allocation89_spill] sm:$0xff] %v9391_v4 }
 0x1cd   : > { %4567 = vmatpush1.msra.mxu1 %v6866_v51  ;;  %v9402_v51 = vpop.f32.mrf.mxu1 }
 0x1ce   : > { %v9351_v7 = vpop.f32.mrf.mxu0  ;;  %4568 = vmatprep.subr.mxu1 %v7906_v29  ;;  %11652 = vst [vmem:[#allocation92_spill] sm:$0xff] %v9402_v51 }
 0x1d0   : > { %v9356_v55 = vpop.f32.mrf.mxu0 }
 0x1d1   : > { %11642 = vst [vmem:[#allocation82_spill] sm:$0xff] %v9356_v55 }
 0x1d2   : > { %v9364_v19 = vpop.f32.mrf.mxu0 }
 0x1d3   : > { %11643 = vst [vmem:[#allocation83_spill] sm:$0xff] %v9364_v19 }
 0x1d4   : > { %v9369_v38 = vpop.f32.mrf.mxu0 }
 0x1d5   : > { %11644 = vst [vmem:[#allocation84_spill] sm:$0xff] %v9369_v38  ;;  %v6865_v38 = vld [vmem:[%s11484_s3 + $0xf0] sm:$0xff] }
 0x1d6   : > { %v9375_v8 = vpop.f32.mrf.mxu0  ;;  %4569 = vmatpush1.msra.mxu1 %v6865_v38  ;;  %v6863_v38 = vld [vmem:[%s11484_s3 + $0xe0] sm:$0xff] }
 0x1d7   : > { %11645 = vst [vmem:[#allocation85_spill] sm:$0xff] %v9375_v8  ;;  %4570 = vmatprep.subr.mxu1 %v7906_v29 }
 0x1d8   : > { %v9380_v19 = vpop.f32.mrf.mxu0 }
 0x1d9   : > { %11647 = vst [vmem:[#allocation87_spill] sm:$0xff] %v9380_v19  ;;  %v6864_v19 = vld [vmem:[%s11484_s3 + $0xe8] sm:$0xff] }
 0x1da   : > { %v9388_v55 = vpop.f32.mrf.mxu0  ;;  %4571 = vmatpush1.msra.mxu1 %v6864_v19  ;;  %v9415_v19 = vpop.f32.mrf.mxu1 }
 0x1db   : > { %11648 = vst [vmem:[#allocation88_spill] sm:$0xff] %v9388_v55  ;;  %4572 = vmatprep.subr.mxu1 %v7906_v29  ;;  %11655 = vst [vmem:[#allocation95_spill] sm:$0xff] %v9415_v19 }
 0x1dc   : > { %v9393_v8 = vpop.f32.mrf.mxu0  ;;  %4573 = vmatpush1.msra.mxu1 %v6863_v38  ;;  %v9426_v38 = vpop.f32.mrf.mxu1 }
 0x1dd   : > { %11650 = vst [vmem:[#allocation90_spill] sm:$0xff] %v9393_v8  ;;  %v6862_v8 = vld [vmem:[%s11484_s3 + $0xd8] sm:$0xff]  ;;  %4574 = vmatprep.subr.mxu1 %v7906_v29  ;;  %11658 = vst [vmem:[#allocation98_spill] sm:$0xff] %v9426_v38 }
 0x1de   : > { %v9399_v45 = vpop.f32.mrf.mxu0  ;;  %4575 = vmatpush1.msra.mxu1 %v6862_v8  ;;  %v6860_v8 = vld [vmem:[%s11484_s3 + $0xc8] sm:$0xff] }
 0x1df   : > { %11651 = vst [vmem:[#allocation91_spill] sm:$0xff] %v9399_v45  ;;  %4576 = vmatprep.subr.mxu1 %v7906_v29 }
 0x1e0   : > { %v9404_v55 = vpop.f32.mrf.mxu0 }
 0x1e1   : > { %11653 = vst [vmem:[#allocation93_spill] sm:$0xff] %v9404_v55  ;;  %v6861_v55 = vld [vmem:[%s11484_s3 + $0xd0] sm:$0xff] }
 0x1e2   : > { %v9412_v4 = vpop.f32.mrf.mxu0  ;;  %4577 = vmatpush1.msra.mxu1 %v6861_v55  ;;  %v9439_v55 = vpop.f32.mrf.mxu1 }
 0x1e3   : > { %11654 = vst [vmem:[#allocation94_spill] sm:$0xff] %v9412_v4  ;;  %4578 = vmatprep.subr.mxu1 %v7906_v29  ;;  %11661 = vst [vmem:[#allocation101_spill] sm:$0xff] %v9439_v55 }
 0x1e4   : > { %v9417_v45 = vpop.f32.mrf.mxu0  ;;  %4579 = vmatpush1.msra.mxu1 %v6860_v8  ;;  %v9450_v8 = vpop.f32.mrf.mxu1 }
 0x1e5   : > { %11656 = vst [vmem:[#allocation96_spill] sm:$0xff] %v9417_v45  ;;  %v6859_v45 = vld [vmem:[%s11484_s3 + $0xc0] sm:$0xff]  ;;  %4580 = vmatprep.subr.mxu1 %v7906_v29  ;;  %11664 = vst [vmem:[#allocation104_spill] sm:$0xff] %v9450_v8 }
 0x1e6   : > { %v9423_v51 = vpop.f32.mrf.mxu0  ;;  %4581 = vmatpush1.msra.mxu1 %v6859_v45  ;;  %v6881_v45 = vld [vmem:[%s11484_s3 + $0x170] sm:$0xff]  ;;  %v6879_v8 = vld [vmem:[%s11484_s3 + $0x160] sm:$0xff] }
 0x1e7   : > { %11657 = vst [vmem:[#allocation97_spill] sm:$0xff] %v9423_v51  ;;  %4598 = vmatprep.subr.mxu1 %v7906_v29 }
 0x1e8   : > { %v9428_v4 = vpop.f32.mrf.mxu0 }
 0x1e9   : > { %11659 = vst [vmem:[#allocation99_spill] sm:$0xff] %v9428_v4  ;;  %v6882_v4 = vld [vmem:[%s11484_s3 + $0x178] sm:$0xff] }
 0x1ea   : > { %v9436_v19 = vpop.f32.mrf.mxu0  ;;  %4599 = vmatpush2.msra.mxu1 %v6882_v4  ;;  %v1727_v4 = vadd.f32 %v8807_v49, %v9001_v17  ;;  %v1729_v49 = vadd.f32 %v8819_v53, %v9016_v15  ;;  %v2508_v17 = vadd.f32 %v9013_v41, %v9196_v26  ;;  %v1731_v41 = vadd.f32 %v8831_v57, %v9031_v39  ;;  %v6876_v57 = vld [vmem:[%s11484_s3 + $0x148] sm:$0xff] }
 0x1eb   : > { %11660 = vst [vmem:[#allocation100_spill] sm:$0xff] %v9436_v19  ;;  %4600 = vmatprep.subr.mxu1 %v7906_v29  ;;  %v2510_v26 = vadd.f32 %v9028_v56, %v9203_v25  ;;  %v1733_v25 = vadd.f32 %v8843_v61, %v9046_v62 }
 0x1ec   : > { %v9441_v51 = vpop.f32.mrf.mxu0  ;;  %4601 = vmatpush2.msra.mxu1 %v6881_v45  ;;  %v2117_v45 = vadd.f32 %v9198_v27, %v1727_v4  ;;  %v6877_v27 = vld [vmem:[%s11484_s3 + $0x150] sm:$0xff]  ;;  %v2119_v4 = vadd.f32 %v9205_v48, %v1729_v49  ;;  %v2899_v53 = vadd.f32 %v9306_v0, %v2508_v17  ;;  %v6875_v17 = vld [vmem:[%s11484_s3 + $0x140] sm:$0xff] }
 0x1ed   : > { %11662 = vst [vmem:[#allocation102_spill] sm:$0xff] %v9441_v51  ;;  %v6880_v51 = vld [vmem:[%s11484_s3 + $0x168] sm:$0xff]  ;;  %4602 = vmatprep.subr.mxu1 %v7906_v29  ;;  %v2901_v56 = vadd.f32 %v9312_v35, %v2510_v26  ;;  %v2123_v61 = vadd.f32 %v9219_v31, %v1733_v25  ;;  %v1735_v31 = vadd.f32 %v8855_v1, %v9059_v40 }
 0x1ee   : > { %v9447_v38 = vpop.f32.mrf.mxu0  ;;  %4603 = vmatpush2.msra.mxu1 %v6880_v51  ;;  %v2509_v39 = vadd.f32 %v9038_v60, %v2119_v4  ;;  %v3289_v0 = vadd.f32 %v9304_v22, %v2899_v53  ;;  %v9550_v53 = vadd.f32 %v8711_v24, %v8805_v11  ;;  %v11670_v24 = vld [vmem:[#allocation33_spill] sm:$0xff] }
 0x1ef   : > { %11663 = vst [vmem:[#allocation103_spill] sm:$0xff] %v9447_v38  ;;  %v9465_v38 = vpop.f32.mrf.mxu1  ;;  %4604 = vmatprep.subr.mxu1 %v7906_v29  ;;  %v2513_v1 = vadd.f32 %v9082_v59, %v2123_v61  ;;  %v2125_v40 = vadd.f32 %v9226_v42, %v1735_v31  ;;  %v9562_v11 = vadd.f32 %v11670_v24, %v8817_v20  ;;  %v11671_v59 = vld [vmem:[#allocation43_spill] sm:$0xff]  ;;  %v11673_v20 = vld [vmem:[#allocation34_spill] sm:$0xff]  ;;  %v11674_v61 = vld [vmem:[#allocation45_spill] sm:$0xff] }
 0x1f0   : > { %v9452_v19 = vpop.f32.mrf.mxu0  ;;  %11667 = vst [vmem:[#allocation107_spill] sm:$0xff] %v9465_v38  ;;  %4605 = vmatpush2.msra.mxu1 %v6879_v8  ;;  %v6878_v38 = vld [vmem:[%s11484_s3 + $0x158] sm:$0xff]  ;;  %v2507_v8 = vadd.f32 %v9023_v28, %v2117_v45  ;;  %v2121_v28 = vadd.f32 %v9212_v44, %v1731_v41  ;;  %v2512_v44 = vadd.f32 %v9043_v9, %v9210_v13  ;;  %v11677_v31 = vld [vmem:[#allocation40_spill] sm:$0xff] }
 0x1f1   : > { %11665 = vst [vmem:[#allocation105_spill] sm:$0xff] %v9452_v19  ;;  %4606 = vmatprep.subr.mxu1 %v7906_v29  ;;  %v9481_v51 = vpop.f32.mrf.mxu1  ;;  %v2900_v22 = vadd.f32 %v9317_v23, %v2509_v39  ;;  %v1737_v42 = vadd.f32 %v11671_v59, %v9072_v18  ;;  %v2515_v18 = vadd.f32 %v9112_v36, %v2125_v40  ;;  %v11682_v40 = vld [vmem:[#allocation83_spill] sm:$0xff]  ;;  %v11685_v59 = vld [vmem:[#allocation17_spill] sm:$0xff] }
 0x1f2   : > { %v9460_v55 = vpop.f32.mrf.mxu0  ;;  %4607 = vmatpush2.msra.mxu1 %v6878_v38  ;;  %v9521_v38 = vld [vmem:[%s11483_s2] ss:$0 sm:$0xff]  ;;  %v2511_v49 = vadd.f32 %v9056_v37, %v2121_v28  ;;  %v2903_v62 = vadd.f32 %v9326_v47, %v2512_v44  ;;  %v2514_v47 = vadd.f32 %v9069_v32, %v9217_v12  ;;  %v11672_v44 = vld [vmem:[#allocation39_spill] sm:$0xff]  ;;  %v1739_v36 = vadd.f32 %v11674_v61, %v9085_v54 }
 0x1f3   : > { %11666 = vst [vmem:[#allocation106_spill] sm:$0xff] %v9460_v55  ;;  %4608 = vmatprep.subr.mxu1 %v7906_v29  ;;  %v9503_v45 = vpop.f32.mrf.mxu1 }
 0x1f4   : > { %v9467_v19 = vpop.f32.mrf.mxu0  ;;  %4609 = vmatpush2.msra.mxu1 %v6877_v27  ;;  %v9536_v27 = vadd.f32 %v8697_v16, %v8792_v58  ;;  %v3290_v16 = vadd.f32 %v9329_v10, %v2900_v22  ;;  %v3293_v32 = vadd.f32 %v9343_v5, %v2903_v62  ;;  %v2905_v41 = vadd.f32 %v9340_v52, %v2514_v47  ;;  %v11678_v47 = vld [vmem:[#allocation35_spill] sm:$0xff] }
 0x1f5   : > { %11668 = vst [vmem:[#allocation108_spill] sm:$0xff] %v9467_v19  ;;  %4610 = vmatprep.subr.mxu1 %v7906_v29  ;;  %v9529_v9 = vpop.f32.mrf.mxu1  ;;  %v2516_v5 = vadd.f32 %v9095_v33, %v9224_v46  ;;  %v2904_v52 = vadd.f32 %v9345_v3, %v2513_v1  ;;  %v9596_v54 = vadd.f32 %v11678_v47, %v11677_v31 }
 0x1f6   : > { %v9474_v55 = vpop.f32.mrf.mxu0  ;;  %4611 = vmatpush2.msra.mxu1 %v6876_v57  ;;  %v3295_v3 = vadd.f32 %v9367_v14, %v2905_v41 }
 0x1f7   : > { %4612 = vmatprep.subr.mxu1 %v7906_v29  ;;  %v2907_v33 = vadd.f32 %v9351_v7, %v2516_v5  ;;  %v11675_v7 = vld [vmem:[#allocation82_spill] sm:$0xff]  ;;  %v11686_v5 = vld [vmem:[#allocation53_spill] sm:$0xff] }
 0x1f8   : > { %v9483_v19 = vpop.f32.mrf.mxu0  ;;  %4613 = vmatpush2.msra.mxu1 %v6875_v17  ;;  %v2906_v62 = vadd.f32 %v11675_v7, %v2515_v18  ;;  %v11676_v17 = vld [vmem:[#allocation86_spill] sm:$0xff]  ;;  %v11689_v18 = vld [vmem:[#allocation84_spill] sm:$0xff]  ;;  %v11694_v7 = vld [vmem:[#allocation85_spill] sm:$0xff] }
 0x1f9   : > { %11669 = vst [vmem:[#allocation109_spill] sm:$0xff] %v9483_v19  ;;  %v2898_v19 = vadd.f32 %v9308_v21, %v2507_v8  ;;  %5474 = vmatprep.subr.mxu1 %v7906_v29  ;;  %v3294_v14 = vadd.f32 %v11676_v17, %v2904_v52  ;;  %v11688_v52 = vld [vmem:[#allocation92_spill] sm:$0xff] }
 0x1fa   : > { %v9496_v15 = vpop.f32.mrf.mxu0 }
 0x1fb   : > { %v3288_v60 = vadd.f32 %v9310_v43, %v2898_v19  ;;  %v3291_v43 = vadd.f32 %v9319_v34, %v2901_v56  ;;  %v2902_v19 = vadd.f32 %v9331_v63, %v2511_v49  ;;  %v9555_v63 = vpop.f32.mrf.mxu1 }
 0x1fc   : > { %v9505_v48 = vpop.f32.mrf.mxu0 }
 0x1fd   : > { %v3292_v57 = vadd.f32 %v9354_v50, %v2902_v19  ;;  %v9579_v46 = vpop.f32.mrf.mxu1  ;;  %v11679_v19 = vld [vmem:[#allocation20_spill] sm:$0xff] }
 0x1fe   : > { %v7715_v21 = vpop.f32.mrf.mxu0 }
 0x1ff   : > { %v3679_v35 = vadd.f32 %v7715_v21, %v3289_v0  ;;  %v9574_v21 = vadd.f32 %v11673_v20, %v11672_v44 }
 0x200   : > { %v3519_v13 = vpop.f32.mrf.mxu0 }
 0x201   : > { %v3718_v23 = vadd.f32 %v9521_v38, %v3679_v35  ;;  %v3678_v37 = vadd.f32 %v3519_v13, %v3288_v60  ;;  %v2127_v60 = vadd.f32 %v9233_v6, %v1737_v42  ;;  %v2518_v6 = vadd.f32 %v9124_v30, %v9231_v2  ;;  %v11680_v2 = vld [vmem:[#allocation54_spill] sm:$0xff] }
 0x202   : > { %v7718_v8 = vpop.f32.mrf.mxu0  ;;  %v1352_v42 = vadd.f32 %v11685_v59, %v9536_v27  ;;  %v11690_v27 = vld [vmem:[#allocation41_spill] sm:$0xff] }
 0x203   : > { %v3750_v58 = vmax.f32 %v3718_v23, 0.0  ;;  %v3717_v34 = vadd.f32 %v9521_v38, %v3678_v37  ;;  %v3681_v4 = vadd.f32 %v7718_v8, %v3291_v43  ;;  %v2517_v30 = vadd.f32 %v11679_v19, %v2127_v60 }
 0x204   : > { %v3529_v12 = vpop.f32.mrf.mxu0  ;;  %v2129_v8 = vadd.f32 %v11680_v2, %v1739_v36  ;;  %v11693_v36 = vld [vmem:[#allocation57_spill] sm:$0xff] }
 0x205   : > { %3784 = vst.msk [vmem:[#allocation2 + $0x21] sm:$0xff] %vm3782_vm2, %v3750_v58  ;;  %v3749_v10 = vmax.f32 %v3717_v34, 0.0  ;;  %v3720_v26 = vadd.f32 %v9521_v38, %v3681_v4  ;;  %v3680_v28 = vadd.f32 %v3529_v12, %v3290_v16  ;;  %v11681_v16 = vld [vmem:[#allocation89_spill] sm:$0xff]  ;;  %v9601_v34 = vpop.f32.mrf.mxu1  ;;  %v2908_v60 = vadd.f32 %v11689_v18, %v2517_v30  ;;  %v11696_v30 = vld [vmem:[#allocation47_spill] sm:$0xff] }
 0x206   : > { %v7721_v39 = vpop.f32.mrf.mxu0  ;;  %v3297_v58 = vadd.f32 %v11681_v16, %v2907_v33  ;;  %v1743_v2 = vadd.f32 %v11696_v30, %v1352_v42  ;;  %v11706_v18 = vld [vmem:[#allocation101_spill] sm:$0xff] }
 0x207   : > { %3783 = vst.msk [vmem:[#allocation2 + $0x19] sm:$0xff] %vm3782_vm2, %v3749_v10  ;;  %v3752_v0 = vmax.f32 %v3720_v26, 0.0  ;;  %v3719_v56 = vadd.f32 %v9521_v38, %v3680_v28  ;;  %v3683_v25 = vadd.f32 %v7721_v39, %v3293_v32  ;;  %v2909_v32 = vadd.f32 %v11682_v40, %v2518_v6  ;;  %v11683_v26 = vld [vmem:[#allocation16_spill] sm:$0xff]  ;;  %v11684_v28 = vld [vmem:[#allocation46_spill] sm:$0xff]  ;;  %v11700_v40 = vld [vmem:[#allocation87_spill] sm:$0xff] }
 0x208   : > { %v3539_v50 = vpop.f32.mrf.mxu0  ;;  %v1741_v24 = vadd.f32 %v11684_v28, %v11683_v26  ;;  %v11701_v26 = vld [vmem:[#allocation98_spill] sm:$0xff] }
 0x209   : > { %3786 = vst.msk [vmem:[#allocation2 + $0x39] sm:$0xff] %vm3782_vm2, %v3752_v0  ;;  %3816 = vst.msk [vmem:[#allocation2 + $0x9] sm:$0xff] %vm3782_vm2, %v3752_v0  ;;  %v3751_v22 = vmax.f32 %v3719_v56, 0.0  ;;  %v3722_v35 = vadd.f32 %v9521_v38, %v3683_v25  ;;  %v3682_v49 = vadd.f32 %v3539_v50, %v3292_v57  ;;  %v11687_v57 = vld [vmem:[#allocation22_spill] sm:$0xff]  ;;  %v3296_v0 = vadd.f32 %v11688_v52, %v2906_v62 }
 0x20a   : > { %v7724_v13 = vpop.f32.mrf.mxu0  ;;  %v2520_v39 = vadd.f32 %v11687_v57, %v11686_v5  ;;  %v2131_v6 = vadd.f32 %v11693_v36, %v1741_v24  ;;  %v3298_v28 = vadd.f32 %v11701_v26, %v2908_v60  ;;  %v11702_v57 = vld [vmem:[#allocation42_spill] sm:$0xff]  ;;  %v11715_v26 = vld [vmem:[#allocation63_spill] sm:$0xff] }
 0x20b   : > { %3785 = vst.msk [vmem:[#allocation2 + $0x31] sm:$0xff] %vm3782_vm2, %v3751_v22  ;;  %3815 = vst.msk [vmem:[#allocation2 + $0x1] sm:$0xff] %vm3782_vm2, %v3751_v22  ;;  %v3754_v43 = vmax.f32 %v3722_v35, 0.0  ;;  %v3721_v23 = vadd.f32 %v9521_v38, %v3682_v49  ;;  %v3685_v37 = vadd.f32 %v7724_v13, %v3295_v3  ;;  %v11691_v22 = vld [vmem:[#allocation36_spill] sm:$0xff]  ;;  %v9630_v13 = vpop.f32.mrf.mxu1 }
 0x20c   : > { %v3549_v4 = vpop.f32.mrf.mxu0  ;;  %v3858_v1 = vld [vmem:[#allocation2 + $0x27] sm:$0x1]  ;;  %v9625_v35 = vadd.f32 %v11691_v22, %v11690_v27  ;;  %v2911_v62 = vadd.f32 %v11694_v7, %v2520_v39  ;;  %v11703_v39 = vld [vmem:[#allocation37_spill] sm:$0xff] }
 0x20d   : > { %3788 = vst.msk [vmem:[#allocation2 + $0x51] sm:$0xff] %vm3782_vm2, %v3754_v43  ;;  %v3753_v12 = vmax.f32 %v3721_v23, 0.0  ;;  %v3724_v41 = vadd.f32 %v9521_v38, %v3685_v37  ;;  %v3684_v10 = vadd.f32 %v3549_v4, %v3294_v14  ;;  %v11692_v49 = vld [vmem:[#allocation24_spill] sm:$0xff]  ;;  %v11695_v43 = vld [vmem:[#allocation95_spill] sm:$0xff]  ;;  %v11699_v4 = vld [vmem:[#allocation26_spill] sm:$0xff]  ;;  %v9655_v52 = vadd.f32 %v11703_v39, %v11702_v57 }
 0x20e   : > { %3876 = vst.msk [vmem:[#allocation2 + $0x29] sm:$0x1] %vm3838_vm3, %v3858_v1  ;;  %v7727_v56 = vpop.f32.mrf.mxu0  ;;  %v4237_v25 = vld [vmem:[#allocation2 + $0x1a] sm:$0xff]  ;;  %v2519_v61 = vadd.f32 %v11692_v49, %v2129_v8  ;;  %v3299_v23 = vadd.f32 %v11695_v43, %v2909_v32  ;;  %v11697_v8 = vld [vmem:[#allocation18_spill] sm:$0xff]  ;;  %v3301_v60 = vadd.f32 %v11706_v18, %v2911_v62  ;;  %v4162_v57 = vld [vmem:[%s11484_s3 + $0x68] sm:$0xff] }
 0x20f   : > { %v9614_v44 = vld [vmem:[#allocation2 + $0x19] sm:$0xff]  ;;  %3787 = vst.msk [vmem:[#allocation2 + $0x49] sm:$0xff] %vm3782_vm2, %v3753_v12  ;;  %v3756_v33 = vmax.f32 %v3724_v41, 0.0  ;;  %v3723_v50 = vadd.f32 %v9521_v38, %v3684_v10  ;;  %v3687_v3 = vadd.f32 %v7727_v56, %v3297_v58  ;;  %6883 = vmatprep.mubr.msk.f32.mxu1 %vm3782_vm2, %v4237_v25  ;;  %v1354_v16 = vadd.f32 %v11697_v8, %v9550_v53  ;;  %v9651_v53 = vld [vmem:[#allocation2 + $0x21] sm:$0xff] }
 0x210   : > { %v3821_v20 = vld [vmem:[#allocation2 + $0x1a] sm:$0x1]  ;;  %4301 = vrot.lane.b32.xlu0 %v9614_v44, %s7907_s28  ;;  %v3559_v17 = vpop.f32.mrf.mxu0  ;;  %v3859_v14 = vld [vmem:[#allocation2 + $0x3f] sm:$0x1]  ;;  %v3857_v19 = vld [vmem:[#allocation2 + $0xf] sm:$0x1]  ;;  %v2910_v12 = vadd.f32 %v11700_v40, %v2519_v61 }
 0x211   : > { %3840 = vst.msk [vmem:[#allocation2 + $0x18] sm:$0x1] %vm3838_vm3, %v3821_v20  ;;  %v3755_v37 = vmax.f32 %v3723_v50, 0.0  ;;  %v3726_v31 = vadd.f32 %v9521_v38, %v3687_v3  ;;  %v3686_v47 = vadd.f32 %v3559_v17, %v3296_v0  ;;  %3877 = vst.msk [vmem:[#allocation2 + $0x41] sm:$0x1] %vm3838_vm3, %v3859_v14  ;;  %v11698_v58 = vld [vmem:[#allocation56_spill] sm:$0xff] }
 0x212   : > { %3790 = vst.msk [vmem:[#allocation2 + $0x69] sm:$0xff] %vm3782_vm2, %v3756_v33  ;;  %v2522_v1 = vadd.f32 %v11699_v4, %v11698_v58  ;;  %v7730_v32 = vpop.f32.mrf.mxu0  ;;  %v3957_v41 = vld [vmem:[#allocation2 + $0x2] sm:$0xff]  ;;  %v9642_v10 = vld [vmem:[#allocation2 + $0x31] sm:$0xff]  ;;  %v9660_v33 = vpop.f32.mrf.mxu1 }
 0x213   : > { %3875 = vst.msk [vmem:[#allocation2 + $0x11] sm:$0x1] %vm3838_vm3, %v3857_v19  ;;  %v3758_v24 = vmax.f32 %v3726_v31, 0.0  ;;  %v3725_v59 = vadd.f32 %v9521_v38, %v3686_v47  ;;  %v3689_v42 = vadd.f32 %v7730_v32, %v3299_v23  ;;  %6915 = vmatprep.mubr.msk.f32.mxu0 %vm3782_vm2, %v3957_v41  ;;  %4305 = vrot.lane.b32.xlu1 %v9642_v10, %s7907_s28  ;;  %v3822_v5 = vld [vmem:[#allocation2 + $0x32] sm:$0x1]  ;;  %v11704_v0 = vld [vmem:[#allocation28_spill] sm:$0xff] }
 0x214   : > { %3789 = vst.msk [vmem:[#allocation2 + $0x61] sm:$0xff] %vm3782_vm2, %v3755_v37  ;;  %v2521_v56 = vadd.f32 %v11704_v0, %v2131_v6  ;;  %v11705_v25 = vld [vmem:[#allocation60_spill] sm:$0xff]  ;;  %4303 = vrot.lane.b32.xlu0 %v9651_v53, %s7907_s28  ;;  %v3569_v50 = vpop.f32.mrf.mxu0  ;;  %v3860_v36 = vld [vmem:[#allocation2 + $0x57] sm:$0x1]  ;;  %v4164_v6 = vld [vmem:[%s11484_s3 + $0x78] sm:$0xff] }
 0x215   : > { %v2133_v20 = vadd.f32 %v11705_v25, %v1743_v2  ;;  %3841 = vst.msk [vmem:[#allocation2 + $0x30] sm:$0x1] %vm3838_vm3, %v3822_v5  ;;  %v11707_v3 = vld [vmem:[#allocation88_spill] sm:$0xff]  ;;  %v3757_v22 = vmax.f32 %v3725_v59, 0.0  ;;  %v3728_v49 = vadd.f32 %v9521_v38, %v3689_v42  ;;  %v3688_v61 = vadd.f32 %v3569_v50, %v3298_v28  ;;  %v11709_v14 = vld [vmem:[#allocation19_spill] sm:$0xff]  ;;  %v11711_v37 = vld [vmem:[#allocation30_spill] sm:$0xff]  ;;  %4872 = vmatpush1.msra.mxu0 %v4164_v6  ;;  %v9696_v42 = vpop.f32.mrf.mxu1 }
 0x216   : > { %v2913_v27 = vadd.f32 %v11707_v3, %v2522_v1  ;;  %3792 = vst.msk [vmem:[#allocation2 + $0x81] sm:$0xff] %vm3782_vm2, %v3758_v24  ;;  %v3820_v7 = vld [vmem:[#allocation2 + $0x2] sm:$0x1]  ;;  %v1356_v43 = vadd.f32 %v11709_v14, %v9562_v11  ;;  %v11710_v23 = vld [vmem:[#allocation59_spill] sm:$0xff]  ;;  %v7733_v30 = vpop.f32.mrf.mxu0  ;;  %v9679_v8 = vld [vmem:[#allocation2 + $0x49] sm:$0xff]  ;;  %4873 = vmatprep.subr.mxu0 %v7906_v29 }
 0x217   : > { %v11708_v62 = vld [vmem:[#allocation48_spill] sm:$0xff]  ;;  %v2524_v31 = vadd.f32 %v11711_v37, %v11710_v23  ;;  %v3823_v58 = vld [vmem:[#allocation2 + $0x4a] sm:$0x1]  ;;  %3878 = vst.msk [vmem:[#allocation2 + $0x59] sm:$0x1] %vm3838_vm3, %v3860_v36  ;;  %v3760_v11 = vmax.f32 %v3728_v49, 0.0  ;;  %v3727_v1 = vadd.f32 %v9521_v38, %v3688_v61  ;;  %v3691_v40 = vadd.f32 %v7733_v30, %v3301_v60 }
 0x218   : > { %v1745_v17 = vadd.f32 %v11708_v62, %v1354_v16  ;;  %v11712_v47 = vld [vmem:[#allocation104_spill] sm:$0xff]  ;;  %3839 = vst.msk [vmem:[#allocation2] sm:$0x1] %vm3838_vm3, %v3820_v7  ;;  %v11713_v16 = vld [vmem:[#allocation90_spill] sm:$0xff]  ;;  %3842 = vst.msk [vmem:[#allocation2 + $0x48] sm:$0x1] %vm3838_vm3, %v3823_v58  ;;  %4309 = vrot.lane.b32.xlu0 %v9679_v8, %s7907_s28  ;;  %v3579_v5 = vpop.f32.mrf.mxu0 }
 0x219   : > { %v3300_v19 = vadd.f32 %v11712_v47, %v2910_v12  ;;  %v9677_v2 = vld [vmem:[#allocation2 + $0x39] sm:$0xff]  ;;  %v2912_v4 = vadd.f32 %v11713_v16, %v2521_v56  ;;  %3791 = vst.msk [vmem:[#allocation2 + $0x79] sm:$0xff] %vm3782_vm2, %v3757_v22  ;;  %v4163_v12 = vld [vmem:[%s11484_s3 + $0x70] sm:$0xff]  ;;  %3794 = vst.msk [vmem:[#allocation2 + $0x99] sm:$0xff] %vm3782_vm2, %v3760_v11  ;;  %v3759_v56 = vmax.f32 %v3727_v1, 0.0  ;;  %v3730_v25 = vadd.f32 %v9521_v38, %v3691_v40  ;;  %v9732_v11 = vpop.f32.mrf.mxu1 }
 0x21a   : > { %4307 = vrot.lane.b32.xlu1 %v9677_v2, %s7907_s28  ;;  %v11714_v32 = vld [vmem:[#allocation31_spill] sm:$0xff]  ;;  %v2135_v28 = vadd.f32 %v11715_v26, %v1745_v17  ;;  %4874 = vmatpush1.msra.mxu0 %v4163_v12  ;;  %v3861_v18 = vld [vmem:[#allocation2 + $0x6f] sm:$0x1]  ;;  %v11718_v60 = vld [vmem:[#allocation10_spill] sm:$0xff] }
 0x21b   : > { %v2523_v41 = vadd.f32 %v11714_v32, %v2133_v20  ;;  %v11716_v24 = vld [vmem:[#allocation91_spill] sm:$0xff]  ;;  %v3690_v20 = vadd.f32 %v3579_v5, %v3300_v19  ;;  %4875 = vmatprep.subr.mxu0 %v7906_v29  ;;  %v1747_v50 = vadd.f32 %v11718_v60, %v1356_v43  ;;  %v11719_v3 = vld [vmem:[#allocation21_spill] sm:$0xff]  ;;  %v11720_v49 = vld [vmem:[#allocation62_spill] sm:$0xff]  ;;  %3879 = vst.msk [vmem:[#allocation2 + $0x71] sm:$0x1] %vm3838_vm3, %v3861_v18  ;;  %v3762_v43 = vmax.f32 %v3730_v25, 0.0 }
 0x21c   : > { %v2915_v59 = vadd.f32 %v11716_v24, %v2524_v31  ;;  %v11717_v39 = vld [vmem:[#allocation107_spill] sm:$0xff]  ;;  %v1358_v22 = vadd.f32 %v11719_v3, %v9574_v21  ;;  %v11721_v61 = vld [vmem:[#allocation32_spill] sm:$0xff]  ;;  %v11722_v6 = vld [vmem:[#allocation93_spill] sm:$0xff]  ;;  %4876 = vmatpush1.msra.mxu0 %v4162_v57  ;;  %v3302_v23 = vadd.f32 %v9481_v51, %v2912_v4  ;;  %3793 = vst.msk [vmem:[#allocation2 + $0x91] sm:$0xff] %vm3782_vm2, %v3759_v56 }
 0x21d   : > { %v3303_v0 = vadd.f32 %v11717_v39, %v2913_v27  ;;  %v2526_v36 = vadd.f32 %v11721_v61, %v11720_v49  ;;  %v2914_v7 = vadd.f32 %v11722_v6, %v2523_v41  ;;  %v7736_v27 = vpop.f32.mrf.mxu0  ;;  %v9713_v62 = vld [vmem:[#allocation2 + $0x51] sm:$0xff]  ;;  %v9715_v17 = vld [vmem:[#allocation2 + $0x61] sm:$0xff]  ;;  %v3729_v21 = vadd.f32 %v9521_v38, %v3690_v20  ;;  %4877 = vmatprep.subr.mxu0 %v7906_v29  ;;  %v9751_v60 = vld [vmem:[#allocation2 + $0x69] sm:$0xff] }
 0x21e   : > { %v3824_v14 = vld [vmem:[#allocation2 + $0x62] sm:$0x1]  ;;  %4311 = vrot.lane.b32.xlu1 %v9713_v62, %s7907_s28  ;;  %v11724_v47 = vld [vmem:[#allocation38_spill] sm:$0xff]  ;;  %v11725_v30 = vld [vmem:[#allocation49_spill] sm:$0xff]  ;;  %v3305_v4 = vadd.f32 %v9503_v45, %v2915_v59  ;;  %4313 = vrot.lane.b32.xlu0 %v9715_v17, %s7907_s28  ;;  %3796 = vst.msk [vmem:[#allocation2 + $0xb1] sm:$0xff] %vm3782_vm2, %v3762_v43 }
 0x21f   : > { %v3693_v37 = vadd.f32 %v7736_v27, %v3303_v0  ;;  %3843 = vst.msk [vmem:[#allocation2 + $0x60] sm:$0x1] %vm3838_vm3, %v3824_v14  ;;  %v11723_v31 = vld [vmem:[#allocation44_spill] sm:$0xff]  ;;  %v2525_v58 = vadd.f32 %v11725_v30, %v2135_v28  ;;  %v11726_v51 = vld [vmem:[#allocation66_spill] sm:$0xff]  ;;  %v3589_v1 = vpop.f32.mrf.mxu0  ;;  %v4160_v12 = vld [vmem:[%s11484_s3 + $0x58] sm:$0xff]  ;;  %v3761_v26 = vmax.f32 %v3729_v21, 0.0  ;;  %v3304_v20 = vadd.f32 %v9529_v9, %v2914_v7  ;;  %v9769_v21 = vpop.f32.mrf.mxu1 }
 0x220   : > { %v9727_v19 = vadd.f32 %v11724_v47, %v11723_v31  ;;  %v2137_v16 = vadd.f32 %v11726_v51, %v1747_v50  ;;  %v4161_v40 = vld [vmem:[%s11484_s3 + $0x60] sm:$0xff]  ;;  %v11727_v32 = vld [vmem:[#allocation94_spill] sm:$0xff]  ;;  %v3692_v28 = vadd.f32 %v3589_v1, %v3302_v23  ;;  %v11728_v59 = vld [vmem:[#allocation11_spill] sm:$0xff] }
 0x221   : > { %v2917_v41 = vadd.f32 %v11727_v32, %v2526_v36  ;;  %v3732_v45 = vadd.f32 %v9521_v38, %v3693_v37  ;;  %4878 = vmatpush1.msra.mxu0 %v4161_v40  ;;  %v3862_v24 = vld [vmem:[#allocation2 + $0x87] sm:$0x1]  ;;  %v1749_v5 = vadd.f32 %v11728_v59, %v1358_v22  ;;  %v11729_v57 = vld [vmem:[#allocation23_spill] sm:$0xff]  ;;  %v11730_v0 = vld [vmem:[#allocation65_spill] sm:$0xff]  ;;  %v7739_v18 = vpop.f32.mrf.mxu0  ;;  %3795 = vst.msk [vmem:[#allocation2 + $0xa9] sm:$0xff] %vm3782_vm2, %v3761_v26 }
 0x222   : > { %v1360_v39 = vadd.f32 %v11729_v57, %v9596_v54  ;;  %v11731_v56 = vld [vmem:[#allocation50_spill] sm:$0xff]  ;;  %v9753_v50 = vld [vmem:[#allocation2 + $0x79] sm:$0xff]  ;;  %4879 = vmatprep.subr.mxu0 %v7906_v29  ;;  %3880 = vst.msk [vmem:[#allocation2 + $0x89] sm:$0x1] %vm3838_vm3, %v3862_v24  ;;  %v3731_v61 = vadd.f32 %v9521_v38, %v3692_v28  ;;  %v3695_v36 = vadd.f32 %v7739_v18, %v3305_v4  ;;  %v11734_v27 = vld [vmem:[#allocation69_spill] sm:$0xff] }
 0x223   : > { %v2528_v25 = vadd.f32 %v11731_v56, %v11730_v0  ;;  %v3825_v3 = vld [vmem:[#allocation2 + $0x7a] sm:$0x1]  ;;  %v11732_v49 = vld [vmem:[#allocation96_spill] sm:$0xff]  ;;  %v3764_v54 = vmax.f32 %v3732_v45, 0.0  ;;  %4315 = vrot.lane.b32.xlu1 %v9751_v60, %s7907_s28  ;;  %4880 = vmatpush1.msra.mxu0 %v4160_v12  ;;  %v4159_v9 = vld [vmem:[%s11484_s3 + $0x50] sm:$0xff]  ;;  %v2139_v14 = vadd.f32 %v11734_v27, %v1749_v5  ;;  %v3599_v37 = vpop.f32.mrf.mxu0  ;;  %v3307_v47 = vadd.f32 %v9555_v63, %v2917_v41 }
 0x224   : > { %v2916_v22 = vadd.f32 %v11732_v49, %v2525_v58  ;;  %3844 = vst.msk [vmem:[#allocation2 + $0x78] sm:$0x1] %vm3838_vm3, %v3825_v3  ;;  %v11733_v6 = vld [vmem:[#allocation51_spill] sm:$0xff]  ;;  %v11735_v23 = vld [vmem:[#allocation97_spill] sm:$0xff]  ;;  %4317 = vrot.lane.b32.xlu0 %v9753_v50, %s7907_s28  ;;  %4881 = vmatprep.subr.mxu0 %v7906_v29  ;;  %v3763_v30 = vmax.f32 %v3731_v61, 0.0  ;;  %v3734_v58 = vadd.f32 %v9521_v38, %v3695_v36  ;;  %v11736_v4 = vld [vmem:[#allocation12_spill] sm:$0xff]  ;;  %v9804_v49 = vpop.f32.mrf.mxu1 }
 0x225   : > { %v2527_v7 = vadd.f32 %v11733_v6, %v2137_v16  ;;  %v2919_v43 = vadd.f32 %v11735_v23, %v2528_v25  ;;  %v3863_v31 = vld [vmem:[#allocation2 + $0x9f] sm:$0x1]  ;;  %3798 = vst.msk [vmem:[#allocation2 + $0xc9] sm:$0xff] %vm3782_vm2, %v3764_v54  ;;  %v3694_v51 = vadd.f32 %v3599_v37, %v3304_v20  ;;  %4882 = vmatpush1.msra.mxu0 %v4159_v9  ;;  %v4158_v16 = vld [vmem:[%s11484_s3 + $0x48] sm:$0xff]  ;;  %v11738_v32 = vld [vmem:[#allocation68_spill] sm:$0xff]  ;;  %v7742_v28 = vpop.f32.mrf.mxu0 }
 0x226   : > { %3881 = vst.msk [vmem:[#allocation2 + $0xa1] sm:$0x1] %vm3838_vm3, %v3863_v31  ;;  %v1751_v1 = vadd.f32 %v11736_v4, %v1360_v39  ;;  %v11737_v40 = vld [vmem:[#allocation25_spill] sm:$0xff]  ;;  %v11739_v63 = vld [vmem:[#allocation52_spill] sm:$0xff]  ;;  %v11740_v26 = vld [vmem:[#allocation99_spill] sm:$0xff]  ;;  %4883 = vmatprep.subr.mxu0 %v7906_v29  ;;  %v3306_v57 = vadd.f32 %v9579_v46, %v2916_v22  ;;  %v3766_v39 = vmax.f32 %v3734_v58, 0.0  ;;  %v3697_v0 = vadd.f32 %v7742_v28, %v3307_v47 }
 0x227   : > { %v1362_v12 = vadd.f32 %v11737_v40, %v9625_v35  ;;  %v2530_v41 = vadd.f32 %v11739_v63, %v11738_v32  ;;  %v2918_v45 = vadd.f32 %v11740_v26, %v2527_v7  ;;  %v9787_v24 = vld [vmem:[#allocation2 + $0x81] sm:$0xff]  ;;  %v9789_v59 = vld [vmem:[#allocation2 + $0x91] sm:$0xff]  ;;  %3797 = vst.msk [vmem:[#allocation2 + $0xc1] sm:$0xff] %vm3782_vm2, %v3763_v30  ;;  %v3733_v35 = vadd.f32 %v9521_v38, %v3694_v51  ;;  %v3609_v22 = vpop.f32.mrf.mxu0  ;;  %v9822_v51 = vld [vmem:[#allocation2 + $0x99] sm:$0xff] }
 0x228   : > { %v3826_v5 = vld [vmem:[#allocation2 + $0x92] sm:$0x1]  ;;  %4319 = vrot.lane.b32.xlu1 %v9787_v24, %s7907_s28  ;;  %4884 = vmatpush1.msra.mxu0 %v4158_v16  ;;  %v4157_v56 = vld [vmem:[%s11484_s3 + $0x40] sm:$0xff]  ;;  %v11741_v25 = vld [vmem:[#allocation55_spill] sm:$0xff]  ;;  %v3309_v3 = vadd.f32 %v9601_v34, %v2919_v43  ;;  %3800 = vst.msk [vmem:[#allocation2 + $0xe1] sm:$0xff] %vm3782_vm2, %v3766_v39  ;;  %v3736_v6 = vadd.f32 %v9521_v38, %v3697_v0 }
 0x229   : > { %3845 = vst.msk [vmem:[#allocation2 + $0x90] sm:$0x1] %vm3838_vm3, %v3826_v5  ;;  %v2529_v20 = vadd.f32 %v11741_v25, %v2139_v14  ;;  %v11742_v18 = vld [vmem:[#allocation72_spill] sm:$0xff]  ;;  %4321 = vrot.lane.b32.xlu0 %v9789_v59, %s7907_s28  ;;  %4885 = vmatprep.subr.mxu0 %v7906_v29  ;;  %v3864_v54 = vld [vmem:[#allocation2 + $0xb7] sm:$0x1]  ;;  %v3765_v9 = vmax.f32 %v3733_v35, 0.0  ;;  %v3696_v7 = vadd.f32 %v3609_v22, %v3306_v57  ;;  %v7745_v58 = vpop.f32.mrf.mxu0  ;;  %v9839_v57 = vpop.f32.mrf.mxu1 }
 0x22a   : > { %v2141_v46 = vadd.f32 %v11742_v18, %v1751_v1  ;;  %v11743_v61 = vld [vmem:[#allocation100_spill] sm:$0xff]  ;;  %4886 = vmatpush1.msra.mxu0 %v4157_v56  ;;  %v4156_v34 = vld [vmem:[%s11484_s3 + $0x38] sm:$0xff]  ;;  %3882 = vst.msk [vmem:[#allocation2 + $0xb9] sm:$0x1] %vm3838_vm3, %v3864_v54  ;;  %v11744_v27 = vld [vmem:[#allocation13_spill] sm:$0xff]  ;;  %v3308_v30 = vadd.f32 %v9630_v13, %v2918_v45  ;;  %v3699_v32 = vadd.f32 %v7745_v58, %v3309_v3 }
 0x22b   : > { %v2921_v36 = vadd.f32 %v11743_v61, %v2530_v41  ;;  %v1753_v14 = vadd.f32 %v11744_v27, %v1362_v12  ;;  %v11745_v23 = vld [vmem:[#allocation27_spill] sm:$0xff]  ;;  %v11747_v31 = vld [vmem:[#allocation58_spill] sm:$0xff]  ;;  %v3827_v4 = vld [vmem:[#allocation2 + $0xaa] sm:$0x1]  ;;  %4887 = vmatprep.subr.mxu0 %v7906_v29  ;;  %3799 = vst.msk [vmem:[#allocation2 + $0xd9] sm:$0xff] %vm3782_vm2, %v3765_v9  ;;  %v3768_v12 = vmax.f32 %v3736_v6, 0.0  ;;  %v3619_v39 = vpop.f32.mrf.mxu0 }
 0x22c   : > { %v1364_v43 = vadd.f32 %v11745_v23, %v9655_v52  ;;  %v11746_v37 = vld [vmem:[#allocation71_spill] sm:$0xff]  ;;  %v9824_v16 = vld [vmem:[#allocation2 + $0xa9] sm:$0xff]  ;;  %v3735_v52 = vadd.f32 %v9521_v38, %v3696_v7  ;;  %4323 = vrot.lane.b32.xlu1 %v9822_v51, %s7907_s28  ;;  %3846 = vst.msk [vmem:[#allocation2 + $0xa8] sm:$0x1] %vm3838_vm3, %v3827_v4  ;;  %4888 = vmatpush1.msra.mxu0 %v4156_v34 }
 0x22d   : > { %v2532_v47 = vadd.f32 %v11747_v31, %v11746_v37  ;;  %v11748_v1 = vld [vmem:[#allocation102_spill] sm:$0xff]  ;;  %v11749_v63 = vld [vmem:[#allocation61_spill] sm:$0xff]  ;;  %v11750_v26 = vld [vmem:[#allocation75_spill] sm:$0xff]  ;;  %4325 = vrot.lane.b32.xlu0 %v9824_v16, %s7907_s28  ;;  %4889 = vmatprep.subr.mxu0 %v7906_v29  ;;  %v3311_v0 = vadd.f32 %v9660_v33, %v2921_v36  ;;  %3802 = vst.msk [vmem:[#allocation2 + $0xf9] sm:$0xff] %vm3782_vm2, %v3768_v12  ;;  %v7748_v7 = vpop.f32.mrf.mxu0 }
 0x22e   : > { %v2920_v40 = vadd.f32 %v11748_v1, %v2529_v20  ;;  %v4155_v13 = vld [vmem:[%s11484_s3 + $0x30] sm:$0xff]  ;;  %v2531_v41 = vadd.f32 %v11749_v63, %v2141_v46  ;;  %v2143_v45 = vadd.f32 %v11750_v26, %v1753_v14  ;;  %v11751_v28 = vld [vmem:[#allocation103_spill] sm:$0xff]  ;;  %v3865_v35 = vld [vmem:[#allocation2 + $0xcf] sm:$0x1]  ;;  %v3767_v56 = vmax.f32 %v3735_v52, 0.0  ;;  %v9874_v1 = vpop.f32.mrf.mxu1 }
 0x22f   : > { %v2923_v5 = vadd.f32 %v11751_v28, %v2532_v47  ;;  %v3738_v25 = vadd.f32 %v9521_v38, %v3699_v32  ;;  %v3698_v20 = vadd.f32 %v3619_v39, %v3308_v30  ;;  %4890 = vmatpush1.msra.mxu0 %v4155_v13  ;;  %v4154_v18 = vld [vmem:[%s11484_s3 + $0x28] sm:$0xff]  ;;  %3883 = vst.msk [vmem:[#allocation2 + $0xd1] sm:$0x1] %vm3838_vm3, %v3865_v35  ;;  %v11752_v46 = vld [vmem:[#allocation14_spill] sm:$0xff]  ;;  %v11755_v33 = vld [vmem:[#allocation64_spill] sm:$0xff] }
 0x230   : > { %v1755_v3 = vadd.f32 %v11752_v46, %v1364_v43  ;;  %v11753_v22 = vld [vmem:[#allocation29_spill] sm:$0xff]  ;;  %v11754_v61 = vld [vmem:[#allocation74_spill] sm:$0xff]  ;;  %v3828_v14 = vld [vmem:[#allocation2 + $0xc2] sm:$0x1]  ;;  %4891 = vmatprep.subr.mxu0 %v7906_v29  ;;  %v3310_v23 = vadd.f32 %v9696_v42, %v2920_v40  ;;  %3801 = vst.msk [vmem:[#allocation2 + $0xf1] sm:$0xff] %vm3782_vm2, %v3767_v56  ;;  %v3701_v37 = vadd.f32 %v7748_v7, %v3311_v0  ;;  %v3629_v40 = vpop.f32.mrf.mxu0  ;;  %v3269_v7 = vpop.f32.mrf.mxu1 }
 0x231   : > { %v1366_v54 = vadd.f32 %v11753_v22, %v9727_v19  ;;  %v2534_v36 = vadd.f32 %v11755_v33, %v11754_v61  ;;  %v11756_v9 = vld [vmem:[#allocation105_spill] sm:$0xff]  ;;  %v9857_v34 = vld [vmem:[#allocation2 + $0xb1] sm:$0xff]  ;;  %v3770_v43 = vmax.f32 %v3738_v25, 0.0  ;;  %v3737_v19 = vadd.f32 %v9521_v38, %v3698_v20  ;;  %3847 = vst.msk [vmem:[#allocation2 + $0xc0] sm:$0x1] %vm3838_vm3, %v3828_v14  ;;  %4892 = vmatpush1.msra.mxu0 %v4154_v18  ;;  %v4153_v31 = vld [vmem:[%s11484_s3 + $0x20] sm:$0xff] }
 0x232   : > { %v2922_v6 = vadd.f32 %v11756_v9, %v2531_v41  ;;  %v9859_v27 = vld [vmem:[#allocation2 + $0xc1] sm:$0xff]  ;;  %4327 = vrot.lane.b32.xlu1 %v9857_v34, %s7907_s28  ;;  %v11757_v47 = vld [vmem:[#allocation67_spill] sm:$0xff]  ;;  %v11758_v58 = vld [vmem:[#allocation78_spill] sm:$0xff]  ;;  %v3313_v4 = vadd.f32 %v9732_v11, %v2923_v5  ;;  %4893 = vmatprep.subr.mxu0 %v7906_v29  ;;  %v3740_v13 = vadd.f32 %v9521_v38, %v3701_v37  ;;  %v7751_v0 = vpop.f32.mrf.mxu0 }
 0x233   : > { %v2533_v30 = vadd.f32 %v11757_v47, %v2143_v45  ;;  %v2145_v42 = vadd.f32 %v11758_v58, %v1755_v3  ;;  %4329 = vrot.lane.b32.xlu0 %v9859_v27, %s7907_s28  ;;  %v11759_v12 = vld [vmem:[#allocation106_spill] sm:$0xff]  ;;  %3804 = vst.msk [vmem:[#allocation2 + $0x111] sm:$0xff] %vm3782_vm2, %v3770_v43  ;;  %v3769_v32 = vmax.f32 %v3737_v19, 0.0  ;;  %v3700_v63 = vadd.f32 %v3629_v40, %v3310_v23  ;;  %v4152_v11 = vld [vmem:[%s11484_s3 + $0x18] sm:$0xff]  ;;  %v3866_v41 = vld [vmem:[#allocation2 + $0xe7] sm:$0x1] }
 0x234   : > { %v2925_v52 = vadd.f32 %v11759_v12, %v2534_v36  ;;  %4894 = vmatpush1.msra.mxu0 %v4153_v31  ;;  %v11760_v26 = vld [vmem:[#allocation15_spill] sm:$0xff]  ;;  %v11761_v28 = vld [vmem:[#allocation77_spill] sm:$0xff]  ;;  %v11762_v5 = vld [vmem:[#allocation70_spill] sm:$0xff]  ;;  %v3312_v35 = vadd.f32 %v9769_v21, %v2922_v6  ;;  %3884 = vst.msk [vmem:[#allocation2 + $0xe9] sm:$0x1] %vm3838_vm3, %v3866_v41  ;;  %v3772_v3 = vmax.f32 %v3740_v13, 0.0  ;;  %v3639_v14 = vpop.f32.mrf.mxu0 }
 0x235   : > { %v1757_v45 = vadd.f32 %v11760_v26, %v1366_v54  ;;  %v2536_v39 = vadd.f32 %v11762_v5, %v11761_v28  ;;  %v9889_v56 = vld [vmem:[#allocation2 + $0xc9] sm:$0xff]  ;;  %v9891_v25 = vld [vmem:[#allocation2 + $0xd9] sm:$0xff]  ;;  %4895 = vmatprep.subr.mxu0 %v7906_v29  ;;  %3803 = vst.msk [vmem:[#allocation2 + $0x109] sm:$0xff] %vm3782_vm2, %v3769_v32  ;;  %v3739_v22 = vadd.f32 %v9521_v38, %v3700_v63  ;;  %v9919_v12 = vld [vmem:[#allocation2 + $0xe1] sm:$0xff]  ;;  %v7710_v28 = vpop.f32.mrf.mxu1 }
 0x236   : > { %v3829_v20 = vld [vmem:[#allocation2 + $0xda] sm:$0x1]  ;;  %v11763_v18 = vld [vmem:[#allocation108_spill] sm:$0xff]  ;;  %v3703_v54 = vadd.f32 %v7751_v0, %v3313_v4  ;;  %4331 = vrot.lane.b32.xlu1 %v9889_v56, %s7907_s28  ;;  %4896 = vmatpush1.msra.mxu0 %v4152_v11  ;;  %v4151_v21 = vld [vmem:[%s11484_s3 + $0x10] sm:$0xff]  ;;  %v3315_v23 = vadd.f32 %v9804_v49, %v2925_v52  ;;  %3806 = vst.msk [vmem:[#allocation2 + $0x129] sm:$0xff] %vm3782_vm2, %v3772_v3  ;;  %v7754_v40 = vpop.f32.mrf.mxu0 }
 0x237   : > { %v2924_v46 = vadd.f32 %v11763_v18, %v2533_v30  ;;  %3848 = vst.msk [vmem:[#allocation2 + $0xd8] sm:$0x1] %vm3838_vm3, %v3829_v20  ;;  %v11764_v61 = vld [vmem:[#allocation73_spill] sm:$0xff]  ;;  %v2927_v6 = vadd.f32 %v9474_v55, %v2536_v39  ;;  %4333 = vrot.lane.b32.xlu0 %v9891_v25, %s7907_s28  ;;  %4897 = vmatprep.subr.mxu0 %v7906_v29  ;;  %v3771_v43 = vmax.f32 %v3739_v22, 0.0  ;;  %v3867_v31 = vld [vmem:[#allocation2 + $0xff] sm:$0x1] }
 0x238   : > { %v2535_v33 = vadd.f32 %v11764_v61, %v2145_v42  ;;  %v11765_v36 = vld [vmem:[#allocation81_spill] sm:$0xff]  ;;  %v3742_v19 = vadd.f32 %v9521_v38, %v3703_v54  ;;  %v3702_v37 = vadd.f32 %v3639_v14, %v3312_v35  ;;  %4898 = vmatpush1.msra.mxu0 %v4151_v21  ;;  %v11766_v47 = vld [vmem:[#allocation80_spill] sm:$0xff]  ;;  %v9921_v49 = vld [vmem:[#allocation2 + $0xf1] sm:$0xff]  ;;  %3885 = vst.msk [vmem:[#allocation2 + $0x101] sm:$0x1] %vm3838_vm3, %v3867_v31  ;;  %v3649_v5 = vpop.f32.mrf.mxu0 }
 0x239   : > { %v2147_v9 = vadd.f32 %v11765_v36, %v1757_v45  ;;  %v4150_v55 = vld [vmem:[%s11484_s3 + $0x8] sm:$0xff]  ;;  %v11767_v30 = vld [vmem:[#allocation76_spill] sm:$0xff]  ;;  %v3830_v52 = vld [vmem:[#allocation2 + $0xf2] sm:$0x1]  ;;  %4899 = vmatprep.subr.mxu0 %v7906_v29  ;;  %v3314_v32 = vadd.f32 %v9839_v57, %v2924_v46  ;;  %3805 = vst.msk [vmem:[#allocation2 + $0x121] sm:$0xff] %vm3782_vm2, %v3771_v43  ;;  %v3705_v11 = vadd.f32 %v7754_v40, %v3315_v23 }
 0x23a   : > { %v2538_v58 = vadd.f32 %v11767_v30, %v11766_v47  ;;  %v11768_v42 = vld [vmem:[#allocation109_spill] sm:$0xff]  ;;  %v3774_v13 = vmax.f32 %v3742_v19, 0.0  ;;  %v3741_v63 = vadd.f32 %v9521_v38, %v3702_v37  ;;  %4335 = vrot.lane.b32.xlu1 %v9919_v12, %s7907_s28  ;;  %3849 = vst.msk [vmem:[#allocation2 + $0xf0] sm:$0x1] %vm3838_vm3, %v3830_v52  ;;  %4900 = vmatpush1.msra.mxu0 %v4150_v55  ;;  %v4149_v41 = vld [vmem:[%s11484_s3] sm:$0xff]  ;;  %v11769_v26 = vld [vmem:[#allocation79_spill] sm:$0xff]  ;;  %v7757_v3 = vpop.f32.mrf.mxu0 }
 0x23b   : > { %v2926_v4 = vadd.f32 %v11768_v42, %v2535_v33  ;;  %v2537_v45 = vadd.f32 %v11769_v26, %v2147_v9  ;;  %v3317_v57 = vadd.f32 %v9874_v1, %v2927_v6  ;;  %4337 = vrot.lane.b32.xlu0 %v9921_v49, %s7907_s28  ;;  %4901 = vmatprep.subr.mxu0 %v7906_v29  ;;  %v3868_v39 = vld [vmem:[#allocation2 + $0x117] sm:$0x1]  ;;  %v4172_v1 = vld [vmem:[%s11484_s3 + $0xb8] sm:$0xff]  ;;  %v3279_v6 = vpop.f32.mrf.mxu1  ;;  %v4170_v37 = vld [vmem:[%s11484_s3 + $0xa8] sm:$0xff] }
 0x23c   : > { %v2929_v35 = vadd.f32 %v9496_v15, %v2538_v58  ;;  %3808 = vst.msk [vmem:[#allocation2 + $0x141] sm:$0xff] %vm3782_vm2, %v3774_v13  ;;  %v3773_v0 = vmax.f32 %v3741_v63, 0.0  ;;  %v3744_v20 = vadd.f32 %v9521_v38, %v3705_v11  ;;  %v3704_v18 = vadd.f32 %v3649_v5, %v3314_v32  ;;  %4902 = vmatpush1.msra.mxu0 %v4149_v41  ;;  %v9946_v22 = vld [vmem:[#allocation2 + $0xf9] sm:$0xff]  ;;  %v9948_v54 = vld [vmem:[#allocation2 + $0x109] sm:$0xff]  ;;  %v9969_v31 = vld [vmem:[#allocation2 + $0x111] sm:$0xff] }
 0x23d   : > { %3886 = vst.msk [vmem:[#allocation2 + $0x119] sm:$0x1] %vm3838_vm3, %v3868_v39  ;;  %v3316_v46 = vadd.f32 %v3269_v7, %v2926_v4  ;;  %v3831_v15 = vld [vmem:[#allocation2 + $0x10a] sm:$0x1]  ;;  %4919 = vmatprep.subr.mxu0 %v7906_v29  ;;  %v2928_v21 = vadd.f32 %v9505_v48, %v2537_v45  ;;  %v3707_v36 = vadd.f32 %v7757_v3, %v3317_v57  ;;  %v4171_v9 = vld [vmem:[%s11484_s3 + $0xb0] sm:$0xff]  ;;  %v3659_v48 = vpop.f32.mrf.mxu0  ;;  %v4169_v52 = vld [vmem:[%s11484_s3 + $0xa0] sm:$0xff] }
 0x23e   : > { %3807 = vst.msk [vmem:[#allocation2 + $0x139] sm:$0xff] %vm3782_vm2, %v3773_v0  ;;  %v3776_v61 = vmax.f32 %v3744_v20, 0.0  ;;  %v3743_v33 = vadd.f32 %v9521_v38, %v3704_v18  ;;  %4339 = vrot.lane.b32.xlu1 %v9946_v22, %s7907_s28  ;;  %4920 = vmatpush2.msra.mxu0 %v4172_v1  ;;  %v3869_v7 = vld [vmem:[#allocation2 + $0x12f] sm:$0x1]  ;;  %v3319_v14 = vadd.f32 %v7710_v28, %v2929_v35  ;;  %v4168_v41 = vld [vmem:[%s11484_s3 + $0x98] sm:$0xff]  ;;  %v4167_v35 = vld [vmem:[%s11484_s3 + $0x90] sm:$0xff] }
 0x23f   : > { %3850 = vst.msk [vmem:[#allocation2 + $0x108] sm:$0x1] %vm3838_vm3, %v3831_v15  ;;  %4341 = vrot.lane.b32.xlu0 %v9948_v54, %s7907_s28  ;;  %4921 = vmatprep.subr.mxu0 %v7906_v29  ;;  %v3746_v43 = vadd.f32 %v9521_v38, %v3707_v36  ;;  %v3706_v19 = vadd.f32 %v3659_v48, %v3316_v46  ;;  %3887 = vst.msk [vmem:[#allocation2 + $0x131] sm:$0x1] %vm3838_vm3, %v3869_v7  ;;  %v7760_v55 = vpop.f32.mrf.mxu0  ;;  %v9991_v45 = vld [vmem:[#allocation2 + $0x129] sm:$0xff]  ;;  %v4165_v3 = vld [vmem:[%s11484_s3 + $0x80] sm:$0xff] }
 0x240   : > { %3810 = vst.msk [vmem:[#allocation2 + $0x159] sm:$0xff] %vm3782_vm2, %v3776_v61  ;;  %v3775_v23 = vmax.f32 %v3743_v33, 0.0  ;;  %4922 = vmatpush2.msra.mxu0 %v4171_v9  ;;  %v9971_v47 = vld [vmem:[#allocation2 + $0x121] sm:$0xff]  ;;  %v3318_v58 = vadd.f32 %v3279_v6, %v2928_v21  ;;  %v3709_v40 = vadd.f32 %v7760_v55, %v3319_v14 }
 0x241   : > { %v3832_v30 = vld [vmem:[#allocation2 + $0x122] sm:$0x1]  ;;  %4923 = vmatprep.subr.mxu0 %v7906_v29  ;;  %v3778_v42 = vmax.f32 %v3746_v43, 0.0  ;;  %v3745_v4 = vadd.f32 %v9521_v38, %v3706_v19  ;;  %v3669_v32 = vpop.f32.mrf.mxu0  ;;  %v3926_v19 = vld [vmem:[#allocation2 + $0x9] sm:$0xff] }
 0x242   : > { %3809 = vst.msk [vmem:[#allocation2 + $0x151] sm:$0xff] %vm3782_vm2, %v3775_v23  ;;  %4343 = vrot.lane.b32.xlu1 %v9969_v31, %s7907_s28  ;;  %4924 = vmatpush2.msra.mxu0 %v4170_v37  ;;  %v3748_v63 = vadd.f32 %v9521_v38, %v3709_v40  ;;  %v3708_v11 = vadd.f32 %v3669_v32, %v3318_v58  ;;  %v3925_v43 = vld [vmem:[#allocation2 + $0x1] sm:$0xff] }
 0x243   : > { %3851 = vst.msk [vmem:[#allocation2 + $0x120] sm:$0x1] %vm3838_vm3, %v3832_v30  ;;  %4345 = vrot.lane.b32.xlu0 %v9971_v47, %s7907_s28  ;;  %4925 = vmatprep.subr.mxu0 %v7906_v29  ;;  %v3777_v13 = vmax.f32 %v3745_v4, 0.0  ;;  %v3870_v26 = vld [vmem:[#allocation2 + $0x147] sm:$0x1]  ;;  %v10141_v30 = vld [vmem:[#allocation2 + $0x30] sm:$0xff] }
 0x244   : > { %3812 = vst.msk [vmem:[#allocation2 + $0x171] sm:$0xff] %vm3782_vm2, %v3778_v42  ;;  %3819 = vst.msk [vmem:[#allocation2 + $0x1a1] sm:$0xff] %vm3782_vm2, %v3778_v42  ;;  %4926 = vmatpush2.msra.mxu0 %v4169_v52  ;;  %v3780_v5 = vmax.f32 %v3748_v63, 0.0  ;;  %v3747_v39 = vadd.f32 %v9521_v38, %v3708_v11  ;;  %v4166_v38 = vld [vmem:[%s11484_s3 + $0x88] sm:$0xff]  ;;  %v6959_v37 = vld [vmem:[%s11484_s3 + $0x1e0] sm:$0xff] }
 0x245   : > { %v9993_v57 = vld [vmem:[#allocation2 + $0x139] sm:$0xff]  ;;  %4927 = vmatprep.subr.mxu0 %v7906_v29  ;;  %3888 = vst.msk [vmem:[#allocation2 + $0x149] sm:$0x1] %vm3838_vm3, %v3870_v26  ;;  %v10013_v18 = vld [vmem:[#allocation2 + $0x141] sm:$0xff]  ;;  %v10170_v63 = vld [vmem:[#allocation2 + $0x4a] sm:$0xff] }
 0x246   : > { %v3833_v28 = vld [vmem:[#allocation2 + $0x13a] sm:$0x1]  ;;  %3811 = vst.msk [vmem:[#allocation2 + $0x169] sm:$0xff] %vm3782_vm2, %v3777_v13  ;;  %3818 = vst.msk [vmem:[#allocation2 + $0x199] sm:$0xff] %vm3782_vm2, %v3777_v13  ;;  %4347 = vrot.lane.b32.xlu1 %v9991_v45, %s7907_s28  ;;  %4928 = vmatpush2.msra.mxu0 %v4168_v41  ;;  %v3779_v0 = vmax.f32 %v3747_v39, 0.0  ;;  %v6957_v13 = vld [vmem:[%s11484_s3 + $0x1d0] sm:$0xff] }
 0x247   : > { %3852 = vst.msk [vmem:[#allocation2 + $0x138] sm:$0x1] %vm3838_vm3, %v3833_v28  ;;  %4349 = vrot.lane.b32.xlu0 %v9993_v57, %s7907_s28  ;;  %4929 = vmatprep.subr.mxu0 %v7906_v29  ;;  %v3871_v20 = vld [vmem:[#allocation2 + $0x15f] sm:$0x1]  ;;  %v6956_v11 = vld [vmem:[%s11484_s3 + $0x1c8] sm:$0xff]  ;;  %v10189_v39 = vld [vmem:[#allocation2 + $0x52] sm:$0xff] }
 0x248   : > { %3814 = vst.msk [vmem:[#allocation2 + $0x189] sm:$0xff] %vm3782_vm2, %v3780_v5  ;;  %4930 = vmatpush2.msra.mxu0 %v4167_v35  ;;  %3813 = vst.msk [vmem:[#allocation2 + $0x181] sm:$0xff] %vm3782_vm2, %v3779_v0  ;;  %v10029_v21 = vld [vmem:[#allocation2 + $0x159] sm:$0xff]  ;;  %v10177_v26 = vld [vmem:[#allocation2 + $0x48] sm:$0xff] }
 0x249   : > { %v10015_v1 = vld [vmem:[#allocation2 + $0x151] sm:$0xff]  ;;  %4931 = vmatprep.subr.mxu0 %v7906_v29  ;;  %3889 = vst.msk [vmem:[#allocation2 + $0x161] sm:$0x1] %vm3838_vm3, %v3871_v20  ;;  %v10153_v4 = vld [vmem:[#allocation2 + $0x3a] sm:$0xff] }
 0x24a   : > { %v3834_v46 = vld [vmem:[#allocation2 + $0x152] sm:$0x1]  ;;  %4351 = vrot.lane.b32.xlu1 %v10013_v18, %s7907_s28  ;;  %4932 = vmatpush2.msra.mxu0 %v4166_v38  ;;  %v6958_v42 = vld [vmem:[%s11484_s3 + $0x1d8] sm:$0xff]  ;;  %v6955_v5 = vld [vmem:[%s11484_s3 + $0x1c0] sm:$0xff] }
 0x24b   : > { %3853 = vst.msk [vmem:[#allocation2 + $0x150] sm:$0x1] %vm3838_vm3, %v3834_v46  ;;  %4353 = vrot.lane.b32.xlu0 %v10015_v1, %s7907_s28  ;;  %4933 = vmatprep.subr.mxu0 %v7906_v29  ;;  %v3872_v15 = vld [vmem:[#allocation2 + $0x177] sm:$0x1]  ;;  %v3874_v14 = vld [vmem:[#allocation2 + $0x1a7] sm:$0x1] }
 0x24c   : > { %4934 = vmatpush2.msra.mxu0 %v4165_v3  ;;  %3890 = vst.msk [vmem:[#allocation2 + $0x179] sm:$0x1] %vm3838_vm3, %v3872_v15  ;;  %v10040_v6 = vld [vmem:[#allocation2 + $0x171] sm:$0xff]  ;;  %3892 = vst.msk [vmem:[#allocation2 + $0x1a9] sm:$0x1] %vm3838_vm3, %v3874_v14  ;;  %v10208_v46 = vld [vmem:[#allocation2 + $0x62] sm:$0xff] }
 0x24d   : > { %v10031_v61 = vld [vmem:[#allocation2 + $0x169] sm:$0xff]  ;;  %v3837_v9 = vld [vmem:[#allocation2 + $0x19a] sm:$0x1] }
 0x24e   : > { %v3835_v33 = vld [vmem:[#allocation2 + $0x16a] sm:$0x1]  ;;  %4355 = vrot.lane.b32.xlu1 %v10029_v21, %s7907_s28  ;;  %3856 = vst.msk [vmem:[#allocation2 + $0x198] sm:$0x1] %vm3838_vm3, %v3837_v9  ;;  %v10158_v52 = vld [vmem:[#allocation2 + $0x38] sm:$0xff]  ;;  %v10194_v0 = vld [vmem:[#allocation2 + $0x50] sm:$0xff] }
 0x24f   : > { %3854 = vst.msk [vmem:[#allocation2 + $0x168] sm:$0x1] %vm3838_vm3, %v3835_v33  ;;  %4357 = vrot.lane.b32.xlu0 %v10031_v61, %s7907_s28  ;;  %v3873_v36 = vld [vmem:[#allocation2 + $0x18f] sm:$0x1]  ;;  %v10042_v48 = vld [vmem:[#allocation2 + $0x181] sm:$0xff]  ;;  %v6954_v20 = vld [vmem:[%s11484_s3 + $0x1b8] sm:$0xff] }
 0x250   : > { %3891 = vst.msk [vmem:[#allocation2 + $0x191] sm:$0x1] %vm3838_vm3, %v3873_v36  ;;  %v3836_v7 = vld [vmem:[#allocation2 + $0x182] sm:$0x1]  ;;  %v10051_v23 = vld [vmem:[#allocation2 + $0x189] sm:$0xff] }
 0x251   : > { %3855 = vst.msk [vmem:[#allocation2 + $0x180] sm:$0x1] %vm3838_vm3, %v3836_v7  ;;  %v6953_v3 = vld [vmem:[%s11484_s3 + $0x1b0] sm:$0xff]  ;;  %v10217_v33 = vld [vmem:[#allocation2 + $0x60] sm:$0xff]  ;;  %v6952_v9 = vld [vmem:[%s11484_s3 + $0x1a8] sm:$0xff] }
 0x252   : > { %4359 = vrot.lane.b32.xlu1 %v10040_v6, %s7907_s28  ;;  %v10231_v7 = vld [vmem:[#allocation2 + $0x6a] sm:$0xff] }
 0x253   : > { %4361 = vrot.lane.b32.xlu0 %v10042_v48, %s7907_s28 }
 0x256   : > { %4363 = vrot.lane.b32.xlu1 %v10051_v23, %s7907_s28 }
 0x257   : > { %4021 = vrot.lane.b32.xlu0 %v3925_v43, %s7907_s28  ;;  %v10238_v43 = vld [vmem:[#allocation2 + $0x68] sm:$0xff] }
 0x25a   : > { %5225 = vrot.lane.b32.xlu1 %v9642_v10, %s7907_s28 }
 0x25b   : > { %4023 = vrot.lane.b32.xlu0 %v3926_v19, %s7907_s28 }
 0x25e   : > { %5227 = vrot.lane.b32.xlu1 %v9677_v2, %s7907_s28 }
 0x25f   : > { %4025 = vrot.lane.b32.xlu0 %v9614_v44, %s7907_s28 }
 0x262   : > { %5229 = vrot.lane.b32.xlu1 %v9679_v8, %s7907_s28 }
 0x263   : > { %4027 = vrot.lane.b32.xlu0 %v9651_v53, %s7907_s28  ;;  %v6962_v53 = vld [vmem:[%s11484_s3 + $0x1f8] sm:$0xff] }
 0x266   : > { %5231 = vrot.lane.b32.xlu1 %v9713_v62, %s7907_s28 }
 0x267   : > { %4029 = vrot.lane.b32.xlu0 %v9642_v10, %s7907_s28  ;;  %v10103_v10 = vld [vmem:[#allocation2 + $0x18] sm:$0xff] }
 0x26a   : > { %5233 = vrot.lane.b32.xlu1 %v9715_v17, %s7907_s28 }
 0x26b   : > { %4031 = vrot.lane.b32.xlu0 %v9677_v2, %s7907_s28 }
 0x26e   : > { %5235 = vrot.lane.b32.xlu1 %v9751_v60, %s7907_s28 }
 0x26f   : > { %4033 = vrot.lane.b32.xlu0 %v9679_v8, %s7907_s28  ;;  %v6961_v8 = vld [vmem:[%s11484_s3 + $0x1f0] sm:$0xff] }
 0x272   : > { %5237 = vrot.lane.b32.xlu1 %v9753_v50, %s7907_s28 }
 0x273   : > { %4035 = vrot.lane.b32.xlu0 %v9713_v62, %s7907_s28  ;;  %v10117_v62 = vld [vmem:[#allocation2 + $0x22] sm:$0xff] }
 0x276   : > { %5239 = vrot.lane.b32.xlu1 %v9787_v24, %s7907_s28 }
 0x277   : > { %4037 = vrot.lane.b32.xlu0 %v9715_v17, %s7907_s28 }
 0x27a   : > { %5241 = vrot.lane.b32.xlu1 %v9789_v59, %s7907_s28 }
 0x27b   : > { %4039 = vrot.lane.b32.xlu0 %v9751_v60, %s7907_s28 }
 0x27e   : > { %5243 = vrot.lane.b32.xlu1 %v9822_v51, %s7907_s28 }
 0x27f   : > { %4041 = vrot.lane.b32.xlu0 %v9753_v50, %s7907_s28  ;;  %v10122_v50 = vld [vmem:[#allocation2 + $0x20] sm:$0xff] }
 0x282   : > { %5245 = vrot.lane.b32.xlu1 %v9824_v16, %s7907_s28  ;;  %v4302_v44 = vpop.permute.xlu0 %4301 }
 0x283   : > { %4043 = vrot.lane.b32.xlu0 %v9787_v24, %s7907_s28  ;;  %v4397_v2 = vsel %vm3782_vm2, %v10103_v10, %v4302_v44  ;;  %v6960_v24 = vld [vmem:[%s11484_s3 + $0x1e8] sm:$0xff]  ;;  %v6951_v44 = vld [vmem:[%s11484_s3 + $0x1a0] sm:$0xff] }
 0x284   : > { %4615 = vmatmul.mubr.f32.vlgmr.msra.gmra.mxu1 %v4397_v2  ;;  %v6950_v2 = vld [vmem:[%s11484_s3 + $0x198] sm:$0xff] }
 0x285   : > { %5475 = vmatpush1.msra.mxu1 %v6962_v53  ;;  %6884 = vmatprep.mubr.msk.f32.mxu1 %vm3782_vm2, %v10117_v62  ;;  %v4306_v17 = vpop.permute.xlu1 %4305  ;;  %v10252_v53 = vld [vmem:[#allocation2 + $0x7a] sm:$0xff] }
 0x286   : > { %5247 = vrot.lane.b32.xlu1 %v9857_v34, %s7907_s28  ;;  %5476 = vmatprep.subr.mxu1 %v7906_v29  ;;  %v4304_v60 = vpop.permute.xlu0 %4303 }
 0x287   : > { %4045 = vrot.lane.b32.xlu0 %v9789_v59, %s7907_s28  ;;  %5477 = vmatpush1.msra.mxu1 %v6961_v8  ;;  %v4398_v59 = vsel %vm3782_vm2, %v10122_v50, %v4304_v60 }
 0x288   : > { %5478 = vmatprep.subr.mxu1 %v7906_v29  ;;  %4620 = vmatmul.mubr.f32.gmra.mxu1 %v4398_v59  ;;  %v10275_v59 = vld [vmem:[#allocation2 + $0x82] sm:$0xff] }
 0x289   : > { %5479 = vmatpush1.msra.mxu1 %v6960_v24  ;;  %v6949_v24 = vld [vmem:[%s11484_s3 + $0x190] sm:$0xff] }
 0x28a   : > { %5249 = vrot.lane.b32.xlu1 %v9859_v27, %s7907_s28  ;;  %v4310_v58 = vpop.permute.xlu0 %4309  ;;  %5480 = vmatprep.subr.mxu1 %v7906_v29 }
 0x28b   : > { %4047 = vrot.lane.b32.xlu0 %v9822_v51, %s7907_s28  ;;  %v10134_v51 = vld [vmem:[#allocation2 + $0x32] sm:$0xff]  ;;  %5481 = vmatpush1.msra.mxu1 %v6959_v37 }
 0x28c   : > { %6885 = vmatprep.mubr.msk.f32.mxu1 %vm3782_vm2, %v10134_v51  ;;  %v4308_v55 = vpop.permute.xlu1 %4307  ;;  %5482 = vmatprep.subr.mxu1 %v7906_v29 }
 0x28d   : > { %5483 = vmatpush1.msra.mxu1 %v6958_v42  ;;  %v10296_v42 = vld [vmem:[#allocation2 + $0x92] sm:$0xff] }
 0x28e   : > { %5251 = vrot.lane.b32.xlu1 %v9889_v56, %s7907_s28  ;;  %5484 = vmatprep.subr.mxu1 %v7906_v29 }
 0x28f   : > { %4049 = vrot.lane.b32.xlu0 %v9824_v16, %s7907_s28  ;;  %v4399_v16 = vsel %vm3782_vm2, %v10141_v30, %v4306_v17  ;;  %5485 = vmatpush1.msra.mxu1 %v6957_v13  ;;  %v10261_v17 = vld [vmem:[#allocation2 + $0x78] sm:$0xff]  ;;  %v10305_v13 = vld [vmem:[#allocation2 + $0x90] sm:$0xff] }
 0x290   : > { %4625 = vmatmul.mubr.f32.gmra.mxu1 %v4399_v16  ;;  %v4312_v40 = vpop.permute.xlu1 %4311  ;;  %v4314_v32 = vpop.permute.xlu0 %4313  ;;  %5486 = vmatprep.subr.mxu1 %v7906_v29  ;;  %v6948_v16 = vld [vmem:[%s11484_s3 + $0x188] sm:$0xff] }
 0x291   : > { %6886 = vmatprep.mubr.msk.f32.mxu1 %vm3782_vm2, %v10153_v4  ;;  %5487 = vmatpush1.msra.mxu1 %v6956_v11  ;;  %v6970_v11 = vld [vmem:[%s11484_s3 + $0x238] sm:$0xff] }
 0x292   : > { %5253 = vrot.lane.b32.xlu1 %v9891_v25, %s7907_s28  ;;  %5488 = vmatprep.subr.mxu1 %v7906_v29 }
 0x293   : > { %4051 = vrot.lane.b32.xlu0 %v9857_v34, %s7907_s28  ;;  %v4400_v34 = vsel %vm3782_vm2, %v10158_v52, %v4308_v55  ;;  %5489 = vmatpush1.msra.mxu1 %v6955_v5  ;;  %v10282_v55 = vld [vmem:[#allocation2 + $0x80] sm:$0xff] }
 0x294   : > { %4630 = vmatmul.mubr.f32.gmra.mxu1 %v4400_v34  ;;  %5490 = vmatprep.subr.mxu1 %v7906_v29 }
 0x295   : > { %6887 = vmatprep.mubr.msk.f32.mxu1 %vm3782_vm2, %v10170_v63  ;;  %v4316_v41 = vpop.permute.xlu1 %4315  ;;  %5491 = vmatpush1.msra.mxu1 %v6954_v20  ;;  %v6968_v20 = vld [vmem:[%s11484_s3 + $0x228] sm:$0xff] }
 0x296   : > { %5255 = vrot.lane.b32.xlu1 %v9919_v12, %s7907_s28  ;;  %v4318_v28 = vpop.permute.xlu0 %4317  ;;  %5492 = vmatprep.subr.mxu1 %v7906_v29 }
 0x297   : > { %4053 = vrot.lane.b32.xlu0 %v9859_v27, %s7907_s28  ;;  %v4401_v27 = vsel %vm3782_vm2, %v10177_v26, %v4310_v58  ;;  %5493 = vmatpush1.msra.mxu1 %v6953_v3  ;;  %v10351_v3 = vld [vmem:[#allocation2 + $0xa8] sm:$0xff] }
 0x298   : > { %4635 = vmatmul.mubr.f32.gmra.mxu1 %v4401_v27  ;;  %5494 = vmatprep.subr.mxu1 %v7906_v29  ;;  %v10327_v27 = vld [vmem:[#allocation2 + $0x98] sm:$0xff] }
 0x299   : > { %6888 = vmatprep.mubr.msk.f32.mxu1 %vm3782_vm2, %v10189_v39  ;;  %5495 = vmatpush1.msra.mxu1 %v6952_v9  ;;  %v10366_v9 = vld [vmem:[#allocation2 + $0xb2] sm:$0xff] }
 0x29a   : > { %5257 = vrot.lane.b32.xlu1 %v9921_v49, %s7907_s28  ;;  %v4320_v35 = vpop.permute.xlu1 %4319  ;;  %5496 = vmatprep.subr.mxu1 %v7906_v29 }
 0x29b   : > { %4055 = vrot.lane.b32.xlu0 %v9889_v56, %s7907_s28  ;;  %v10196_v38 = vpop.permute.xlu0 %4321  ;;  %v4402_v56 = vsel %vm3782_vm2, %v10194_v0, %v4312_v40  ;;  %5497 = vmatpush1.msra.mxu1 %v6951_v44  ;;  %v6947_v40 = vld [vmem:[%s11484_s3 + $0x180] sm:$0xff] }
 0x29c   : > { %4640 = vmatmul.mubr.f32.gmra.mxu1 %v4402_v56  ;;  %5498 = vmatprep.subr.mxu1 %v7906_v29 }
 0x29d   : > { %6889 = vmatprep.mubr.msk.f32.mxu1 %vm3782_vm2, %v10208_v46  ;;  %5499 = vmatpush1.msra.mxu1 %v6950_v2  ;;  %v6966_v2 = vld [vmem:[%s11484_s3 + $0x218] sm:$0xff] }
 0x29e   : > { %5259 = vrot.lane.b32.xlu1 %v9946_v22, %s7907_s28  ;;  %v10215_v15 = vpop.permute.xlu1 %4323  ;;  %5500 = vmatprep.subr.mxu1 %v7906_v29 }
 0x29f   : > { %4057 = vrot.lane.b32.xlu0 %v9891_v25, %s7907_s28  ;;  %v10219_v36 = vpop.permute.xlu0 %4325  ;;  %v4403_v25 = vsel %vm3782_vm2, %v10217_v33, %v4314_v32  ;;  %5501 = vmatpush1.msra.mxu1 %v6949_v24  ;;  %v6965_v24 = vld [vmem:[%s11484_s3 + $0x210] sm:$0xff] }
 0x2a0   : > { %4645 = vmatmul.mubr.f32.gmra.mxu1 %v4403_v25  ;;  %5502 = vmatprep.subr.mxu1 %v7906_v29  ;;  %v6967_v25 = vld [vmem:[%s11484_s3 + $0x220] sm:$0xff] }
 0x2a1   : > { %6890 = vmatprep.mubr.msk.f32.mxu1 %vm3782_vm2, %v10231_v7  ;;  %5503 = vmatpush1.msra.mxu1 %v6948_v16 }
 0x2a2   : > { %5261 = vrot.lane.b32.xlu1 %v9948_v54, %s7907_s28  ;;  %5504 = vmatprep.subr.mxu1 %v7906_v29 }
 0x2a3   : > { %4059 = vrot.lane.b32.xlu0 %v9919_v12, %s7907_s28  ;;  %v4404_v12 = vsel %vm3782_vm2, %v10238_v43, %v4316_v41  ;;  %5505 = vmatpush1.msra.mxu1 %v6947_v40  ;;  %v10320_v41 = vld [vmem:[#allocation2 + $0x9a] sm:$0xff]  ;;  %v6964_v40 = vld [vmem:[%s11484_s3 + $0x208] sm:$0xff] }
 0x2a4   : > { %v10235_v14 = vpop.permute.xlu1 %4327  ;;  %4650 = vmatmul.mubr.f32.gmra.mxu1 %v4404_v12  ;;  %5522 = vmatprep.subr.mxu1 %v7906_v29 }
 0x2a5   : > { %v10240_v19 = vpop.permute.xlu0 %4329  ;;  %6891 = vmatprep.mubr.msk.f32.mxu1 %vm3782_vm2, %v10252_v53  ;;  %5523 = vmatpush2.msra.mxu1 %v6970_v11 }
 0x2a6   : > { %5263 = vrot.lane.b32.xlu1 %v9969_v31, %s7907_s28  ;;  %5524 = vmatprep.subr.mxu1 %v7906_v29 }
 0x2a7   : > { %4061 = vrot.lane.b32.xlu0 %v9921_v49, %s7907_s28  ;;  %v4405_v49 = vsel %vm3782_vm2, %v10261_v17, %v4318_v28 }
 0x2a8   : > { %v10259_v8 = vpop.permute.xlu1 %4331  ;;  %4655 = vmatmul.mubr.f32.gmra.mxu1 %v4405_v49  ;;  %v10388_v49 = vld [vmem:[#allocation2 + $0xc2] sm:$0xff] }
 0x2a9   : > { %v10263_v60 = vpop.permute.xlu0 %4333  ;;  %6892 = vmatprep.mubr.msk.f32.mxu1 %vm3782_vm2, %v10275_v59 }
 0x2aa   : > { %5265 = vrot.lane.b32.xlu1 %v9971_v47, %s7907_s28 }
 0x2ab   : > { %4063 = vrot.lane.b32.xlu0 %v9946_v22, %s7907_s28  ;;  %v4406_v22 = vsel %vm3782_vm2, %v10282_v55, %v4320_v35  ;;  %v6969_v35 = vld [vmem:[%s11484_s3 + $0x230] sm:$0xff] }
 0x2ac   : > { %v10279_v37 = vpop.permute.xlu1 %4335  ;;  %4660 = vmatmul.mubr.f32.gmra.mxu1 %v4406_v22 }
 0x2ad   : > { %v10284_v58 = vpop.permute.xlu0 %4337  ;;  %6893 = vmatprep.mubr.msk.f32.mxu1 %vm3782_vm2, %v10296_v42  ;;  %5525 = vmatpush2.msra.mxu1 %v6969_v35  ;;  %v6963_v35 = vld [vmem:[%s11484_s3 + $0x200] sm:$0xff] }
 0x2ae   : > { %5267 = vrot.lane.b32.xlu1 %v9991_v45, %s7907_s28  ;;  %5526 = vmatprep.subr.mxu1 %v7906_v29 }
 0x2af   : > { %4065 = vrot.lane.b32.xlu0 %v9948_v54, %s7907_s28  ;;  %v4407_v54 = vsel %vm3782_vm2, %v10305_v13, %v10196_v38  ;;  %v10342_v38 = vld [vmem:[#allocation2 + $0xaa] sm:$0xff]  ;;  %5527 = vmatpush2.msra.mxu1 %v6968_v20 }
 0x2b0   : > { %v10303_v32 = vpop.permute.xlu1 %4339  ;;  %4665 = vmatmul.mubr.f32.gmra.mxu1 %v4407_v54  ;;  %5528 = vmatprep.subr.mxu1 %v7906_v29  ;;  %v10412_v54 = vld [vmem:[#allocation2 + $0xca] sm:$0xff] }
 0x2b1   : > { %v10307_v34 = vpop.permute.xlu0 %4341  ;;  %6894 = vmatprep.mubr.msk.f32.mxu1 %vm3782_vm2, %v10320_v41  ;;  %5529 = vmatpush2.msra.mxu1 %v6967_v25 }
 0x2b2   : > { %5269 = vrot.lane.b32.xlu1 %v9993_v57, %s7907_s28  ;;  %5530 = vmatprep.subr.mxu1 %v7906_v29 }
 0x2b3   : > { %4067 = vrot.lane.b32.xlu0 %v9969_v31, %s7907_s28  ;;  %v4408_v31 = vsel %vm3782_vm2, %v10327_v27, %v10215_v15  ;;  %5531 = vmatpush2.msra.mxu1 %v6966_v2  ;;  %v10450_v2 = vld [vmem:[#allocation2 + $0xe2] sm:$0xff] }
 0x2b4   : > { %v10324_v28 = vpop.permute.xlu1 %4343  ;;  %4670 = vmatmul.mubr.f32.gmra.mxu1 %v4408_v31  ;;  %5532 = vmatprep.subr.mxu1 %v7906_v29  ;;  %v10434_v31 = vld [vmem:[#allocation2 + $0xda] sm:$0xff] }
 0x2b5   : > { %v10329_v5 = vpop.permute.xlu0 %4345  ;;  %6895 = vmatprep.mubr.msk.f32.mxu1 %vm3782_vm2, %v10342_v38  ;;  %5533 = vmatpush2.msra.mxu1 %v6965_v24 }
 0x2b6   : > { %5271 = vrot.lane.b32.xlu1 %v10013_v18, %s7907_s28  ;;  %5534 = vmatprep.subr.mxu1 %v7906_v29 }
 0x2b7   : > { %4069 = vrot.lane.b32.xlu0 %v9971_v47, %s7907_s28  ;;  %v4409_v47 = vsel %vm3782_vm2, %v10351_v3, %v10219_v36  ;;  %v10373_v36 = vld [vmem:[#allocation2 + $0xb0] sm:$0xff]  ;;  %5535 = vmatpush2.msra.mxu1 %v6964_v40 }
 0x2b8   : > { %v10349_v56 = vpop.permute.xlu1 %4347  ;;  %4675 = vmatmul.mubr.f32.gmra.mxu1 %v4409_v47  ;;  %5536 = vmatprep.subr.mxu1 %v7906_v29  ;;  %v3893_v47 = vld [vmem:[#allocation2] sm:$0xff] }
 0x2b9   : > { %v10353_v15 = vpop.permute.xlu0 %4349  ;;  %6896 = vmatprep.mubr.msk.f32.mxu1 %vm3782_vm2, %v10366_v9  ;;  %5537 = vmatpush2.msra.mxu1 %v6963_v35  ;;  %v3959_v35 = vld [vmem:[#allocation2 + $0x1a] sm:$0xff] }
 0x2ba   : > { %5273 = vrot.lane.b32.xlu1 %v10015_v1, %s7907_s28 }
 0x2bb   : > { %4071 = vrot.lane.b32.xlu0 %v9991_v45, %s7907_s28  ;;  %v4410_v45 = vsel %vm3782_vm2, %v10373_v36, %v10235_v14  ;;  %v10397_v14 = vld [vmem:[#allocation2 + $0xc0] sm:$0xff] }
 0x2bc   : > { %v10370_v44 = vpop.permute.xlu1 %4351  ;;  %4680 = vmatmul.mubr.f32.gmra.mxu1 %v4410_v45 }
 0x2bd   : > { %v10375_v12 = vpop.permute.xlu0 %4353  ;;  %6897 = vmatprep.mubr.msk.f32.mxu1 %vm3782_vm2, %v10388_v49 }
 0x2be   : > { %5275 = vrot.lane.b32.xlu1 %v10029_v21, %s7907_s28 }
 0x2bf   : > { %4073 = vrot.lane.b32.xlu0 %v9993_v57, %s7907_s28  ;;  %v4411_v57 = vsel %vm3782_vm2, %v10397_v14, %v10240_v19  ;;  %v10419_v19 = vld [vmem:[#allocation2 + $0xc8] sm:$0xff] }
 0x2c0   : > { %v10395_v16 = vpop.permute.xlu1 %4355  ;;  %4685 = vmatmul.mubr.f32.gmra.mxu1 %v4411_v57  ;;  %v10457_v57 = vld [vmem:[#allocation2 + $0xe0] sm:$0xff] }
 0x2c1   : > { %v10399_v22 = vpop.permute.xlu0 %4357  ;;  %6898 = vmatprep.mubr.msk.f32.mxu1 %vm3782_vm2, %v10412_v54  ;;  %v4414_v40 = vsel %vm3782_vm2, %v10457_v57, %v10279_v37 }
 0x2c2   : > { %5277 = vrot.lane.b32.xlu1 %v10031_v61, %s7907_s28 }
 0x2c3   : > { %4075 = vrot.lane.b32.xlu0 %v10013_v18, %s7907_s28  ;;  %v4412_v18 = vsel %vm3782_vm2, %v10419_v19, %v10259_v8  ;;  %v10440_v8 = vld [vmem:[#allocation2 + $0xd8] sm:$0xff] }
 0x2c4   : > { %v10416_v11 = vpop.permute.xlu1 %4359  ;;  %4690 = vmatmul.mubr.f32.gmra.mxu1 %v4412_v18  ;;  %v4413_v29 = vsel %vm3782_vm2, %v10440_v8, %v10263_v60  ;;  %v10466_v18 = vld [vmem:[#allocation2 + $0xf2] sm:$0xff] }
 0x2c5   : > { %v10421_v61 = vpop.permute.xlu0 %4361  ;;  %6899 = vmatprep.mubr.msk.f32.mxu1 %vm3782_vm2, %v10434_v31 }
 0x2c6   : > { %5279 = vrot.lane.b32.xlu1 %v10040_v6, %s7907_s28 }
 0x2c7   : > { %4077 = vrot.lane.b32.xlu0 %v10015_v1, %s7907_s28  ;;  %v3958_v1 = vld [vmem:[#allocation2 + $0xa] sm:$0xff] }
 0x2c8   : > { %v10438_v20 = vpop.permute.xlu1 %4363  ;;  %4695 = vmatmul.mubr.f32.gmra.mxu1 %v4413_v29  ;;  %v3956_v29 = vld [vmem:[#allocation2 + $0x171] sm:$0xff] }
 0x2c9   : > { %v4022_v25 = vpop.permute.xlu0 %4021  ;;  %6900 = vmatprep.mubr.msk.f32.mxu1 %vm3782_vm2, %v10450_v2 }
 0x2ca   : > { %v4117_v6 = vsel %vm3782_vm2, %v3893_v47, %v4022_v25  ;;  %5281 = vrot.lane.b32.xlu1 %v10042_v48, %s7907_s28  ;;  %v3894_v48 = vld [vmem:[#allocation2 + $0x8] sm:$0xff]  ;;  %v5159_v25 = vld [vmem:[#allocation2 + $0x199] sm:$0xff] }
 0x2cb   : > { %4936 = vmatmul.mubr.f32.vlgmr.msra.gmra.mxu0 %v4117_v6  ;;  %4079 = vrot.lane.b32.xlu0 %v10029_v21, %s7907_s28  ;;  %v3955_v21 = vld [vmem:[#allocation2 + $0x169] sm:$0xff] }
 0x2cc   : > { %6916 = vmatprep.mubr.msk.f32.mxu0 %vm3782_vm2, %v3958_v1  ;;  %v10453_v45 = vpop.permute.xlu1 %5225  ;;  %4700 = vmatmul.mubr.f32.gmra.mxu1 %v4414_v40  ;;  %v10473_v6 = vld [vmem:[#allocation2 + $0xf0] sm:$0xff] }
 0x2cd   : > { %v4024_v24 = vpop.permute.xlu0 %4023  ;;  %6901 = vmatprep.mubr.msk.f32.mxu1 %vm3782_vm2, %v10466_v18  ;;  %v4415_v1 = vsel %vm3782_vm2, %v10473_v6, %v10284_v58 }
 0x2ce   : > { %v4118_v60 = vsel %vm3782_vm2, %v3894_v48, %v4024_v24  ;;  %5283 = vrot.lane.b32.xlu1 %v10051_v23, %s7907_s28  ;;  %v10482_v48 = vld [vmem:[#allocation2 + $0xfa] sm:$0xff] }
 0x2cf   : > { %4941 = vmatmul.mubr.f32.gmra.mxu0 %v4118_v60  ;;  %4081 = vrot.lane.b32.xlu0 %v3955_v21, %s7907_s28  ;;  %v5160_v24 = vld [vmem:[#allocation2 + $0x1a1] sm:$0xff]  ;;  %v10488_v60 = vld [vmem:[#allocation2 + $0xf8] sm:$0xff] }
 0x2d0   : > { %6917 = vmatprep.mubr.msk.f32.mxu0 %vm3782_vm2, %v3959_v35  ;;  %v10469_v47 = vpop.permute.xlu1 %5227  ;;  %4705 = vmatmul.mubr.f32.gmra.mxu1 %v4415_v1  ;;  %v4416_v40 = vsel %vm3782_vm2, %v10488_v60, %v10303_v32 }
 0x2d1   : > { %v4026_v23 = vpop.permute.xlu0 %4025  ;;  %6902 = vmatprep.mubr.msk.f32.mxu1 %vm3782_vm2, %v10482_v48 }
 0x2d2   : > { %v4119_v37 = vsel %vm3782_vm2, %v10103_v10, %v4026_v23  ;;  %5285 = vrot.lane.b32.xlu1 %v5159_v25, %s7907_s28  ;;  %v10504_v23 = vld [vmem:[#allocation2 + $0x108] sm:$0xff] }
 0x2d3   : > { %4083 = vrot.lane.b32.xlu0 %v3956_v29, %s7907_s28  ;;  %4946 = vmatmul.mubr.f32.gmra.mxu0 %v4119_v37  ;;  %v4417_v32 = vsel %vm3782_vm2, %v10504_v23, %v10307_v34  ;;  %v10513_v37 = vld [vmem:[#allocation2 + $0x112] sm:$0xff] }
 0x2d4   : > { %6918 = vmatprep.mubr.msk.f32.mxu0 %vm3782_vm2, %v10117_v62  ;;  %v10490_v21 = vpop.permute.xlu1 %5229  ;;  %4710 = vmatmul.mubr.f32.gmra.mxu1 %v4416_v40  ;;  %v10498_v62 = vld [vmem:[#allocation2 + $0x10a] sm:$0xff] }
 0x2d5   : > { %v4028_v10 = vpop.permute.xlu0 %4027  ;;  %6903 = vmatprep.mubr.msk.f32.mxu1 %vm3782_vm2, %v10498_v62  ;;  %v10519_v29 = vld [vmem:[#allocation2 + $0x110] sm:$0xff] }
 0x2d6   : > { %v4120_v58 = vsel %vm3782_vm2, %v10122_v50, %v4028_v10  ;;  %5287 = vrot.lane.b32.xlu1 %v5160_v24, %s7907_s28  ;;  %v4418_v34 = vsel %vm3782_vm2, %v10519_v29, %v10324_v28  ;;  %v10526_v10 = vld [vmem:[#allocation2 + $0x122] sm:$0xff] }
 0x2d7   : > { %4951 = vmatmul.mubr.f32.gmra.mxu0 %v4120_v58  ;;  %v10532_v24 = vld [vmem:[#allocation2 + $0x120] sm:$0xff] }
 0x2d8   : > { %6919 = vmatprep.mubr.msk.f32.mxu0 %vm3782_vm2, %v10134_v51  ;;  %v10511_v25 = vpop.permute.xlu1 %5231  ;;  %4715 = vmatmul.mubr.f32.gmra.mxu1 %v4417_v32  ;;  %v4419_v28 = vsel %vm3782_vm2, %v10532_v24, %v10329_v5 }
 0x2d9   : > { %v4030_v35 = vpop.permute.xlu0 %4029  ;;  %6904 = vmatprep.mubr.msk.f32.mxu1 %vm3782_vm2, %v10513_v37 }
 0x2da   : > { %v4121_v50 = vsel %vm3782_vm2, %v10141_v30, %v4030_v35  ;;  %v10541_v35 = vld [vmem:[#allocation2 + $0x12a] sm:$0xff] }
 0x2db   : > { %4956 = vmatmul.mubr.f32.gmra.mxu0 %v4121_v50  ;;  %v10547_v50 = vld [vmem:[#allocation2 + $0x128] sm:$0xff] }
 0x2dc   : > { %6920 = vmatprep.mubr.msk.f32.mxu0 %vm3782_vm2, %v10153_v4  ;;  %4720 = vmatmul.mubr.f32.gmra.mxu1 %v4418_v34  ;;  %v10534_v58 = vpop.permute.xlu1 %5233  ;;  %v4420_v5 = vsel %vm3782_vm2, %v10547_v50, %v10349_v56  ;;  %v10562_v34 = vld [vmem:[#allocation2 + $0x138] sm:$0xff] }
 0x2dd   : > { %v4032_v51 = vpop.permute.xlu0 %4031  ;;  %6905 = vmatprep.mubr.msk.f32.mxu1 %vm3782_vm2, %v10526_v10  ;;  %v4421_v56 = vsel %vm3782_vm2, %v10562_v34, %v10353_v15 }
 0x2de   : > { %v4122_v1 = vsel %vm3782_vm2, %v10158_v52, %v4032_v51 }
 0x2df   : > { %4961 = vmatmul.mubr.f32.gmra.mxu0 %v4122_v1  ;;  %v10556_v1 = vld [vmem:[#allocation2 + $0x13a] sm:$0xff] }
 0x2e0   : > { %6921 = vmatprep.mubr.msk.f32.mxu0 %vm3782_vm2, %v10170_v63  ;;  %4725 = vmatmul.mubr.f32.gmra.mxu1 %v4419_v28  ;;  %v10554_v51 = vpop.permute.xlu1 %5235  ;;  %v10575_v28 = vld [vmem:[#allocation2 + $0x140] sm:$0xff] }
 0x2e1   : > { %v4034_v4 = vpop.permute.xlu0 %4033  ;;  %6906 = vmatprep.mubr.msk.f32.mxu1 %vm3782_vm2, %v10541_v35  ;;  %v4422_v15 = vsel %vm3782_vm2, %v10575_v28, %v10370_v44 }
 0x2e2   : > { %v4123_v40 = vsel %vm3782_vm2, %v10177_v26, %v4034_v4 }
 0x2e3   : > { %4966 = vmatmul.mubr.f32.gmra.mxu0 %v4123_v40  ;;  %v10569_v40 = vld [vmem:[#allocation2 + $0x142] sm:$0xff] }
 0x2e4   : > { %6922 = vmatprep.mubr.msk.f32.mxu0 %vm3782_vm2, %v10189_v39  ;;  %4730 = vmatmul.mubr.f32.gmra.mxu1 %v4420_v5  ;;  %v10584_v5 = vld [vmem:[#allocation2 + $0x152] sm:$0xff] }
 0x2e5   : > { %v4036_v63 = vpop.permute.xlu0 %4035  ;;  %6907 = vmatprep.mubr.msk.f32.mxu1 %vm3782_vm2, %v10556_v1 }
 0x2e6   : > { %v4124_v32 = vsel %vm3782_vm2, %v10194_v0, %v4036_v63  ;;  %v10577_v63 = vpop.permute.xlu1 %5237 }
 0x2e7   : > { %4971 = vmatmul.mubr.f32.gmra.mxu0 %v4124_v32 }
 0x2e8   : > { %6923 = vmatprep.mubr.msk.f32.mxu0 %vm3782_vm2, %v10208_v46  ;;  %4735 = vmatmul.mubr.f32.gmra.mxu1 %v4421_v56 }
 0x2e9   : > { %v4038_v39 = vpop.permute.xlu0 %4037  ;;  %6908 = vmatprep.mubr.msk.f32.mxu1 %vm3782_vm2, %v10569_v40 }
 0x2ea   : > { %v4125_v4 = vsel %vm3782_vm2, %v10217_v33, %v4038_v39  ;;  %v10590_v39 = vld [vmem:[#allocation2 + $0x150] sm:$0xff]  ;;  %v10597_v56 = vpop.permute.xlu1 %5239 }
 0x2eb   : > { %4976 = vmatmul.mubr.f32.gmra.mxu0 %v4125_v4  ;;  %v4423_v44 = vsel %vm3782_vm2, %v10590_v39, %v10375_v12 }
 0x2ec   : > { %6924 = vmatprep.mubr.msk.f32.mxu0 %vm3782_vm2, %v10231_v7  ;;  %4740 = vmatmul.mubr.f32.gmra.mxu1 %v4422_v15 }
 0x2ed   : > { %v4040_v46 = vpop.permute.xlu0 %4039  ;;  %6909 = vmatprep.mubr.msk.f32.mxu1 %vm3782_vm2, %v10584_v5 }
 0x2ee   : > { %v4126_v32 = vsel %vm3782_vm2, %v10238_v43, %v4040_v46  ;;  %v10599_v46 = vld [vmem:[#allocation2 + $0x15a] sm:$0xff] }
 0x2ef   : > { %4981 = vmatmul.mubr.f32.gmra.mxu0 %v4126_v32  ;;  %v10605_v32 = vld [vmem:[#allocation2 + $0x158] sm:$0xff] }
 0x2f0   : > { %6925 = vmatprep.mubr.msk.f32.mxu0 %vm3782_vm2, %v10252_v53  ;;  %4745 = vmatmul.mubr.f32.gmra.mxu1 %v4423_v44  ;;  %v4424_v12 = vsel %vm3782_vm2, %v10605_v32, %v10395_v16  ;;  %v10620_v44 = vpop.permute.xlu1 %5241 }
 0x2f1   : > { %v4042_v7 = vpop.permute.xlu0 %4041  ;;  %6910 = vmatprep.mubr.msk.f32.mxu1 %vm3782_vm2, %v10599_v46 }
 0x2f2   : > { %v4127_v4 = vsel %vm3782_vm2, %v10261_v17, %v4042_v7  ;;  %v10612_v7 = vld [vmem:[#allocation2 + $0x16a] sm:$0xff] }
 0x2f3   : > { %4986 = vmatmul.mubr.f32.gmra.mxu0 %v4127_v4  ;;  %11770 = vst [vmem:[#allocation33_spill] sm:$0xff] %v10612_v7  ;;  %v10618_v4 = vld [vmem:[#allocation2 + $0x168] sm:$0xff] }
 0x2f4   : > { %6926 = vmatprep.mubr.msk.f32.mxu0 %vm3782_vm2, %v10275_v59  ;;  %4750 = vmatmul.mubr.f32.gmra.mxu1 %v4424_v12  ;;  %11771 = vst [vmem:[#allocation43_spill] sm:$0xff] %v10618_v4  ;;  %v4425_v16 = vsel %vm3782_vm2, %v10618_v4, %v10399_v22  ;;  %v10648_v4 = vld [vmem:[#allocation2 + $0x180] sm:$0xff] }
 0x2f5   : > { %v4044_v53 = vpop.permute.xlu0 %4043  ;;  %6911 = vmatprep.mubr.msk.f32.mxu1 %vm3782_vm2, %v10612_v7  ;;  %v10633_v7 = vld [vmem:[#allocation2 + $0x170] sm:$0xff]  ;;  %11775 = vst [vmem:[#allocation82_spill] sm:$0xff] %v10648_v4 }
 0x2f6   : > { %v4128_v15 = vsel %vm3782_vm2, %v10282_v55, %v4044_v53  ;;  %11773 = vst [vmem:[#allocation34_spill] sm:$0xff] %v10633_v7  ;;  %v4426_v22 = vsel %vm3782_vm2, %v10633_v7, %v10416_v11  ;;  %v4427_v11 = vsel %vm3782_vm2, %v10648_v4, %v10421_v61 }
 0x2f7   : > { %4991 = vmatmul.mubr.f32.gmra.mxu0 %v4128_v15  ;;  %v10627_v15 = vld [vmem:[#allocation2 + $0x172] sm:$0xff] }
 0x2f8   : > { %6927 = vmatprep.mubr.msk.f32.mxu0 %vm3782_vm2, %v10296_v42  ;;  %4755 = vmatmul.mubr.f32.gmra.mxu1 %v4425_v16  ;;  %11772 = vst [vmem:[#allocation39_spill] sm:$0xff] %v10627_v15  ;;  %v10642_v16 = vld [vmem:[#allocation2 + $0x182] sm:$0xff] }
 0x2f9   : > { %v4046_v59 = vpop.permute.xlu0 %4045  ;;  %6912 = vmatprep.mubr.msk.f32.mxu1 %vm3782_vm2, %v10627_v15  ;;  %11774 = vst [vmem:[#allocation45_spill] sm:$0xff] %v10642_v16 }
 0x2fa   : > { %v4129_v53 = vsel %vm3782_vm2, %v10305_v13, %v4046_v59 }
 0x2fb   : > { %4996 = vmatmul.mubr.f32.gmra.mxu0 %v4129_v53  ;;  %v10640_v53 = vpop.permute.xlu1 %5243 }
 0x2fc   : > { %6928 = vmatprep.mubr.msk.f32.mxu0 %vm3782_vm2, %v10320_v41  ;;  %4760 = vmatmul.mubr.f32.gmra.mxu1 %v4426_v22 }
 0x2fd   : > { %v4048_v12 = vpop.permute.xlu0 %4047  ;;  %6913 = vmatprep.mubr.msk.f32.mxu1 %vm3782_vm2, %v10642_v16  ;;  %v10661_v16 = vld [vmem:[#allocation2 + $0x188] sm:$0xff] }
 0x2fe   : > { %v4130_v59 = vsel %vm3782_vm2, %v10327_v27, %v4048_v12  ;;  %v4428_v61 = vsel %vm3782_vm2, %v10661_v16, %v10438_v20  ;;  %v5162_v20 = vld [vmem:[#allocation2 + $0x3a] sm:$0xff] }
 0x2ff   : > { %5001 = vmatmul.mubr.f32.gmra.mxu0 %v4130_v59  ;;  %v10655_v59 = vld [vmem:[#allocation2 + $0x18a] sm:$0xff]  ;;  %v10663_v7 = vpop.permute.xlu1 %5245 }
 0x300   : > { %6929 = vmatprep.mubr.msk.f32.mxu0 %vm3782_vm2, %v10342_v38  ;;  %4765 = vmatmul.mubr.f32.gmra.mxu1 %v4427_v11  ;;  %11776 = vst [vmem:[#allocation86_spill] sm:$0xff] %v10655_v59 }
 0x301   : > { %v4050_v15 = vpop.permute.xlu0 %4049  ;;  %6914 = vmatprep.mubr.msk.f32.mxu1 %vm3782_vm2, %v10655_v59 }
 0x302   : > { %v4131_v12 = vsel %vm3782_vm2, %v10351_v3, %v4050_v15 }
 0x303   : > { %5006 = vmatmul.mubr.f32.gmra.mxu0 %v4131_v12  ;;  %v5161_v12 = vld [vmem:[#allocation2 + $0x32] sm:$0xff]  ;;  %v10678_v4 = vpop.permute.xlu1 %5247 }
 0x304   : > { %6930 = vmatprep.mubr.msk.f32.mxu0 %vm3782_vm2, %v10366_v9  ;;  %4770 = vmatmul.mubr.f32.gmra.mxu1 %v4428_v61 }
 0x305   : > { %v4052_v22 = vpop.permute.xlu0 %4051  ;;  %6971 = vmatprep.mubr.msk.f32.mxu1 %vm3782_vm2, %v5161_v12  ;;  %v5322_v12 = vsel %vm3782_vm2, %v10158_v52, %v10469_v47  ;;  %v5164_v52 = vld [vmem:[#allocation2 + $0x52] sm:$0xff] }
 0x306   : > { %v4132_v15 = vsel %vm3782_vm2, %v10373_v36, %v4052_v22  ;;  %v5321_v22 = vsel %vm3782_vm2, %v10141_v30, %v10453_v45  ;;  %v5163_v30 = vld [vmem:[#allocation2 + $0x4a] sm:$0xff] }
 0x307   : > { %5011 = vmatmul.mubr.f32.gmra.mxu0 %v4132_v15 }
 0x308   : > { %6931 = vmatprep.mubr.msk.f32.mxu0 %vm3782_vm2, %v10388_v49  ;;  %5539 = vmatmul.mubr.f32.vlgmr.msra.gmra.mxu1 %v5321_v22  ;;  %v5323_v22 = vsel %vm3782_vm2, %v10177_v26, %v10490_v21  ;;  %v5165_v26 = vld [vmem:[#allocation2 + $0x62] sm:$0xff] }
 0x309   : > { %v4054_v11 = vpop.permute.xlu0 %4053  ;;  %6972 = vmatprep.mubr.msk.f32.mxu1 %vm3782_vm2, %v5162_v20 }
 0x30a   : > { %v4133_v59 = vsel %vm3782_vm2, %v10397_v14, %v4054_v11 }
 0x30b   : > { %5016 = vmatmul.mubr.f32.gmra.mxu0 %v4133_v59  ;;  %v10691_v59 = vpop.permute.xlu1 %5249 }
 0x30c   : > { %6932 = vmatprep.mubr.msk.f32.mxu0 %vm3782_vm2, %v10412_v54  ;;  %5544 = vmatmul.mubr.f32.gmra.mxu1 %v5322_v12 }
 0x30d   : > { %v4056_v15 = vpop.permute.xlu0 %4055  ;;  %6973 = vmatprep.mubr.msk.f32.mxu1 %vm3782_vm2, %v5163_v30  ;;  %v5325_v30 = vsel %vm3782_vm2, %v10217_v33, %v10534_v58  ;;  %v5167_v33 = vld [vmem:[#allocation2 + $0x7a] sm:$0xff] }
 0x30e   : > { %v4134_v61 = vsel %vm3782_vm2, %v10419_v19, %v4056_v15  ;;  %v5324_v15 = vsel %vm3782_vm2, %v10194_v0, %v10511_v25  ;;  %v5166_v0 = vld [vmem:[#allocation2 + $0x6a] sm:$0xff] }
 0x30f   : > { %5021 = vmatmul.mubr.f32.gmra.mxu0 %v4134_v61  ;;  %v10706_v61 = vpop.permute.xlu1 %5251 }
 0x310   : > { %6933 = vmatprep.mubr.msk.f32.mxu0 %vm3782_vm2, %v10434_v31  ;;  %5549 = vmatmul.mubr.f32.gmra.mxu1 %v5323_v22  ;;  %v5326_v22 = vsel %vm3782_vm2, %v10238_v43, %v10554_v51  ;;  %v5168_v43 = vld [vmem:[#allocation2 + $0x82] sm:$0xff] }
 0x311   : > { %v4058_v45 = vpop.permute.xlu0 %4057  ;;  %6974 = vmatprep.mubr.msk.f32.mxu1 %vm3782_vm2, %v5164_v52 }
 0x312   : > { %v4135_v11 = vsel %vm3782_vm2, %v10440_v8, %v4058_v45 }
 0x313   : > { %5026 = vmatmul.mubr.f32.gmra.mxu0 %v4135_v11  ;;  %v10719_v45 = vpop.permute.xlu1 %5253 }
 0x314   : > { %6934 = vmatprep.mubr.msk.f32.mxu0 %vm3782_vm2, %v10450_v2  ;;  %5554 = vmatmul.mubr.f32.gmra.mxu1 %v5324_v15 }
 0x315   : > { %v4060_v47 = vpop.permute.xlu0 %4059  ;;  %6975 = vmatprep.mubr.msk.f32.mxu1 %vm3782_vm2, %v5165_v26  ;;  %v5328_v26 = vsel %vm3782_vm2, %v10282_v55, %v10597_v56  ;;  %v5330_v56 = vsel %vm3782_vm2, %v10327_v27, %v10640_v53 }
 0x316   : > { %v4136_v20 = vsel %vm3782_vm2, %v10457_v57, %v4060_v47  ;;  %v5327_v47 = vsel %vm3782_vm2, %v10261_v17, %v10577_v63 }
 0x317   : > { %5031 = vmatmul.mubr.f32.gmra.mxu0 %v4136_v20  ;;  %v10734_v20 = vpop.permute.xlu1 %5255 }
 0x318   : > { %6935 = vmatprep.mubr.msk.f32.mxu0 %vm3782_vm2, %v10466_v18  ;;  %5559 = vmatmul.mubr.f32.gmra.mxu1 %v5325_v30 }
 0x319   : > { %v4062_v21 = vpop.permute.xlu0 %4061  ;;  %6976 = vmatprep.mubr.msk.f32.mxu1 %vm3782_vm2, %v5166_v0  ;;  %v5332_v0 = vsel %vm3782_vm2, %v10373_v36, %v10678_v4  ;;  %v5334_v4 = vsel %vm3782_vm2, %v10419_v19, %v10706_v61  ;;  %v11779_v19 = vld [vmem:[#allocation39_spill] sm:$0xff] }
 0x31a   : > { %v4137_v12 = vsel %vm3782_vm2, %v10473_v6, %v4062_v21 }
 0x31b   : > { %5036 = vmatmul.mubr.f32.gmra.mxu0 %v4137_v12  ;;  %v5258_v63 = vpop.permute.xlu1 %5257  ;;  %v5329_v12 = vsel %vm3782_vm2, %v10305_v13, %v10620_v44  ;;  %v5331_v44 = vsel %vm3782_vm2, %v10351_v3, %v10663_v7  ;;  %v5333_v7 = vsel %vm3782_vm2, %v10397_v14, %v10691_v59  ;;  %v11777_v14 = vld [vmem:[#allocation33_spill] sm:$0xff] }
 0x31c   : > { %6936 = vmatprep.mubr.msk.f32.mxu0 %vm3782_vm2, %v10482_v48  ;;  %5564 = vmatmul.mubr.f32.gmra.mxu1 %v5326_v22  ;;  %v11778_v22 = vld [vmem:[#allocation43_spill] sm:$0xff] }
 0x31d   : > { %v4064_v25 = vpop.permute.xlu0 %4063  ;;  %6977 = vmatprep.mubr.msk.f32.mxu1 %vm3782_vm2, %v5167_v33  ;;  %v5335_v33 = vsel %vm3782_vm2, %v10440_v8, %v10719_v45  ;;  %v5337_v45 = vsel %vm3782_vm2, %v10473_v6, %v5258_v63 }
 0x31e   : > { %v4138_v11 = vsel %vm3782_vm2, %v10488_v60, %v4064_v25 }
 0x31f   : > { %5041 = vmatmul.mubr.f32.gmra.mxu0 %v4138_v11  ;;  %v5260_v30 = vpop.permute.xlu1 %5259 }
 0x320   : > { %6937 = vmatprep.mubr.msk.f32.mxu0 %vm3782_vm2, %v10498_v62  ;;  %5569 = vmatmul.mubr.f32.gmra.mxu1 %v5327_v47 }
 0x321   : > { %v4066_v58 = vpop.permute.xlu0 %4065  ;;  %6978 = vmatprep.mubr.msk.f32.mxu1 %vm3782_vm2, %v5168_v43 }
 0x322   : > { %v4139_v52 = vsel %vm3782_vm2, %v10504_v23, %v4066_v58  ;;  %v11780_v58 = vld [vmem:[#allocation34_spill] sm:$0xff] }
 0x323   : > { %5046 = vmatmul.mubr.f32.gmra.mxu0 %v4139_v52  ;;  %v5262_v53 = vpop.permute.xlu1 %5261  ;;  %v5336_v52 = vsel %vm3782_vm2, %v10457_v57, %v10734_v20  ;;  %v5338_v57 = vsel %vm3782_vm2, %v10488_v60, %v5260_v30 }
 0x324   : > { %6938 = vmatprep.mubr.msk.f32.mxu0 %vm3782_vm2, %v10513_v37  ;;  %5574 = vmatmul.mubr.f32.gmra.mxu1 %v5328_v26 }
 0x325   : > { %v4068_v51 = vpop.permute.xlu0 %4067  ;;  %6979 = vmatprep.mubr.msk.f32.mxu1 %vm3782_vm2, %v10296_v42 }
 0x326   : > { %v4140_v15 = vsel %vm3782_vm2, %v10519_v29, %v4068_v51  ;;  %v5339_v51 = vsel %vm3782_vm2, %v10504_v23, %v5262_v53 }
 0x327   : > { %5051 = vmatmul.mubr.f32.gmra.mxu0 %v4140_v15  ;;  %v5264_v25 = vpop.permute.xlu1 %5263 }
 0x328   : > { %6939 = vmatprep.mubr.msk.f32.mxu0 %vm3782_vm2, %v10526_v10  ;;  %5579 = vmatmul.mubr.f32.gmra.mxu1 %v5329_v12  ;;  %v5340_v60 = vsel %vm3782_vm2, %v10519_v29, %v5264_v25 }
 0x329   : > { %v4070_v17 = vpop.permute.xlu0 %4069  ;;  %6980 = vmatprep.mubr.msk.f32.mxu1 %vm3782_vm2, %v10320_v41 }
 0x32a   : > { %v4141_v21 = vsel %vm3782_vm2, %v10532_v24, %v4070_v17 }
 0x32b   : > { %5056 = vmatmul.mubr.f32.gmra.mxu0 %v4141_v21  ;;  %v5266_v11 = vpop.permute.xlu1 %5265 }
 0x32c   : > { %6940 = vmatprep.mubr.msk.f32.mxu0 %vm3782_vm2, %v10541_v35  ;;  %5584 = vmatmul.mubr.f32.gmra.mxu1 %v5330_v56  ;;  %v5341_v23 = vsel %vm3782_vm2, %v10532_v24, %v5266_v11  ;;  %v5191_v11 = vld [vmem:[#allocation2 + $0x19a] sm:$0xff] }
 0x32d   : > { %v4072_v55 = vpop.permute.xlu0 %4071  ;;  %6981 = vmatprep.mubr.msk.f32.mxu1 %vm3782_vm2, %v10342_v38 }
 0x32e   : > { %v4142_v42 = vsel %vm3782_vm2, %v10547_v50, %v4072_v55 }
 0x32f   : > { %5061 = vmatmul.mubr.f32.gmra.mxu0 %v4142_v42  ;;  %v5268_v47 = vpop.permute.xlu1 %5267 }
 0x330   : > { %6941 = vmatprep.mubr.msk.f32.mxu0 %vm3782_vm2, %v10556_v1  ;;  %5589 = vmatmul.mubr.f32.gmra.mxu1 %v5331_v44  ;;  %v5342_v29 = vsel %vm3782_vm2, %v10547_v50, %v5268_v47 }
 0x331   : > { %v4074_v13 = vpop.permute.xlu0 %4073  ;;  %6982 = vmatprep.mubr.msk.f32.mxu1 %vm3782_vm2, %v10366_v9 }
 0x332   : > { %v4143_v41 = vsel %vm3782_vm2, %v10562_v34, %v4074_v13 }
 0x333   : > { %5066 = vmatmul.mubr.f32.gmra.mxu0 %v4143_v41  ;;  %v5270_v43 = vpop.permute.xlu1 %5269 }
 0x334   : > { %6942 = vmatprep.mubr.msk.f32.mxu0 %vm3782_vm2, %v10569_v40  ;;  %5594 = vmatmul.mubr.f32.gmra.mxu1 %v5332_v0  ;;  %v5343_v24 = vsel %vm3782_vm2, %v10562_v34, %v5270_v43  ;;  %v11781_v0 = vld [vmem:[#allocation45_spill] sm:$0xff] }
 0x335   : > { %v4076_v27 = vpop.permute.xlu0 %4075  ;;  %6983 = vmatprep.mubr.msk.f32.mxu1 %vm3782_vm2, %v10388_v49 }
 0x336   : > { %v4144_v38 = vsel %vm3782_vm2, %v10575_v28, %v4076_v27 }
 0x337   : > { %5071 = vmatmul.mubr.f32.gmra.mxu0 %v4144_v38  ;;  %v5272_v15 = vpop.permute.xlu1 %5271 }
 0x338   : > { %6943 = vmatprep.mubr.msk.f32.mxu0 %vm3782_vm2, %v10584_v5  ;;  %5599 = vmatmul.mubr.f32.gmra.mxu1 %v5333_v7  ;;  %v5344_v50 = vsel %vm3782_vm2, %v10575_v28, %v5272_v15 }
 0x339   : > { %v4078_v3 = vpop.permute.xlu0 %4077  ;;  %6984 = vmatprep.mubr.msk.f32.mxu1 %vm3782_vm2, %v10412_v54 }
 0x33a   : > { %v4145_v9 = vsel %vm3782_vm2, %v10590_v39, %v4078_v3 }
 0x33b   : > { %5076 = vmatmul.mubr.f32.gmra.mxu0 %v4145_v9  ;;  %v5274_v17 = vpop.permute.xlu1 %5273  ;;  %v11782_v9 = vld [vmem:[#allocation82_spill] sm:$0xff] }
 0x33c   : > { %6944 = vmatprep.mubr.msk.f32.mxu0 %vm3782_vm2, %v10599_v46  ;;  %5604 = vmatmul.mubr.f32.gmra.mxu1 %v5334_v4  ;;  %v5345_v34 = vsel %vm3782_vm2, %v10590_v39, %v5274_v17 }
 0x33d   : > { %v4080_v36 = vpop.permute.xlu0 %4079  ;;  %6985 = vmatprep.mubr.msk.f32.mxu1 %vm3782_vm2, %v10434_v31 }
 0x33e   : > { %v4146_v49 = vsel %vm3782_vm2, %v10605_v32, %v4080_v36  ;;  %v11783_v36 = vld [vmem:[#allocation86_spill] sm:$0xff] }
 0x33f   : > { %5081 = vmatmul.mubr.f32.gmra.mxu0 %v4146_v49  ;;  %v5276_v12 = vpop.permute.xlu1 %5275 }
 0x340   : > { %6945 = vmatprep.mubr.msk.f32.mxu0 %vm3782_vm2, %v11777_v14  ;;  %5609 = vmatmul.mubr.f32.gmra.mxu1 %v5335_v33  ;;  %v5346_v28 = vsel %vm3782_vm2, %v10605_v32, %v5276_v12 }
 0x341   : > { %v4082_v59 = vpop.permute.xlu0 %4081  ;;  %6986 = vmatprep.mubr.msk.f32.mxu1 %vm3782_vm2, %v10450_v2 }
 0x342   : > { %v4147_v54 = vsel %vm3782_vm2, %v11778_v22, %v4082_v59 }
 0x343   : > { %5086 = vmatmul.mubr.f32.gmra.mxu0 %v4147_v54  ;;  %v5278_v42 = vpop.permute.xlu1 %5277  ;;  %v5127_v54 = vld [vmem:[#allocation2 + $0x198] sm:$0xff] }
 0x344   : > { %6946 = vmatprep.mubr.msk.f32.mxu0 %vm3782_vm2, %v11779_v19  ;;  %5614 = vmatmul.mubr.f32.gmra.mxu1 %v5336_v52  ;;  %v10818_v8 = vpop.f32.mrf.mxu1  ;;  %v5347_v39 = vsel %vm3782_vm2, %v11778_v22, %v5278_v42  ;;  %v5128_v52 = vld [vmem:[#allocation2 + $0x1a0] sm:$0xff] }
 0x345   : > { %v4084_v61 = vpop.permute.xlu0 %4083  ;;  %6987 = vmatprep.mubr.msk.f32.mxu1 %vm3782_vm2, %v10466_v18 }
 0x346   : > { %v4148_v31 = vsel %vm3782_vm2, %v11780_v58, %v4084_v61  ;;  %v4618_v2 = vpop.f32.mrf.mxu1 }
 0x347   : > { %5091 = vmatmul.mubr.f32.gmra.mxu0 %v4148_v31  ;;  %v5280_v13 = vpop.permute.xlu1 %5279 }
 0x348   : > { %5619 = vmatmul.mubr.f32.gmra.mxu1 %v5337_v45  ;;  %v10826_v20 = vpop.f32.mrf.mxu1  ;;  %v5348_v32 = vsel %vm3782_vm2, %v11780_v58, %v5280_v13  ;;  %v5192_v58 = vld [vmem:[#allocation2 + $0x1a2] sm:$0xff] }
 0x349   : > { %6988 = vmatprep.mubr.msk.f32.mxu1 %vm3782_vm2, %v10482_v48 }
 0x34a   : > { %v4623_v18 = vpop.f32.mrf.mxu1 }
 0x34b   : > { %v5282_v44 = vpop.permute.xlu1 %5281 }
 0x34c   : > { %5624 = vmatmul.mubr.f32.gmra.mxu1 %v5338_v57  ;;  %v5349_v7 = vsel %vm3782_vm2, %v11782_v9, %v5282_v44 }
 0x34d   : > { %6989 = vmatprep.mubr.msk.f32.mxu1 %vm3782_vm2, %v10498_v62 }
 0x34f   : > { %v5284_v38 = vpop.permute.xlu1 %5283 }
 0x350   : > { %v10832_v6 = vpop.f32.mrf.mxu1  ;;  %5629 = vmatmul.mubr.f32.gmra.mxu1 %v5339_v51 }
 0x351   : > { %6990 = vmatprep.mubr.msk.f32.mxu1 %vm3782_vm2, %v10513_v37 }
 0x352   : > { %v4628_v48 = vpop.f32.mrf.mxu1 }
 0x353   : > { %v5286_v4 = vpop.permute.xlu1 %5285 }
 0x354   : > { %v10838_v26 = vpop.f32.mrf.mxu1  ;;  %5634 = vmatmul.mubr.f32.gmra.mxu1 %v5340_v60  ;;  %v5351_v33 = vsel %vm3782_vm2, %v5127_v54, %v5286_v4 }
 0x355   : > { %6991 = vmatprep.mubr.msk.f32.mxu1 %vm3782_vm2, %v10526_v10 }
 0x356   : > { %v4633_v62 = vpop.f32.mrf.mxu1 }
 0x357   : > { %v5288_v61 = vpop.permute.xlu1 %5287 }
 0x358   : > { %v10844_v63 = vpop.f32.mrf.mxu1  ;;  %5639 = vmatmul.mubr.f32.gmra.mxu1 %v5341_v23 }
 0x359   : > { %6992 = vmatprep.mubr.msk.f32.mxu1 %vm3782_vm2, %v10541_v35 }
 0x35a   : > { %v4638_v37 = vpop.f32.mrf.mxu1 }
 0x35c   : > { %v10850_v21 = vpop.f32.mrf.mxu1  ;;  %5644 = vmatmul.mubr.f32.gmra.mxu1 %v5342_v29 }
 0x35d   : > { %6993 = vmatprep.mubr.msk.f32.mxu1 %vm3782_vm2, %v10556_v1 }
 0x35e   : > { %v4643_v10 = vpop.f32.mrf.mxu1 }
 0x360   : > { %v10856_v55 = vpop.f32.mrf.mxu1  ;;  %5649 = vmatmul.mubr.f32.gmra.mxu1 %v5343_v24 }
 0x361   : > { %6994 = vmatprep.mubr.msk.f32.mxu1 %vm3782_vm2, %v10569_v40 }
 0x362   : > { %v4648_v35 = vpop.f32.mrf.mxu1 }
 0x364   : > { %v10862_v56 = vpop.f32.mrf.mxu1  ;;  %5654 = vmatmul.mubr.f32.gmra.mxu1 %v5344_v50 }
 0x365   : > { %6995 = vmatprep.mubr.msk.f32.mxu1 %vm3782_vm2, %v10584_v5 }
 0x366   : > { %v4653_v1 = vpop.f32.mrf.mxu1 }
 0x368   : > { %v10868_v30 = vpop.f32.mrf.mxu1  ;;  %5659 = vmatmul.mubr.f32.gmra.mxu1 %v5345_v34 }
 0x369   : > { %6996 = vmatprep.mubr.msk.f32.mxu1 %vm3782_vm2, %v10599_v46 }
 0x36a   : > { %v4658_v40 = vpop.f32.mrf.mxu1 }
 0x36c   : > { %v10874_v41 = vpop.f32.mrf.mxu1  ;;  %5664 = vmatmul.mubr.f32.gmra.mxu1 %v5346_v28 }
 0x36d   : > { %6997 = vmatprep.mubr.msk.f32.mxu1 %vm3782_vm2, %v11777_v14  ;;  %v5350_v14 = vsel %vm3782_vm2, %v10661_v16, %v5284_v38  ;;  %v5352_v16 = vsel %vm3782_vm2, %v5128_v52, %v5288_v61 }
 0x36e   : > { %v4663_v5 = vpop.f32.mrf.mxu1 }
 0x370   : > { %v10880_v27 = vpop.f32.mrf.mxu1  ;;  %5669 = vmatmul.mubr.f32.gmra.mxu1 %v5347_v39 }
 0x371   : > { %6998 = vmatprep.mubr.msk.f32.mxu1 %vm3782_vm2, %v11779_v19 }
 0x372   : > { %v4668_v46 = vpop.f32.mrf.mxu1 }
 0x374   : > { %v10886_v53 = vpop.f32.mrf.mxu1  ;;  %5674 = vmatmul.mubr.f32.gmra.mxu1 %v5348_v32 }
 0x375   : > { %6999 = vmatprep.mubr.msk.f32.mxu1 %vm3782_vm2, %v11781_v0 }
 0x376   : > { %v4673_v3 = vpop.f32.mrf.mxu1 }
 0x378   : > { %v10892_v25 = vpop.f32.mrf.mxu1  ;;  %5679 = vmatmul.mubr.f32.gmra.mxu1 %v5349_v7 }
 0x379   : > { %7000 = vmatprep.mubr.msk.f32.mxu1 %vm3782_vm2, %v11783_v36 }
 0x37a   : > { %v4678_v49 = vpop.f32.mrf.mxu1 }
 0x37c   : > { %v10898_v59 = vpop.f32.mrf.mxu1  ;;  %5684 = vmatmul.mubr.f32.gmra.mxu1 %v5350_v14 }
 0x37d   : > { %7001 = vmatprep.mubr.msk.f32.mxu1 %vm3782_vm2, %v5191_v11 }
 0x37e   : > { %v4683_v22 = vpop.f32.mrf.mxu1 }
 0x380   : > { %v10902_v19 = vpop.f32.mrf.mxu1  ;;  %5689 = vmatmul.mubr.f32.gmra.mxu1 %v5351_v33 }
 0x381   : > { %7002 = vmatprep.mubr.msk.f32.mxu1 %vm3782_vm2, %v5192_v58 }
 0x382   : > { %v4688_v31 = vpop.f32.mrf.mxu1 }
 0x384   : > { %v10906_v47 = vpop.f32.mrf.mxu1  ;;  %5694 = vmatmul.mubr.f32.gmra.mxu1 %v5352_v16 }
 0x386   : > { %v4693_v45 = vpop.f32.mrf.mxu1 }
 0x388   : > { %v10910_v43 = vpop.f32.mrf.mxu1 }
 0x38a   : > { %v4698_v18 = vpop.f32.mrf.mxu1 }
 0x38b   : > { %v10908_v2 = vpop.f32.mrf.mxu0 }
 0x38c   : > { %v10914_v15 = vpop.f32.mrf.mxu1 }
 0x38d   : > { %v4939_v57 = vpop.f32.mrf.mxu0 }
 0x38e   : > { %v4703_v60 = vpop.f32.mrf.mxu1 }
 0x38f   : > { %v10912_v51 = vpop.f32.mrf.mxu0 }
 0x390   : > { %v10918_v17 = vpop.f32.mrf.mxu1 }
 0x391   : > { %v4944_v48 = vpop.f32.mrf.mxu0 }
 0x392   : > { %v4708_v37 = vpop.f32.mrf.mxu1 }
 0x393   : > { %v10916_v62 = vpop.f32.mrf.mxu0 }
 0x394   : > { %v10922_v12 = vpop.f32.mrf.mxu1 }
 0x395   : > { %v4949_v23 = vpop.f32.mrf.mxu0 }
 0x396   : > { %v4713_v24 = vpop.f32.mrf.mxu1 }
 0x397   : > { %v10920_v29 = vpop.f32.mrf.mxu0 }
 0x398   : > { %v10926_v42 = vpop.f32.mrf.mxu1 }
 0x399   : > { %v4954_v10 = vpop.f32.mrf.mxu0 }
 0x39a   : > { %v4718_v1 = vpop.f32.mrf.mxu1 }
 0x39b   : > { %v10924_v35 = vpop.f32.mrf.mxu0 }
 0x39c   : > { %v10930_v13 = vpop.f32.mrf.mxu1 }
 0x39d   : > { %v4959_v50 = vpop.f32.mrf.mxu0 }
 0x39e   : > { %v4723_v28 = vpop.f32.mrf.mxu1 }
 0x39f   : > { %v10928_v34 = vpop.f32.mrf.mxu0 }
 0x3a0   : > { %v10934_v44 = vpop.f32.mrf.mxu1 }
 0x3a1   : > { %v4964_v40 = vpop.f32.mrf.mxu0 }
 0x3a2   : > { %v4728_v46 = vpop.f32.mrf.mxu1 }
 0x3a3   : > { %v10932_v5 = vpop.f32.mrf.mxu0 }
 0x3a4   : > { %v10938_v38 = vpop.f32.mrf.mxu1 }
 0x3a5   : > { %v4969_v39 = vpop.f32.mrf.mxu0 }
 0x3a6   : > { %v4733_v3 = vpop.f32.mrf.mxu1 }
 0x3a7   : > { %v10936_v32 = vpop.f32.mrf.mxu0 }
 0x3a8   : > { %v10942_v7 = vpop.f32.mrf.mxu1 }
 0x3a9   : > { %v4974_v0 = vpop.f32.mrf.mxu0 }
 0x3aa   : > { %v4738_v49 = vpop.f32.mrf.mxu1 }
 0x3ab   : > { %v10940_v9 = vpop.f32.mrf.mxu0 }
 0x3ac   : > { %v10946_v14 = vpop.f32.mrf.mxu1 }
 0x3ad   : > { %v4979_v36 = vpop.f32.mrf.mxu0 }
 0x3ae   : > { %v4743_v22 = vpop.f32.mrf.mxu1  ;;  %v4938_v36 = vadd.f32 %v10908_v2, %v10818_v8 }
 0x3af   : > { %v10944_v4 = vpop.f32.mrf.mxu0  ;;  %v10979_v22 = vld [vmem:[%s11485_s4] ss:$0 sm:$0xff] }
 0x3b0   : > { %v10950_v33 = vpop.f32.mrf.mxu1 }
 0x3b1   : > { %v4984_v11 = vpop.f32.mrf.mxu0 }
 0x3b2   : > { %v4748_v58 = vpop.f32.mrf.mxu1 }
 0x3b3   : > { %v10948_v54 = vpop.f32.mrf.mxu0 }
 0x3b4   : > { %v10954_v52 = vpop.f32.mrf.mxu1 }
 0x3b5   : > { %v4989_v61 = vpop.f32.mrf.mxu0 }
 0x3b6   : > { %v4753_v45 = vpop.f32.mrf.mxu1 }
 0x3b7   : > { %v10952_v31 = vpop.f32.mrf.mxu0  ;;  %v4943_v45 = vadd.f32 %v10912_v51, %v10826_v20 }
 0x3b8   : > { %v10958_v18 = vpop.f32.mrf.mxu1 }
 0x3b9   : > { %v4994_v16 = vpop.f32.mrf.mxu0 }
 0x3ba   : > { %v4758_v60 = vpop.f32.mrf.mxu1 }
 0x3bb   : > { %v10956_v57 = vpop.f32.mrf.mxu0 }
 0x3bc   : > { %v10962_v37 = vpop.f32.mrf.mxu1 }
 0x3bd   : > { %v4999_v48 = vpop.f32.mrf.mxu0 }
 0x3be   : > { %v4763_v24 = vpop.f32.mrf.mxu1 }
 0x3bf   : > { %v10960_v23 = vpop.f32.mrf.mxu0 }
 0x3c0   : > { %v10966_v1 = vpop.f32.mrf.mxu1 }
 0x3c1   : > { %v5004_v10 = vpop.f32.mrf.mxu0 }
 0x3c2   : > { %v4768_v28 = vpop.f32.mrf.mxu1 }
 0x3c3   : > { %v10964_v50 = vpop.f32.mrf.mxu0  ;;  %v4948_v28 = vadd.f32 %v10916_v62, %v10832_v6 }
 0x3c4   : > { %v10970_v46 = vpop.f32.mrf.mxu1 }
 0x3c5   : > { %v5009_v40 = vpop.f32.mrf.mxu0 }
 0x3c6   : > { %v4773_v3 = vpop.f32.mrf.mxu1 }
 0x3c7   : > { %v10968_v39 = vpop.f32.mrf.mxu0 }
 0x3c8   : > { %v5540_v11 = vpop.f32.mrf.mxu1 }
 0x3c9   : > { %v5014_v0 = vpop.f32.mrf.mxu0  ;;  %v5699_v61 = vadd.f32 %v5540_v11, %v4938_v36 }
 0x3ca   : > { %v5542_v16 = vpop.f32.mrf.mxu1 }
 0x3cb   : > { %v10974_v49 = vpop.f32.mrf.mxu0  ;;  %v5738_v48 = vadd.f32 %v10979_v22, %v5699_v61 }
 0x3cc   : > { %v5545_v10 = vpop.f32.mrf.mxu1 }
 0x3cd   : > { %v5019_v58 = vpop.f32.mrf.mxu0  ;;  %v5770_v8 = vmax.f32 %v5738_v48, 0.0  ;;  %v5700_v2 = vadd.f32 %v5545_v10, %v4943_v45 }
 0x3ce   : > { %v5547_v40 = vpop.f32.mrf.mxu1  ;;  %v4953_v58 = vadd.f32 %v10920_v29, %v10838_v26 }
 0x3cf   : > { %v10984_v60 = vpop.f32.mrf.mxu0  ;;  %5802 = vst.msk [vmem:[#allocation3] sm:$0xff] %vm3782_vm2, %v5770_v8  ;;  %v5739_v0 = vadd.f32 %v10979_v22, %v5700_v2  ;;  %v4958_v2 = vadd.f32 %v10924_v35, %v10844_v63 }
 0x3d0   : > { %v5550_v36 = vpop.f32.mrf.mxu1 }
 0x3d1   : > { %v5024_v24 = vpop.f32.mrf.mxu0  ;;  %v5771_v20 = vmax.f32 %v5739_v0, 0.0  ;;  %v5701_v51 = vadd.f32 %v5550_v36, %v4948_v28 }
 0x3d2   : > { %v5552_v61 = vpop.f32.mrf.mxu1 }
 0x3d3   : > { %v10990_v3 = vpop.f32.mrf.mxu0  ;;  %5803 = vst.msk [vmem:[#allocation3 + $0x8] sm:$0xff] %vm3782_vm2, %v5771_v20  ;;  %v5740_v16 = vadd.f32 %v10979_v22, %v5701_v51 }
 0x3d4   : > { %v5555_v6 = vpop.f32.mrf.mxu1 }
 0x3d5   : > { %v5029_v11 = vpop.f32.mrf.mxu0  ;;  %v5772_v62 = vmax.f32 %v5740_v16, 0.0  ;;  %v5702_v48 = vadd.f32 %v5555_v6, %v4953_v58 }
 0x3d6   : > { %v5557_v8 = vpop.f32.mrf.mxu1  ;;  %v4963_v11 = vadd.f32 %v10928_v34, %v10850_v21 }
 0x3d7   : > { %v10996_v45 = vpop.f32.mrf.mxu0  ;;  %5804 = vst.msk [vmem:[#allocation3 + $0x10] sm:$0xff] %vm3782_vm2, %v5772_v62  ;;  %v5741_v24 = vadd.f32 %v10979_v22, %v5702_v48  ;;  %v4968_v8 = vadd.f32 %v10932_v5, %v10856_v55 }
 0x3d8   : > { %v5560_v26 = vpop.f32.mrf.mxu1 }
 0x3d9   : > { %v5034_v10 = vpop.f32.mrf.mxu0  ;;  %v5773_v29 = vmax.f32 %v5741_v24, 0.0  ;;  %v5703_v28 = vadd.f32 %v5560_v26, %v4958_v2 }
 0x3da   : > { %v5562_v36 = vpop.f32.mrf.mxu1  ;;  %v5866_v20 = vld [vmem:[#allocation3 + $0x1] ss:$2 sm:$0xff]  ;;  %v11004_v51 = vld [vmem:[#allocation3] ss:$2 sm:$0xff] }
 0x3db   : > { %v11002_v40 = vpop.f32.mrf.mxu0  ;;  %5805 = vst.msk [vmem:[#allocation3 + $0x18] sm:$0xff] %vm3782_vm2, %v5773_v29  ;;  %v5742_v63 = vadd.f32 %v10979_v22, %v5703_v28  ;;  %5913 = vrot.lane.b32.xlu0 %v5866_v20, %s7907_s28  ;;  %v6025_v61 = vsub.f32 0.0, %v11004_v51  ;;  %v6097_v24 = vsub.f32 %v11004_v51, %v5866_v20  ;;  %v5993_v36 = vadd.f32 %v5866_v20, %v11004_v51 }
 0x3dc   : > { %v5565_v58 = vpop.f32.mrf.mxu1 }
 0x3dd   : > { %v5039_v0 = vpop.f32.mrf.mxu0  ;;  %v5774_v16 = vmax.f32 %v5742_v63, 0.0  ;;  %v5704_v6 = vadd.f32 %v5565_v58, %v4963_v11  ;;  %v6065_v48 = vsub.f32 %v6025_v61, %v5866_v20  ;;  %v4973_v11 = vadd.f32 %v10936_v32, %v10862_v56 }
 0x3de   : > { %v5567_v10 = vpop.f32.mrf.mxu1  ;;  %v6033_v0 = vadd.f32 %v6025_v61, %v5866_v20 }
 0x3df   : > { %v11011_v35 = vpop.f32.mrf.mxu0  ;;  %5806 = vst.msk [vmem:[#allocation3 + $0x20] sm:$0xff] %vm3782_vm2, %v5774_v16  ;;  %v5743_v21 = vadd.f32 %v10979_v22, %v5704_v6 }
 0x3e0   : > { %v5570_v2 = vpop.f32.mrf.mxu1 }
 0x3e1   : > { %v5044_v62 = vpop.f32.mrf.mxu0  ;;  %v5775_v26 = vmax.f32 %v5743_v21, 0.0  ;;  %v5705_v29 = vadd.f32 %v5570_v2, %v4968_v8 }
 0x3e2   : > { %v5572_v63 = vpop.f32.mrf.mxu1  ;;  %v5868_v55 = vld [vmem:[#allocation3 + $0x11] ss:$2 sm:$0xff]  ;;  %v11024_v5 = vld [vmem:[#allocation3 + $0x10] ss:$2 sm:$0xff] }
 0x3e3   : > { %v11018_v34 = vpop.f32.mrf.mxu0  ;;  %5807 = vst.msk [vmem:[#allocation3 + $0x28] sm:$0xff] %vm3782_vm2, %v5775_v26  ;;  %v5744_v58 = vadd.f32 %v10979_v22, %v5705_v29  ;;  %5915 = vrot.lane.b32.xlu1 %v5868_v55, %s7907_s28  ;;  %v6041_v6 = vsub.f32 %v6033_v0, %v11024_v5  ;;  %v6105_v61 = vsub.f32 %v6097_v24, %v11024_v5 }
 0x3e4   : > { %v6001_v20 = vadd.f32 %v5993_v36, %v11024_v5  ;;  %v5575_v62 = vpop.f32.mrf.mxu1  ;;  %v6073_v56 = vadd.f32 %v6065_v48, %v11024_v5 }
 0x3e5   : > { %v5049_v28 = vpop.f32.mrf.mxu0  ;;  %v5776_v32 = vmax.f32 %v5744_v58, 0.0  ;;  %v5706_v10 = vadd.f32 %v5575_v62, %v4973_v11  ;;  %v6049_v21 = vadd.f32 %v6041_v6, %v5868_v55  ;;  %v6113_v48 = vadd.f32 %v6105_v61, %v5868_v55 }
 0x3e6   : > { %v5577_v2 = vpop.f32.mrf.mxu1  ;;  %v11035_v26 = vadd.f32 %v6001_v20, %v5868_v55  ;;  %v11037_v29 = vadd.f32 %v6073_v56, %v5868_v55  ;;  %v4978_v28 = vadd.f32 %v10940_v9, %v10868_v30  ;;  %v4983_v30 = vadd.f32 %v10944_v4, %v10874_v41 }
 0x3e7   : > { %v11029_v16 = vpop.f32.mrf.mxu0  ;;  %5808 = vst.msk [vmem:[#allocation3 + $0x30] sm:$0xff] %vm3782_vm2, %v5776_v32  ;;  %v5745_v24 = vadd.f32 %v10979_v22, %v5706_v10  ;;  %v6057_v36 = vmul.f32 0.5, %v6049_v21  ;;  %v6121_v32 = vmul.f32 0.5, %v6113_v48  ;;  %v4988_v41 = vadd.f32 %v10948_v54, %v10880_v27 }
 0x3e8   : > { %v5580_v63 = vpop.f32.mrf.mxu1  ;;  %v4993_v27 = vadd.f32 %v10952_v31, %v10886_v53 }
 0x3e9   : > { %v5054_v8 = vpop.f32.mrf.mxu0  ;;  %v5777_v11 = vmax.f32 %v5745_v24, 0.0  ;;  %v5707_v58 = vadd.f32 %v5580_v63, %v4978_v28  ;;  %6137 = vrot.lane.b32.xlu0 %v6057_v36, %s7907_s28 }
 0x3ea   : > { %v5582_v20 = vpop.f32.mrf.mxu1  ;;  %v11046_v62 = vld [vmem:[#allocation3 + $0x20] ss:$2 sm:$0xff]  ;;  %v5870_v10 = vld [vmem:[#allocation3 + $0x21] ss:$2 sm:$0xff] }
 0x3eb   : > { %v11043_v0 = vpop.f32.mrf.mxu0  ;;  %5809 = vst.msk [vmem:[#allocation3 + $0x38] sm:$0xff] %vm3782_vm2, %v5777_v11  ;;  %v5746_v9 = vadd.f32 %v10979_v22, %v5707_v58  ;;  %v6026_v55 = vsub.f32 0.0, %v11046_v62  ;;  %v6098_v63 = vsub.f32 %v11046_v62, %v5870_v10 }
 0x3ec   : > { %v5585_v61 = vpop.f32.mrf.mxu1 }
 0x3ed   : > { %v5059_v6 = vpop.f32.mrf.mxu0  ;;  %v5778_v8 = vmax.f32 %v5746_v9, 0.0  ;;  %v5708_v21 = vadd.f32 %v5585_v61, %v4983_v30  ;;  %6169 = vrot.lane.b32.xlu0 %v6121_v32, %s7907_s28  ;;  %v6066_v28 = vsub.f32 %v6026_v55, %v5870_v10  ;;  %v6034_v20 = vadd.f32 %v6026_v55, %v5870_v10 }
 0x3ee   : > { %v5587_v24 = vpop.f32.mrf.mxu1  ;;  %v5994_v30 = vadd.f32 %v5870_v10, %v11046_v62 }
 0x3ef   : > { %v11052_v56 = vpop.f32.mrf.mxu0  ;;  %5810 = vst.msk [vmem:[#allocation3 + $0x40] sm:$0xff] %vm3782_vm2, %v5778_v8  ;;  %v5747_v4 = vadd.f32 %v10979_v22, %v5708_v21 }
 0x3f0   : > { %v5590_v48 = vpop.f32.mrf.mxu1 }
 0x3f1   : > { %v5064_v2 = vpop.f32.mrf.mxu0  ;;  %v5779_v11 = vmax.f32 %v5747_v4, 0.0  ;;  %v5709_v58 = vadd.f32 %v5590_v48, %v4988_v41  ;;  %5917 = vrot.lane.b32.xlu0 %v5870_v10, %s7907_s28 }
 0x3f2   : > { %v5592_v54 = vpop.f32.mrf.mxu1  ;;  %v5872_v9 = vld [vmem:[#allocation3 + $0x31] ss:$2 sm:$0xff]  ;;  %v11067_v32 = vld [vmem:[#allocation3 + $0x30] ss:$2 sm:$0xff] }
 0x3f3   : > { %v11060_v36 = vpop.f32.mrf.mxu0  ;;  %5811 = vst.msk [vmem:[#allocation3 + $0x48] sm:$0xff] %vm3782_vm2, %v5779_v11  ;;  %v5748_v61 = vadd.f32 %v10979_v22, %v5709_v58  ;;  %5919 = vrot.lane.b32.xlu1 %v5872_v9, %s7907_s28  ;;  %v6042_v21 = vsub.f32 %v6034_v20, %v11067_v32  ;;  %v6106_v55 = vsub.f32 %v6098_v63, %v11067_v32 }
 0x3f4   : > { %v6002_v10 = vadd.f32 %v5994_v30, %v11067_v32  ;;  %v5595_v2 = vpop.f32.mrf.mxu1  ;;  %v6074_v53 = vadd.f32 %v6066_v28, %v11067_v32 }
 0x3f5   : > { %v5069_v6 = vpop.f32.mrf.mxu0  ;;  %v5780_v31 = vmax.f32 %v5748_v61, 0.0  ;;  %v5710_v24 = vadd.f32 %v5595_v2, %v4993_v27  ;;  %v6050_v4 = vadd.f32 %v6042_v21, %v5872_v9  ;;  %v6114_v28 = vadd.f32 %v6106_v55, %v5872_v9 }
 0x3f6   : > { %v5597_v48 = vpop.f32.mrf.mxu1  ;;  %v11078_v11 = vadd.f32 %v6002_v10, %v5872_v9  ;;  %v11080_v58 = vadd.f32 %v6074_v53, %v5872_v9  ;;  %v4998_v6 = vadd.f32 %v10956_v57, %v10892_v25  ;;  %v5003_v25 = vadd.f32 %v10960_v23, %v10898_v59 }
 0x3f7   : > { %v11072_v8 = vpop.f32.mrf.mxu0  ;;  %5812 = vst.msk [vmem:[#allocation3 + $0x50] sm:$0xff] %vm3782_vm2, %v5780_v31  ;;  %v5749_v63 = vadd.f32 %v10979_v22, %v5710_v24  ;;  %v6058_v30 = vmul.f32 0.5, %v6050_v4  ;;  %v6122_v55 = vmul.f32 0.5, %v6114_v28  ;;  %v5008_v59 = vadd.f32 %v10964_v50, %v10902_v19 }
 0x3f8   : > { %v5600_v54 = vpop.f32.mrf.mxu1 }
 0x3f9   : > { %v5074_v41 = vpop.f32.mrf.mxu0  ;;  %v5781_v27 = vmax.f32 %v5749_v63, 0.0  ;;  %v5711_v61 = vadd.f32 %v5600_v54, %v4998_v6  ;;  %6139 = vrot.lane.b32.xlu1 %v6058_v30, %s7907_s28 }
 0x3fa   : > { %v5602_v10 = vpop.f32.mrf.mxu1  ;;  %v5874_v2 = vld [vmem:[#allocation3 + $0x41] ss:$2 sm:$0xff]  ;;  %v11089_v53 = vld [vmem:[#allocation3 + $0x40] ss:$2 sm:$0xff] }
 0x3fb   : > { %v11086_v20 = vpop.f32.mrf.mxu0  ;;  %5813 = vst.msk [vmem:[#allocation3 + $0x58] sm:$0xff] %vm3782_vm2, %v5781_v27  ;;  %v5750_v57 = vadd.f32 %v10979_v22, %v5711_v61  ;;  %5921 = vrot.lane.b32.xlu0 %v5874_v2, %s7907_s28  ;;  %v6027_v31 = vsub.f32 0.0, %v11089_v53  ;;  %v6099_v54 = vsub.f32 %v11089_v53, %v5874_v2 }
 0x3fc   : > { %v5605_v24 = vpop.f32.mrf.mxu1 }
 0x3fd   : > { %v5079_v21 = vpop.f32.mrf.mxu0  ;;  %v5782_v41 = vmax.f32 %v5750_v57, 0.0  ;;  %v5712_v4 = vadd.f32 %v5605_v24, %v5003_v25  ;;  %6171 = vrot.lane.b32.xlu1 %v6122_v55, %s7907_s28  ;;  %v6067_v6 = vsub.f32 %v6027_v31, %v5874_v2  ;;  %v6035_v10 = vadd.f32 %v6027_v31, %v5874_v2 }
 0x3fe   : > { %v5607_v63 = vpop.f32.mrf.mxu1  ;;  %v5995_v25 = vadd.f32 %v5874_v2, %v11089_v53  ;;  %v5013_v57 = vadd.f32 %v10968_v39, %v10906_v47 }
 0x3ff   : > { %v11096_v9 = vpop.f32.mrf.mxu0  ;;  %5814 = vst.msk [vmem:[#allocation3 + $0x60] sm:$0xff] %vm3782_vm2, %v5782_v41  ;;  %v5751_v23 = vadd.f32 %v10979_v22, %v5712_v4 }
 0x400   : > { %v5610_v28 = vpop.f32.mrf.mxu1 }
 0x401   : > { %v5084_v48 = vpop.f32.mrf.mxu0  ;;  %v5783_v27 = vmax.f32 %v5751_v23, 0.0  ;;  %v5713_v61 = vadd.f32 %v5610_v28, %v5008_v59 }
 0x402   : > { %v5612_v55 = vpop.f32.mrf.mxu1  ;;  %v5876_v19 = vld [vmem:[#allocation3 + $0x51] ss:$2 sm:$0xff]  ;;  %v11110_v50 = vld [vmem:[#allocation3 + $0x50] ss:$2 sm:$0xff] }
 0x403   : > { %v11104_v30 = vpop.f32.mrf.mxu0  ;;  %5815 = vst.msk [vmem:[#allocation3 + $0x68] sm:$0xff] %vm3782_vm2, %v5783_v27  ;;  %v5752_v24 = vadd.f32 %v10979_v22, %v5713_v61  ;;  %5923 = vrot.lane.b32.xlu1 %v5876_v19, %s7907_s28  ;;  %v6043_v4 = vsub.f32 %v6035_v10, %v11110_v50  ;;  %v6107_v31 = vsub.f32 %v6099_v54, %v11110_v50 }
 0x404   : > { %v6003_v2 = vadd.f32 %v5995_v25, %v11110_v50  ;;  %v5615_v48 = vpop.f32.mrf.mxu1  ;;  %v6075_v47 = vadd.f32 %v6067_v6, %v11110_v50 }
 0x405   : > { %v5089_v21 = vpop.f32.mrf.mxu0  ;;  %v5784_v39 = vmax.f32 %v5752_v24, 0.0  ;;  %v5714_v63 = vadd.f32 %v5615_v48, %v5013_v57  ;;  %v6051_v23 = vadd.f32 %v6043_v4, %v5876_v19  ;;  %v6115_v25 = vadd.f32 %v6107_v31, %v5876_v19 }
 0x406   : > { %v5617_v28 = vpop.f32.mrf.mxu1  ;;  %v11121_v27 = vadd.f32 %v6003_v2, %v5876_v19  ;;  %v11123_v61 = vadd.f32 %v6075_v47, %v5876_v19  ;;  %v5018_v21 = vadd.f32 %v10974_v49, %v10910_v43  ;;  %v5023_v2 = vadd.f32 %v10984_v60, %v10914_v15 }
 0x407   : > { %v11115_v41 = vpop.f32.mrf.mxu0  ;;  %5816 = vst.msk [vmem:[#allocation3 + $0x70] sm:$0xff] %vm3782_vm2, %v5784_v39  ;;  %v5753_v54 = vadd.f32 %v10979_v22, %v5714_v63  ;;  %v6059_v10 = vmul.f32 0.5, %v6051_v23  ;;  %v6123_v49 = vmul.f32 0.5, %v6115_v25  ;;  %v5028_v23 = vadd.f32 %v10990_v3, %v10918_v17 }
 0x408   : > { %v5620_v55 = vpop.f32.mrf.mxu1 }
 0x409   : > { %v5094_v59 = vpop.f32.mrf.mxu0  ;;  %v5785_v6 = vmax.f32 %v5753_v54, 0.0  ;;  %v5715_v24 = vadd.f32 %v5620_v55, %v5018_v21  ;;  %6141 = vrot.lane.b32.xlu0 %v6059_v10, %s7907_s28  ;;  %v5033_v55 = vadd.f32 %v10996_v45, %v10922_v12 }
 0x40a   : > { %v5622_v57 = vpop.f32.mrf.mxu1  ;;  %v11130_v4 = vld [vmem:[#allocation3 + $0x60] ss:$2 sm:$0xff]  ;;  %v5878_v19 = vld [vmem:[#allocation3 + $0x61] ss:$2 sm:$0xff] }
 0x40b   : > { %5817 = vst.msk [vmem:[#allocation3 + $0x78] sm:$0xff] %vm3782_vm2, %v5785_v6  ;;  %v5754_v43 = vadd.f32 %v10979_v22, %v5715_v24  ;;  %v6028_v48 = vsub.f32 0.0, %v11130_v4  ;;  %v6100_v28 = vsub.f32 %v11130_v4, %v5878_v19  ;;  %v5996_v25 = vadd.f32 %v5878_v19, %v11130_v4 }
 0x40c   : > { %v5625_v47 = vpop.f32.mrf.mxu1 }
 0x40d   : > { %v5786_v31 = vmax.f32 %v5754_v43, 0.0  ;;  %v5716_v39 = vadd.f32 %v5625_v47, %v5023_v2  ;;  %6173 = vrot.lane.b32.xlu0 %v6123_v49, %s7907_s28  ;;  %v6068_v63 = vsub.f32 %v6028_v48, %v5878_v19  ;;  %v6036_v10 = vadd.f32 %v6028_v48, %v5878_v19 }
 0x40e   : > { %v5627_v59 = vpop.f32.mrf.mxu1 }
 0x40f   : > { %5818 = vst.msk [vmem:[#allocation3 + $0x80] sm:$0xff] %vm3782_vm2, %v5786_v31  ;;  %v5755_v15 = vadd.f32 %v10979_v22, %v5716_v39  ;;  %v5038_v59 = vadd.f32 %v11002_v40, %v10926_v42 }
 0x410   : > { %v5630_v60 = vpop.f32.mrf.mxu1 }
 0x411   : > { %v5787_v21 = vmax.f32 %v5755_v15, 0.0  ;;  %v5717_v54 = vadd.f32 %v5630_v60, %v5028_v23  ;;  %5925 = vrot.lane.b32.xlu0 %v5878_v19, %s7907_s28 }
 0x412   : > { %v5632_v6 = vpop.f32.mrf.mxu1  ;;  %v5880_v24 = vld [vmem:[#allocation3 + $0x71] ss:$2 sm:$0xff]  ;;  %v11147_v17 = vld [vmem:[#allocation3 + $0x70] ss:$2 sm:$0xff] }
 0x413   : > { %5819 = vst.msk [vmem:[#allocation3 + $0x88] sm:$0xff] %vm3782_vm2, %v5787_v21  ;;  %v5756_v3 = vadd.f32 %v10979_v22, %v5717_v54  ;;  %5927 = vrot.lane.b32.xlu1 %v5880_v24, %s7907_s28  ;;  %v6044_v57 = vsub.f32 %v6036_v10, %v11147_v17  ;;  %v6108_v2 = vsub.f32 %v6100_v28, %v11147_v17 }
 0x414   : > { %v6004_v43 = vadd.f32 %v5996_v25, %v11147_v17  ;;  %v5635_v49 = vpop.f32.mrf.mxu1  ;;  %v6076_v48 = vadd.f32 %v6068_v63, %v11147_v17 }
 0x415   : > { %v5788_v12 = vmax.f32 %v5756_v3, 0.0  ;;  %v5718_v45 = vadd.f32 %v5635_v49, %v5033_v55  ;;  %v6052_v47 = vadd.f32 %v6044_v57, %v5880_v24  ;;  %v6116_v60 = vadd.f32 %v6108_v2, %v5880_v24 }
 0x416   : > { %v5637_v19 = vpop.f32.mrf.mxu1  ;;  %v11156_v31 = vadd.f32 %v6004_v43, %v5880_v24  ;;  %v11158_v39 = vadd.f32 %v6076_v48, %v5880_v24  ;;  %v5043_v55 = vadd.f32 %v11011_v35, %v10930_v13  ;;  %v5048_v49 = vadd.f32 %v11018_v34, %v10934_v44 }
 0x417   : > { %5820 = vst.msk [vmem:[#allocation3 + $0x90] sm:$0xff] %vm3782_vm2, %v5788_v12  ;;  %v5757_v23 = vadd.f32 %v10979_v22, %v5718_v45  ;;  %v6060_v15 = vmul.f32 0.5, %v6052_v47  ;;  %v6124_v40 = vmul.f32 0.5, %v6116_v60 }
 0x418   : > { %v5640_v28 = vpop.f32.mrf.mxu1 }
 0x419   : > { %v5789_v21 = vmax.f32 %v5757_v23, 0.0  ;;  %v5719_v63 = vadd.f32 %v5640_v28, %v5038_v59  ;;  %6143 = vrot.lane.b32.xlu1 %v6060_v15, %s7907_s28  ;;  %v5053_v59 = vadd.f32 %v11029_v16, %v10938_v38 }
 0x41a   : > { %v5642_v54 = vpop.f32.mrf.mxu1  ;;  %v5882_v10 = vld [vmem:[#allocation3 + $0x81] ss:$2 sm:$0xff]  ;;  %v11165_v25 = vld [vmem:[#allocation3 + $0x80] ss:$2 sm:$0xff] }
 0x41b   : > { %5821 = vst.msk [vmem:[#allocation3 + $0x98] sm:$0xff] %vm3782_vm2, %v5789_v21  ;;  %v5758_v42 = vadd.f32 %v10979_v22, %v5719_v63  ;;  %5929 = vrot.lane.b32.xlu0 %v5882_v10, %s7907_s28  ;;  %v6029_v6 = vsub.f32 0.0, %v11165_v25  ;;  %v6101_v48 = vsub.f32 %v11165_v25, %v5882_v10  ;;  %v5997_v19 = vadd.f32 %v5882_v10, %v11165_v25 }
 0x41c   : > { %v5645_v24 = vpop.f32.mrf.mxu1 }
 0x41d   : > { %v5790_v3 = vmax.f32 %v5758_v42, 0.0  ;;  %v5720_v57 = vadd.f32 %v5645_v24, %v5043_v55  ;;  %6175 = vrot.lane.b32.xlu1 %v6124_v40, %s7907_s28  ;;  %v6069_v2 = vsub.f32 %v6029_v6, %v5882_v10  ;;  %v6037_v47 = vadd.f32 %v6029_v6, %v5882_v10 }
 0x41e   : > { %v5647_v43 = vpop.f32.mrf.mxu1  ;;  %v5058_v6 = vadd.f32 %v11043_v0, %v10942_v7 }
 0x41f   : > { %5822 = vst.msk [vmem:[#allocation3 + $0xa0] sm:$0xff] %vm3782_vm2, %v5790_v3  ;;  %v5759_v13 = vadd.f32 %v10979_v22, %v5720_v57 }
 0x420   : > { %v5650_v35 = vpop.f32.mrf.mxu1 }
 0x421   : > { %v5791_v12 = vmax.f32 %v5759_v13, 0.0  ;;  %v5721_v45 = vadd.f32 %v5650_v35, %v5048_v49 }
 0x422   : > { %v5652_v23 = vpop.f32.mrf.mxu1  ;;  %v5884_v15 = vld [vmem:[#allocation3 + $0x91] ss:$2 sm:$0xff]  ;;  %v11182_v60 = vld [vmem:[#allocation3 + $0x90] ss:$2 sm:$0xff] }
 0x423   : > { %5823 = vst.msk [vmem:[#allocation3 + $0xa8] sm:$0xff] %vm3782_vm2, %v5791_v12  ;;  %v5760_v44 = vadd.f32 %v10979_v22, %v5721_v45  ;;  %5931 = vrot.lane.b32.xlu1 %v5884_v15, %s7907_s28  ;;  %v6045_v34 = vsub.f32 %v6037_v47, %v11182_v60  ;;  %v6109_v28 = vsub.f32 %v6101_v48, %v11182_v60 }
 0x424   : > { %v6005_v21 = vadd.f32 %v5997_v19, %v11182_v60  ;;  %v5655_v63 = vpop.f32.mrf.mxu1  ;;  %v6077_v54 = vadd.f32 %v6069_v2, %v11182_v60  ;;  %v5063_v48 = vadd.f32 %v11052_v56, %v10946_v14 }
 0x425   : > { %v5792_v38 = vmax.f32 %v5760_v44, 0.0  ;;  %v5722_v16 = vadd.f32 %v5655_v63, %v5053_v59  ;;  %v6053_v10 = vadd.f32 %v6045_v34, %v5884_v15  ;;  %v6117_v57 = vadd.f32 %v6109_v28, %v5884_v15 }
 0x426   : > { %v5657_v55 = vpop.f32.mrf.mxu1  ;;  %v11191_v42 = vadd.f32 %v6005_v21, %v5884_v15  ;;  %v11193_v40 = vadd.f32 %v6077_v54, %v5884_v15  ;;  %v5068_v44 = vadd.f32 %v11060_v36, %v10950_v33 }
 0x427   : > { %5824 = vst.msk [vmem:[#allocation3 + $0xb0] sm:$0xff] %vm3782_vm2, %v5792_v38  ;;  %v5761_v24 = vadd.f32 %v10979_v22, %v5722_v16  ;;  %v6061_v3 = vmul.f32 0.5, %v6053_v10  ;;  %v6125_v0 = vmul.f32 0.5, %v6117_v57  ;;  %v5073_v38 = vadd.f32 %v11072_v8, %v10954_v52 }
 0x428   : > { %v5660_v43 = vpop.f32.mrf.mxu1 }
 0x429   : > { %v5793_v49 = vmax.f32 %v5761_v24, 0.0  ;;  %v5723_v2 = vadd.f32 %v5660_v43, %v5058_v6  ;;  %6145 = vrot.lane.b32.xlu0 %v6061_v3, %s7907_s28 }
 0x42a   : > { %v5662_v13 = vpop.f32.mrf.mxu1  ;;  %v11200_v35 = vld [vmem:[#allocation3 + $0xa0] ss:$2 sm:$0xff]  ;;  %v5886_v47 = vld [vmem:[#allocation3 + $0xa1] ss:$2 sm:$0xff] }
 0x42b   : > { %5825 = vst.msk [vmem:[#allocation3 + $0xb8] sm:$0xff] %vm3782_vm2, %v5793_v49  ;;  %v5762_v7 = vadd.f32 %v10979_v22, %v5723_v2  ;;  %v6030_v12 = vsub.f32 0.0, %v11200_v35  ;;  %v6102_v34 = vsub.f32 %v11200_v35, %v5886_v47  ;;  %v5998_v54 = vadd.f32 %v5886_v47, %v11200_v35 }
 0x42c   : > { %v5665_v45 = vpop.f32.mrf.mxu1 }
 0x42d   : > { %v5794_v19 = vmax.f32 %v5762_v7, 0.0  ;;  %v5724_v59 = vadd.f32 %v5665_v45, %v5063_v48  ;;  %6177 = vrot.lane.b32.xlu0 %v6125_v0, %s7907_s28  ;;  %v6070_v23 = vsub.f32 %v6030_v12, %v5886_v47  ;;  %v6038_v63 = vadd.f32 %v6030_v12, %v5886_v47 }
 0x42e   : > { %v5667_v15 = vpop.f32.mrf.mxu1  ;;  %v5078_v48 = vadd.f32 %v11086_v20, %v10958_v18 }
 0x42f   : > { %5826 = vst.msk [vmem:[#allocation3 + $0xc0] sm:$0xff] %vm3782_vm2, %v5794_v19  ;;  %v5763_v14 = vadd.f32 %v10979_v22, %v5724_v59 }
 0x430   : > { %v5670_v56 = vpop.f32.mrf.mxu1 }
 0x431   : > { %v5795_v28 = vmax.f32 %v5763_v14, 0.0  ;;  %v5725_v21 = vadd.f32 %v5670_v56, %v5068_v44  ;;  %5933 = vrot.lane.b32.xlu0 %v5886_v47, %s7907_s28  ;;  %v5083_v44 = vadd.f32 %v11096_v9, %v10962_v37 }
 0x432   : > { %v5672_v16 = vpop.f32.mrf.mxu1  ;;  %v5888_v10 = vld [vmem:[#allocation3 + $0xb1] ss:$2 sm:$0xff]  ;;  %v11217_v33 = vld [vmem:[#allocation3 + $0xb0] ss:$2 sm:$0xff] }
 0x433   : > { %5827 = vst.msk [vmem:[#allocation3 + $0xc8] sm:$0xff] %vm3782_vm2, %v5795_v28  ;;  %v5764_v36 = vadd.f32 %v10979_v22, %v5725_v21  ;;  %5935 = vrot.lane.b32.xlu1 %v5888_v10, %s7907_s28  ;;  %v6046_v55 = vsub.f32 %v6038_v63, %v11217_v33  ;;  %v6110_v6 = vsub.f32 %v6102_v34, %v11217_v33 }
 0x434   : > { %v6006_v24 = vadd.f32 %v5998_v54, %v11217_v33  ;;  %v5675_v3 = vpop.f32.mrf.mxu1  ;;  %v6078_v57 = vadd.f32 %v6070_v23, %v11217_v33  ;;  %v5088_v54 = vadd.f32 %v11104_v30, %v10966_v1 }
 0x435   : > { %v5796_v52 = vmax.f32 %v5764_v36, 0.0  ;;  %v5726_v8 = vadd.f32 %v5675_v3, %v5073_v38  ;;  %v6054_v43 = vadd.f32 %v6046_v55, %v5888_v10  ;;  %v6118_v12 = vadd.f32 %v6110_v6, %v5888_v10 }
 0x436   : > { %v5677_v49 = vpop.f32.mrf.mxu1  ;;  %v11226_v2 = vadd.f32 %v6006_v24, %v5888_v10  ;;  %v11228_v13 = vadd.f32 %v6078_v57, %v5888_v10  ;;  %v5093_v3 = vadd.f32 %v11115_v41, %v10970_v46 }
 0x437   : > { %5828 = vst.msk [vmem:[#allocation3 + $0xd0] sm:$0xff] %vm3782_vm2, %v5796_v52  ;;  %v5765_v7 = vadd.f32 %v10979_v22, %v5726_v8  ;;  %v6062_v0 = vmul.f32 0.5, %v6054_v43  ;;  %v6126_v20 = vmul.f32 0.5, %v6118_v12 }
 0x438   : > { %v5680_v45 = vpop.f32.mrf.mxu1 }
 0x439   : > { %v5797_v47 = vmax.f32 %v5765_v7, 0.0  ;;  %v5727_v19 = vadd.f32 %v5680_v45, %v5078_v48  ;;  %6147 = vrot.lane.b32.xlu1 %v6062_v0, %s7907_s28 }
 0x43a   : > { %v5682_v59 = vpop.f32.mrf.mxu1  ;;  %v5890_v23 = vld [vmem:[#allocation3 + $0xc1] ss:$2 sm:$0xff]  ;;  %v11235_v15 = vld [vmem:[#allocation3 + $0xc0] ss:$2 sm:$0xff] }
 0x43b   : > { %5829 = vst.msk [vmem:[#allocation3 + $0xd8] sm:$0xff] %vm3782_vm2, %v5797_v47  ;;  %v5766_v18 = vadd.f32 %v10979_v22, %v5727_v19  ;;  %5937 = vrot.lane.b32.xlu0 %v5890_v23, %s7907_s28  ;;  %v6031_v14 = vsub.f32 0.0, %v11235_v15  ;;  %v5999_v36 = vadd.f32 %v5890_v23, %v11235_v15  ;;  %v6103_v7 = vsub.f32 %v11235_v15, %v5890_v23 }
 0x43c   : > { %v5685_v56 = vpop.f32.mrf.mxu1 }
 0x43d   : > { %v5798_v34 = vmax.f32 %v5766_v18, 0.0  ;;  %v5728_v28 = vadd.f32 %v5685_v56, %v5083_v44  ;;  %6179 = vrot.lane.b32.xlu1 %v6126_v20, %s7907_s28  ;;  %v6071_v21 = vsub.f32 %v6031_v14, %v5890_v23  ;;  %v6039_v10 = vadd.f32 %v6031_v14, %v5890_v23 }
 0x43e   : > { %v5687_v63 = vpop.f32.mrf.mxu1 }
 0x43f   : > { %5830 = vst.msk [vmem:[#allocation3 + $0xe0] sm:$0xff] %vm3782_vm2, %v5798_v34  ;;  %v5767_v37 = vadd.f32 %v10979_v22, %v5728_v28 }
 0x440   : > { %v5690_v9 = vpop.f32.mrf.mxu1 }
 0x441   : > { %v5799_v38 = vmax.f32 %v5767_v37, 0.0  ;;  %v5729_v16 = vadd.f32 %v5690_v9, %v5088_v54 }
 0x442   : > { %v5692_v55 = vpop.f32.mrf.mxu1  ;;  %v5892_v6 = vld [vmem:[#allocation3 + $0xd1] ss:$2 sm:$0xff]  ;;  %v11249_v24 = vld [vmem:[#allocation3 + $0xd0] ss:$2 sm:$0xff] }
 0x443   : > { %5831 = vst.msk [vmem:[#allocation3 + $0xe8] sm:$0xff] %vm3782_vm2, %v5799_v38  ;;  %v5768_v1 = vadd.f32 %v10979_v22, %v5729_v16  ;;  %5939 = vrot.lane.b32.xlu1 %v5892_v6, %s7907_s28  ;;  %v6047_v30 = vsub.f32 %v6039_v10, %v11249_v24  ;;  %v6007_v57 = vadd.f32 %v5999_v36, %v11249_v24 }
 0x444   : > { %v5695_v52 = vpop.f32.mrf.mxu1  ;;  %v6079_v8 = vadd.f32 %v6071_v21, %v11249_v24  ;;  %v6111_v47 = vsub.f32 %v6103_v7, %v11249_v24 }
 0x445   : > { %v5800_v43 = vmax.f32 %v5768_v1, 0.0  ;;  %v5730_v49 = vadd.f32 %v5695_v52, %v5093_v3  ;;  %v6055_v48 = vadd.f32 %v6047_v30, %v5892_v6  ;;  %v11263_v46 = vadd.f32 %v6007_v57, %v5892_v6 }
 0x446   : > { %v5697_v0 = vpop.f32.mrf.mxu1  ;;  %v11265_v41 = vadd.f32 %v6079_v8, %v5892_v6  ;;  %v6119_v23 = vadd.f32 %v6111_v47, %v5892_v6  ;;  %v6017_v30 = vmul.f32 0.5, %v11035_v26 }
 0x447   : > { %5832 = vst.msk [vmem:[#allocation3 + $0xf0] sm:$0xff] %vm3782_vm2, %v5800_v43  ;;  %v5769_v12 = vadd.f32 %v10979_v22, %v5730_v49  ;;  %v6063_v45 = vmul.f32 0.5, %v6055_v48 }
 0x448   : > { %v6127_v56 = vmul.f32 0.5, %v6119_v23 }
 0x449   : > { %v5801_v19 = vmax.f32 %v5769_v12, 0.0  ;;  %6149 = vrot.lane.b32.xlu0 %v6063_v45, %s7907_s28  ;;  %v6018_v12 = vmul.f32 0.5, %v11078_v11 }
 0x44a   : > { %v11272_v59 = vld [vmem:[#allocation3 + $0xe0] ss:$2 sm:$0xff]  ;;  %v5894_v18 = vld [vmem:[#allocation3 + $0xe1] ss:$2 sm:$0xff] }
 0x44b   : > { %5833 = vst.msk [vmem:[#allocation3 + $0xf8] sm:$0xff] %vm3782_vm2, %v5801_v19  ;;  %v6032_v44 = vsub.f32 0.0, %v11272_v59  ;;  %v6104_v28 = vsub.f32 %v11272_v59, %v5894_v18  ;;  %v6000_v21 = vadd.f32 %v5894_v18, %v11272_v59 }
 0x44d   : > { %v5914_v20 = vpop.permute.xlu0 %5913  ;;  %5941 = vrot.lane.b32.xlu0 %v5894_v18, %s7907_s28  ;;  %v6072_v14 = vsub.f32 %v6032_v44, %v5894_v18  ;;  %v6040_v34 = vadd.f32 %v6032_v44, %v5894_v18  ;;  %v6019_v18 = vmul.f32 0.5, %v11121_v27 }
 0x44e   : > { %v5961_v22 = vsel %vm3782_vm2, %v11004_v51, %v5914_v20 }
 0x44f   : > { %5977 = vst [vmem:[%s11281_s10] sm:$0xff] %v5961_v22 }
 0x451   : > { %6181 = vrot.lane.b32.xlu0 %v6127_v56, %s7907_s28 }
 0x452   : > { %v5896_v63 = vld [vmem:[#allocation3 + $0xf1] ss:$2 sm:$0xff]  ;;  %v11287_v54 = vld [vmem:[#allocation3 + $0xf0] ss:$2 sm:$0xff] }
 0x453   : > { %5943 = vrot.lane.b32.xlu1 %v5896_v63, %s7907_s28  ;;  %v6048_v51 = vsub.f32 %v6040_v34, %v11287_v54  ;;  %v6112_v37 = vsub.f32 %v6104_v28, %v11287_v54  ;;  %v6008_v9 = vadd.f32 %v6000_v21, %v11287_v54  ;;  %v6080_v38 = vadd.f32 %v6072_v14, %v11287_v54 }
 0x454   : > { %v6020_v28 = vmul.f32 0.5, %v11156_v31 }
 0x455   : > { %v5916_v16 = vpop.permute.xlu1 %5915  ;;  %v6056_v10 = vadd.f32 %v6048_v51, %v5896_v63  ;;  %v11294_v36 = vadd.f32 %v6008_v9, %v5896_v63  ;;  %v11296_v55 = vadd.f32 %v6080_v38, %v5896_v63  ;;  %v6120_v1 = vadd.f32 %v6112_v37, %v5896_v63 }
 0x456   : > { %v5962_v6 = vsel %vm3782_vm2, %v11024_v5, %v5916_v16  ;;  %v6089_v5 = vmul.f32 0.5, %v11037_v29  ;;  %v6021_v38 = vmul.f32 0.5, %v11191_v42 }
 0x457   : > { %5978 = vst [vmem:[%s11281_s10 + $0x8] sm:$0xff] %v5962_v6  ;;  %v6064_v3 = vmul.f32 0.5, %v6056_v10  ;;  %v6128_v52 = vmul.f32 0.5, %v6120_v1 }
 0x459   : > { %6151 = vrot.lane.b32.xlu1 %v6064_v3, %s7907_s28 }
 0x45b   : > { %v6138_v57 = vpop.permute.xlu0 %6137 }
 0x45c   : > { %v6193_v8 = vsel %vm3782_vm2, %v6017_v30, %v6138_v57  ;;  %v6022_v30 = vmul.f32 0.5, %v11226_v2 }
 0x45d   : > { %6209 = vst [vmem:[%s11306_s11] sm:$0xff] %v6193_v8  ;;  %6183 = vrot.lane.b32.xlu1 %v6128_v52, %s7907_s28  ;;  %s7012_s28 = sshll.u32 %s7970_s25, 11 }
 0x45e   : > { %s11394_s15 = scalar_lea.hbm %s11486_s5, %s7012_s28 }
 0x45f   : > { %v6170_v43 = vpop.permute.xlu0 %6169 }
 0x460   : > { %v6201_v26 = vsel %vm3782_vm2, %v6089_v5, %v6170_v43 }
 0x461   : > { %6210 = vst [vmem:[%s11306_s11 + $0x8] sm:$0xff] %v6201_v26  ;;  %v6023_v26 = vmul.f32 0.5, %v11263_v46 }
 0x463   : > { %v5918_v49 = vpop.permute.xlu0 %5917 }
 0x464   : > { %v5963_v48 = vsel %vm3782_vm2, %v11046_v62, %v5918_v49  ;;  %v6090_v62 = vmul.f32 0.5, %v11080_v58  ;;  %v6091_v58 = vmul.f32 0.5, %v11123_v61 }
 0x465   : > { %5979 = vst [vmem:[%s11281_s10 + $0x10] sm:$0xff] %v5963_v48  ;;  %v5920_v7 = vpop.permute.xlu1 %5919 }
 0x466   : > { %v5964_v0 = vsel %vm3782_vm2, %v11067_v32, %v5920_v7 }
 0x467   : > { %5980 = vst [vmem:[%s11281_s10 + $0x18] sm:$0xff] %v5964_v0 }
 0x46b   : > { %v6140_v29 = vpop.permute.xlu1 %6139 }
 0x46c   : > { %v6194_v45 = vsel %vm3782_vm2, %v6018_v12, %v6140_v29 }
 0x46d   : > { %6211 = vst [vmem:[%s11306_s11 + $0x10] sm:$0xff] %v6194_v45  ;;  %v5922_v47 = vpop.permute.xlu0 %5921 }
 0x46e   : > { %v5965_v19 = vsel %vm3782_vm2, %v11089_v53, %v5922_v47 }
 0x46f   : > { %5981 = vst [vmem:[%s11281_s10 + $0x20] sm:$0xff] %v5965_v19  ;;  %v6172_v23 = vpop.permute.xlu1 %6171 }
 0x470   : > { %v6202_v32 = vsel %vm3782_vm2, %v6090_v62, %v6172_v23 }
 0x471   : > { %6212 = vst [vmem:[%s11306_s11 + $0x18] sm:$0xff] %v6202_v32 }
 0x475   : > { %v5924_v44 = vpop.permute.xlu1 %5923 }
 0x476   : > { %v5966_v11 = vsel %vm3782_vm2, %v11110_v50, %v5924_v44 }
 0x477   : > { %5982 = vst [vmem:[%s11281_s10 + $0x28] sm:$0xff] %v5966_v11 }
 0x47b   : > { %v6142_v20 = vpop.permute.xlu0 %6141 }
 0x47c   : > { %v6195_v53 = vsel %vm3782_vm2, %v6019_v18, %v6142_v20 }
 0x47d   : > { %6213 = vst [vmem:[%s11306_s11 + $0x20] sm:$0xff] %v6195_v53 }
 0x47f   : > { %v6174_v14 = vpop.permute.xlu0 %6173 }
 0x480   : > { %v6203_v22 = vsel %vm3782_vm2, %v6091_v58, %v6174_v14 }
 0x481   : > { %6214 = vst [vmem:[%s11306_s11 + $0x28] sm:$0xff] %v6203_v22 }
 0x483   : > { %v5926_v56 = vpop.permute.xlu0 %5925 }
 0x484   : > { %v5967_v50 = vsel %vm3782_vm2, %v11130_v4, %v5926_v56  ;;  %v6092_v4 = vmul.f32 0.5, %v11158_v39  ;;  %v6093_v39 = vmul.f32 0.5, %v11193_v40 }
 0x485   : > { %5983 = vst [vmem:[%s11281_s10 + $0x30] sm:$0xff] %v5967_v50  ;;  %v5928_v34 = vpop.permute.xlu1 %5927 }
 0x486   : > { %v5968_v27 = vsel %vm3782_vm2, %v11147_v17, %v5928_v34 }
 0x487   : > { %5984 = vst [vmem:[%s11281_s10 + $0x38] sm:$0xff] %v5968_v27 }
 0x48b   : > { %v6144_v61 = vpop.permute.xlu1 %6143 }
 0x48c   : > { %v6196_v21 = vsel %vm3782_vm2, %v6020_v28, %v6144_v61 }
 0x48d   : > { %6215 = vst [vmem:[%s11306_s11 + $0x30] sm:$0xff] %v6196_v21  ;;  %v5930_v63 = vpop.permute.xlu0 %5929 }
 0x48e   : > { %v5969_v51 = vsel %vm3782_vm2, %v11165_v25, %v5930_v63 }
 0x48f   : > { %5985 = vst [vmem:[%s11281_s10 + $0x40] sm:$0xff] %v5969_v51  ;;  %v6176_v37 = vpop.permute.xlu1 %6175 }
 0x490   : > { %v6204_v17 = vsel %vm3782_vm2, %v6092_v4, %v6176_v37 }
 0x491   : > { %6216 = vst [vmem:[%s11306_s11 + $0x38] sm:$0xff] %v6204_v17 }
 0x495   : > { %v5932_v9 = vpop.permute.xlu1 %5931 }
 0x496   : > { %v5970_v31 = vsel %vm3782_vm2, %v11182_v60, %v5932_v9 }
 0x497   : > { %5986 = vst [vmem:[%s11281_s10 + $0x48] sm:$0xff] %v5970_v31 }
 0x49b   : > { %v6146_v16 = vpop.permute.xlu0 %6145 }
 0x49c   : > { %v6197_v25 = vsel %vm3782_vm2, %v6021_v38, %v6146_v16 }
 0x49d   : > { %6217 = vst [vmem:[%s11306_s11 + $0x40] sm:$0xff] %v6197_v25 }
 0x49f   : > { %v6178_v10 = vpop.permute.xlu0 %6177 }
 0x4a0   : > { %v6205_v6 = vsel %vm3782_vm2, %v6093_v39, %v6178_v10 }
 0x4a1   : > { %6218 = vst [vmem:[%s11306_s11 + $0x48] sm:$0xff] %v6205_v6 }
 0x4a3   : > { %v5934_v3 = vpop.permute.xlu0 %5933 }
 0x4a4   : > { %v5971_v60 = vsel %vm3782_vm2, %v11200_v35, %v5934_v3  ;;  %v6094_v35 = vmul.f32 0.5, %v11228_v13 }
 0x4a5   : > { %5987 = vst [vmem:[%s11281_s10 + $0x50] sm:$0xff] %v5971_v60  ;;  %v5936_v1 = vpop.permute.xlu1 %5935 }
 0x4a6   : > { %v5972_v42 = vsel %vm3782_vm2, %v11217_v33, %v5936_v1 }
 0x4a7   : > { %5988 = vst [vmem:[%s11281_s10 + $0x58] sm:$0xff] %v5972_v42 }
 0x4ab   : > { %v6148_v40 = vpop.permute.xlu1 %6147 }
 0x4ac   : > { %v6198_v57 = vsel %vm3782_vm2, %v6022_v30, %v6148_v40 }
 0x4ad   : > { %6219 = vst [vmem:[%s11306_s11 + $0x50] sm:$0xff] %v6198_v57  ;;  %v5938_v52 = vpop.permute.xlu0 %5937 }
 0x4ae   : > { %v5973_v8 = vsel %vm3782_vm2, %v11235_v15, %v5938_v52 }
 0x4af   : > { %5989 = vst [vmem:[%s11281_s10 + $0x60] sm:$0xff] %v5973_v8  ;;  %v6180_v5 = vpop.permute.xlu1 %6179 }
 0x4b0   : > { %v6206_v33 = vsel %vm3782_vm2, %v6094_v35, %v6180_v5 }
 0x4b1   : > { %6220 = vst [vmem:[%s11306_s11 + $0x58] sm:$0xff] %v6206_v33 }
 0x4b5   : > { %v5940_v2 = vpop.permute.xlu1 %5939 }
 0x4b6   : > { %v5974_v43 = vsel %vm3782_vm2, %v11249_v24, %v5940_v2  ;;  %v6095_v24 = vmul.f32 0.5, %v11265_v41 }
 0x4b7   : > { %5990 = vst [vmem:[%s11281_s10 + $0x68] sm:$0xff] %v5974_v43 }
 0x4bb   : > { %v6150_v49 = vpop.permute.xlu0 %6149 }
 0x4bc   : > { %v6199_v15 = vsel %vm3782_vm2, %v6023_v26, %v6150_v49 }
 0x4bd   : > { %6221 = vst [vmem:[%s11306_s11 + $0x60] sm:$0xff] %v6199_v15 }
 0x4bf   : > { %v5942_v13 = vpop.permute.xlu0 %5941 }
 0x4c0   : > { %v5975_v48 = vsel %vm3782_vm2, %v11272_v59, %v5942_v13 }
 0x4c1   : > { %5991 = vst [vmem:[%s11281_s10 + $0x70] sm:$0xff] %v5975_v48 }
 0x4c3   : > { %v6182_v7 = vpop.permute.xlu0 %6181 }
 0x4c4   : > { %v6207_v0 = vsel %vm3782_vm2, %v6095_v24, %v6182_v7 }
 0x4c5   : > { %6222 = vst [vmem:[%s11306_s11 + $0x68] sm:$0xff] %v6207_v0  ;;  %v5944_v46 = vpop.permute.xlu1 %5943 }
 0x4c6   : > { %v5976_v59 = vsel %vm3782_vm2, %v11287_v54, %v5944_v46 }
 0x4c7   : > { %5992 = vst [vmem:[%s11281_s10 + $0x78] sm:$0xff] %v5976_v59 }
 0x4c8   : > { %7827 = shalt.err (!%p7824_p3)
}
 0x4c9   : > { %s7828_s26 = scalar_lea.hbm %s11394_s15, 2048  ;;  %s7832_s13 = scalar_lea.hbm %s11486_s5, 4096 }
 0x4ca   : > { %p7829_p4 = scmp.ne.s32.totalorder %s11394_s15, %s7828_s26  ;;  %p7833_p9 = scmp.lt.s32.totalorder %s11394_s15, %s11486_s5 }
 0x4cb   : > { %p7834_p10 = scmp.lt.s32.totalorder %s7832_s13, %s7828_s26 }
 0x4cc   : > { %p7830_p7 = pnand %p7829_p4, %p7987_p5 }
 0x4cd   : > { %p7835_p11 = por %p7834_p10, %p7833_p9 }
 0x4ce   : > { %p7831_p8 = pneg %p7830_p7 }
 0x4d0   : > { %p7836_p12 = pnand %p7835_p11, %p7831_p8 }
 0x4d2   : > { %7839 = shalt.err (!%p7836_p12)
}
 0x4d3   : > { %s7909_s17 = smov 128   ;;  %s7910_s19 = smov 8   ;;  %v6024_v41 = vmul.f32 0.5, %v11294_v36  ;;  %v6152_v54 = vpop.permute.xlu1 %6151  ;;  %v6096_v29 = vmul.f32 0.5, %v11296_v55 }
 0x4d4   : > { %7764 = dma.vmem_to_hbm [thread:$0]  (%p7987_p5), %s11396_s12, 2048, %s11394_s15, %s6226_s16, %s7909_s17, %s7909_s17, %s7910_s19  }
 0x4d5   : > { %s6260_s20 = sshll.u32 %s11306_s11, 4  ;;  %v6200_v12 = vsel %vm3782_vm2, %v6024_v41, %v6152_v54  ;;  %s11435_s10 = scalar_lea.hbm %s11487_s6, %s7012_s28  ;;  %s11437_s20 = int_to_ptr.vmem [resolvable:$true] %s6260_s20 }
 0x4d6   : > { %6223 = vst [vmem:[%s11306_s11 + $0x70] sm:$0xff] %v6200_v12  ;;  %s6231_s12 = scalar_lea.sflag [#allocation7], %s11261_s29  ;;  %s7840_s15 = scalar_lea.vmem %s11437_s20, 2048 }
 0x4d7   : > { %v6184_v45 = vpop.permute.xlu1 %6183  ;;  %p7841_p13 = scmp.ne.s32.totalorder %s11437_s20, %s7840_s15  ;;  %s7911_s25 = smov [#allocation6]  }
 0x4d8   : > { %v6208_v36 = vsel %vm3782_vm2, %v6096_v29, %v6184_v45  ;;  %s7844_s16 = sshll.u32 %s7911_s25, 4  ;;  %s7845_s16 = int_to_ptr.vmem [resolvable:$false] %s7844_s16 }
 0x4d9   : > { %6224 = vst [vmem:[%s11306_s11 + $0x78] sm:$0xff] %v6208_v36  ;;  %p7842_p0 = pnand %p7841_p13, %p7987_p5  ;;  %s7846_s28 = scalar_lea.vmem %s7845_s16, 4096 }
 0x4da   : > { %p7847_p2 = scmp.lt.s32.totalorder %s11437_s20, %s7845_s16  ;;  %p7848_p3 = scmp.lt.s32.totalorder %s7846_s28, %s7840_s15 }
 0x4db   : > { %p7843_p1 = pneg %p7842_p0 }
 0x4dc   : > { %p7849_p4 = por %p7848_p3, %p7847_p2 }
 0x4de   : > { %p7850_p7 = pnand %p7849_p4, %p7843_p1 }
 0x4e0   : > { %7853 = shalt.err (!%p7850_p7)
}
 0x4e1   : > { %s7854_s11 = scalar_lea.hbm %s11435_s10, 2048  ;;  %s7858_s18 = scalar_lea.hbm %s11487_s6, 4096 }
 0x4e2   : > { %p7855_p8 = scmp.ne.s32.totalorder %s11435_s10, %s7854_s11  ;;  %p7859_p11 = scmp.lt.s32.totalorder %s11435_s10, %s11487_s6 }
 0x4e3   : > { %p7860_p12 = scmp.lt.s32.totalorder %s7858_s18, %s7854_s11 }
 0x4e4   : > { %p7856_p9 = pnand %p7855_p8, %p7987_p5 }
 0x4e5   : > { %p7861_p13 = por %p7860_p12, %p7859_p11 }
 0x4e6   : > { %p7857_p10 = pneg %p7856_p9 }
 0x4e8   : > { %p7862_p0 = pnand %p7861_p13, %p7857_p10 }
 0x4ea   : > { %7865 = shalt.err (!%p7862_p0)
}
 0x4eb   : > { %s7912_s26 = smov 256   ;;  %s7913_s9 = smov 16  }
 0x4ec   : > { %7765 = dma.vmem_to_hbm [thread:$0]  (%p7987_p5), %s11437_s20, 2048, %s11435_s10, %s6231_s12, %s7912_s26, %s7912_s26, %s7913_s9  }
 0x4ed PF: > { %p7775_p1 = scmp.ge.s32.totalorder %s7904_s24, 2  ;;  %s6275_s15 = sand.u32 1, %s7892_s21  }
 0x4ee   : > { %s6276_s25 = scalar_lea.sflag [#allocation5], %s6275_s15 }
 0x4ef   : > { %p7769_p2 = pnand %p7775_p1, %p7991_p6 }
 0x4f1   : > { %p7770_p3 = pneg %p7769_p2 }
 0x4f3   : > { %7883 = dma.done.wait (%p7770_p3), %s6276_s25, 2048  }
 0x4f4   : > { %7885 = vsyncadd (%p7770_p3), %s6276_s25, 4294965248  ;;  %s6285_s16 = scalar_lea.sflag [#allocation7], %s6275_s15 }
 0x4f5   : > { %7887 = dma.done.wait (%p7770_p3), %s6285_s16, 2048  }
 0x4f6   : > { %7889 = vsyncadd (%p7770_p3), %s6285_s16, 4294965248  ;;  %p20_p5 = scmp.ge.s32.totalorder %s7974_s27, 4   ;;  %s11784_s21 = smov %s7896_s22 }
 0x4f7   : > { %s11785_s22 = smov %s7900_s23  ;;  %s11786_s23 = smov %s7985_s30 }
 0x4f8   : > { %s11787_s24 = smov %s7974_s27  ;;  %22 = sbr.rel (!%p20_p5) target bundleno = 5 (0x5), region = 138 }
 0x4fd   :  { %6290 = vsyncpa [#allocation5], 1 }
 0x4fe   :  { %6292 = vsyncpa [#allocation5 + $0x1], 1 }
 0x4ff   :  { %6293 = vsyncpa [#allocation7], 1 }
 0x500   :  { %6295 = vsyncpa [#allocation7 + $0x1], 1 }

</bundles_post_ra>
